<compile_context>
chip_gen: v7x
topology: tpu7x:2x2x1
jax: 0.10.0
libtpu: 0.0.40
codegen_flags: <defaults>
</compile_context>

<pallas_src>
import functools

import jax
import jax.numpy as jnp
from jax.experimental import pallas as pl
from jax.experimental.pallas import tpu as pltpu

_EPS = 1e-5
_LANE = 128


def _default_vmem_limit():
    try:
        cap = int(pltpu.get_tpu_info().vmem_capacity_bytes)
    except Exception:
        cap = 64 * 1024 * 1024            # conservative fallback (v7x-sized)
    # 3/4 of physical VMEM, capped: ~48 MiB on v7x, ~96 MiB on v5e/v6e.
    return min((cap * 3) // 4, 112 * 1024 * 1024)


_VMEM_LIMIT = _default_vmem_limit()


def _cparams(n_axes):
    return pltpu.CompilerParams(
        dimension_semantics=("parallel",) * n_axes,
        vmem_limit_bytes=_VMEM_LIMIT)


def _round_up(x, mult):
    return (x + mult - 1) // mult * mult


# ----------------------------- in-kernel helpers ---------------------------- #
def _bn_coeffs(stats_ref, gamma_ref, beta_ref, m_total):
    """Fold train-mode BN into y*scale + shift.  stats_ref: (2, C) = [sum; sumsq]."""
    inv_m = 1.0 / float(m_total)
    mean = stats_ref[0:1, :] * inv_m                     # (1, C)
    var = stats_ref[1:2, :] * inv_m - mean * mean        # biased variance
    scale = jax.lax.rsqrt(var + _EPS) * gamma_ref[...]
    shift = beta_ref[...] - mean * scale
    return scale, shift


def _pack_stats(s, ss):
    """Pack sum / sumsq into a lane-dense (8, C) block (single unmasked store)."""
    pad = jnp.zeros((6, s.shape[1]), jnp.float32)
    return jnp.concatenate([s, ss, pad], axis=0)


# ----------------------------- Pallas kernels ------------------------------- #
def _conv1x1_stats_kernel(x_ref, w_ref, y_ref, ps_ref, *, m_rows):
    """y = x @ w (bf16 operands, f32 acc); per-tile channel sum/sumsq (row-masked)."""
    y = jnp.dot(x_ref[...], w_ref[...], preferred_element_type=jnp.float32)
    y_ref[...] = y.astype(y_ref.dtype)
    tm = y.shape[0]
    rows = jax.lax.broadcasted_iota(jnp.int32, (tm, 1), 0) + pl.program_id(0) * tm
    ym = jnp.where(rows < m_rows, y, 0.0)                # mask ragged last tile
    ps_ref[0] = _pack_stats(jnp.sum(ym, axis=0, keepdims=True),
                            jnp.sum(ym * ym, axis=0, keepdims=True))


def _bn_relu_conv3x3_stats_kernel(y1_ref, s1_ref, g1_ref, b1_ref, w2_ref,
                                  y2_ref, ps_ref, slab_ref, *, m_total):
    """BN1+ReLU on one (1,H,W,Cp) image, 3x3/pad-1 conv as a single im2col
    matmul (K = 9*Cp) from a contiguous VMEM slab; emit BN2 partial stats."""
    _, hh, ww, cin = y1_ref.shape
    cout = y2_ref.shape[3]
    scale, shift = _bn_coeffs(s1_ref, g1_ref, b1_ref, m_total)
    y1 = y1_ref[0].astype(jnp.float32)                               # (H, W, Cp)
    y1n = jnp.maximum(y1 * scale.reshape(1, 1, cin) + shift.reshape(1, 1, cin),
                      0.0).astype(jnp.bfloat16)

    # Build the im2col slab (H, W, 9*Cp) directly; zero ONLY the border strips
    # (no full-buffer memset, no program_id gating -> megacore safe).
    for k in range(9):                                               # static unroll
        dy, dx = k // 3, k % 3
        oy0, oy1 = max(0, 1 - dy), min(hh, hh + 1 - dy)
        ox0, ox1 = max(0, 1 - dx), min(ww, ww + 1 - dx)
        c0 = k * cin
        if oy0 > 0:
            slab_ref[0:oy0, :, c0:c0 + cin] = jnp.zeros((oy0, ww, cin), jnp.bfloat16)
        if oy1 < hh:
            slab_ref[oy1:hh, :, c0:c0 + cin] = jnp.zeros((hh - oy1, ww, cin),
                                                         jnp.bfloat16)
        if ox0 > 0:
            slab_ref[:, 0:ox0, c0:c0 + cin] = jnp.zeros((hh, ox0, cin), jnp.bfloat16)
        if ox1 < ww:
            slab_ref[:, ox1:ww, c0:c0 + cin] = jnp.zeros((hh, ww - ox1, cin),
                                                         jnp.bfloat16)
        slab_ref[oy0:oy1, ox0:ox1, c0:c0 + cin] = (
            y1n[oy0 + dy - 1:oy1 + dy - 1, ox0 + dx - 1:ox1 + dx - 1, :])

    # One big MXU matmul: (H*W, 9*Cp) @ (9*Cp, Cp), f32 accumulation.
    acc = jnp.dot(slab_ref[...].reshape(hh * ww, 9 * cin), w2_ref[...],
                  preferred_element_type=jnp.float32)
    y2_ref[...] = acc.reshape(1, hh, ww, cout).astype(y2_ref.dtype)
    ps_ref[0] = _pack_stats(jnp.sum(acc, axis=0, keepdims=True),
                            jnp.sum(acc * acc, axis=0, keepdims=True))


def _bn_relu_conv1x1_stats_kernel(y_ref, s_ref, g_ref, b_ref, w_ref,
                                  o_ref, ps_ref, *, m_total):
    """BN2+ReLU folded into conv3's matmul input; emit BN3 partial stats."""
    scale, shift = _bn_coeffs(s_ref, g_ref, b_ref, m_total)
    yn = jnp.maximum(y_ref[...].astype(jnp.float32) * scale + shift, 0.0)
    z = jnp.dot(yn.astype(jnp.bfloat16), w_ref[...],
                preferred_element_type=jnp.float32)
    o_ref[...] = z.astype(o_ref.dtype)
    tm = z.shape[0]
    rows = jax.lax.broadcasted_iota(jnp.int32, (tm, 1), 0) + pl.program_id(0) * tm
    zm = jnp.where(rows < m_total, z, 0.0)               # mask ragged last tile
    ps_ref[0] = _pack_stats(jnp.sum(zm, axis=0, keepdims=True),
                            jnp.sum(zm * zm, axis=0, keepdims=True))


def _bn_add_relu_kernel(y_ref, s_ref, g_ref, b_ref, res_ref, o_ref, *, m_total):
    """out = relu(BN3(y3) + residual).  Residual arrives as bf16 (HBM savings)."""
    scale, shift = _bn_coeffs(s_ref, g_ref, b_ref, m_total)
    y = y_ref[...].astype(jnp.float32) * scale + shift
    o_ref[...] = jnp.maximum(y + res_ref[...].astype(jnp.float32), 0.0
                             ).astype(o_ref.dtype)


# ------------------------------ JAX wrapper --------------------------------- #
@functools.partial(jax.jit, static_argnames=("tile_m",))
def bottleneck_forward(x_nchw, params, *, tile_m=1024):
    """Pallas Bottleneck forward.  x_nchw: (N, Cin, H, W), Cin == 4*planes."""
    n, cin, h, w = x_nchw.shape
    m = n * h * w
    p = params["w1"].shape[1]       # planes
    c4 = params["w3"].shape[1]      # planes * 4
    assert cin == c4, "no-downsample Bottleneck requires inplanes == planes*4"
    # TODO(synk): stride>1 / downsample branch not implemented (downsample=None
    # in the reference module forces stride=1 and inplanes == 4*planes).

    cinp = _round_up(cin, _LANE)
    pp = _round_up(p, _LANE)
    c4p = _round_up(c4, _LANE)      # == cinp

    # NHWC, flattened to (M, C), channel-padded to lane multiples.  Padded
    # gamma/beta are 0 => padded channels are exactly 0 through every stage.
    x2d = jnp.pad(
        jnp.transpose(x_nchw, (0, 2, 3, 1)).reshape(m, cin).astype(jnp.float32),
        ((0, 0), (0, cinp - cin))).astype(jnp.bfloat16)

    w1 = jnp.pad(params["w1"], ((0, cinp - cin), (0, pp - p)))          # (Cinp, Pp)
    w2 = jnp.pad(params["w2"],
                 ((0, 0), (0, pp - p), (0, pp - p))).reshape(9 * pp, pp)  # (9Pp, Pp)
    w3 = jnp.pad(params["w3"], ((0, pp - p), (0, c4p - c4)))            # (Pp, C4p)
    g1 = jnp.pad(params["g1"], (0, pp - p)).reshape(1, pp)
    b1 = jnp.pad(params["b1"], (0, pp - p)).reshape(1, pp)
    g2 = jnp.pad(params["g2"], (0, pp - p)).reshape(1, pp)
    b2 = jnp.pad(params["b2"], (0, pp - p)).reshape(1, pp)
    g3 = jnp.pad(params["g3"], (0, c4p - c4)).reshape(1, c4p)
    b3 = jnp.pad(params["b3"], (0, c4p - c4)).reshape(1, c4p)

    # tile_m: largest multiple-of-16 tile <= tile_m whose double-buffered
    # in/out tiles of the widest pass fit in ~half the scoped VMEM limit.
    bytes_per_row = max(2 * cinp + 2 * pp,          # Pass A (bf16 in/out)
                        2 * pp + 2 * c4p,           # Pass C
                        (2 + 2 + 4) * c4p)          # Pass D (bf16+bf16 in, f32 out)
    budget = _VMEM_LIMIT // 2
    tm = max(16, min(tile_m, _round_up(m, 16)))
    tm -= tm % 16
    while tm > 16 and 2 * tm * bytes_per_row > budget:
        tm = max(16, (tm // 2) - ((tm // 2) % 16))
    mt = pl.cdiv(m, tm)

    # TODO(synk): single-buffer the resident weight/stat blocks
    # (pipeline_mode=pl.Buffered(1)) to halve their VMEM footprint on v7x.

    # ---- Pass A: conv1 (1x1) matmul + BN1 partial stats, grid over M tiles.
    y1, ps1 = pl.pallas_call(
        functools.partial(_conv1x1_stats_kernel, m_rows=m),
        grid=(mt,),
        in_specs=[pl.BlockSpec((tm, cinp), lambda i: (i, 0)),
                  pl.BlockSpec((cinp, pp), lambda i: (0, 0))],   # resident weight
        out_specs=(pl.BlockSpec((tm, pp), lambda i: (i, 0)),
                   pl.BlockSpec((1, 8, pp), lambda i: (i, 0, 0))),
        out_shape=(jax.ShapeDtypeStruct((m, pp), jnp.bfloat16),
                   jax.ShapeDtypeStruct((mt, 8, pp), jnp.float32)),
        compiler_params=_cparams(1),
        cost_estimate=pl.CostEstimate(
            flops=2 * m * cinp * pp, transcendentals=0,
            bytes_accessed=2 * m * cinp + 2 * cinp * pp + 2 * m * pp),
    )(x2d, w1)
    s1 = jnp.sum(ps1, axis=0)[:2]                 # (2, Pp) global sum / sumsq

    # ---- Pass B: BN1+ReLU + conv2 (3x3, pad 1, single im2col matmul) + BN2 stats.
    # TODO(synk): add an H row-band grid axis (with 1-row halo) so v7x's two
    # TensorCores get parallel work when the per-chip batch is small.
    y1_img = y1.reshape(n, h, w, pp)
    y2_img, ps2 = pl.pallas_call(
        functools.partial(_bn_relu_conv3x3_stats_kernel, m_total=m),
        grid=(n,),
        in_specs=[pl.BlockSpec((1, h, w, pp), lambda b: (b, 0, 0, 0)),
                  pl.BlockSpec((2, pp), lambda b: (0, 0)),
                  pl.BlockSpec((1, pp), lambda b: (0, 0)),
                  pl.BlockSpec((1, pp), lambda b: (0, 0)),
                  pl.BlockSpec((9 * pp, pp), lambda b: (0, 0))],
        out_specs=(pl.BlockSpec((1, h, w, pp), lambda b: (b, 0, 0, 0)),
                   pl.BlockSpec((1, 8, pp), lambda b: (b, 0, 0))),
        out_shape=(jax.ShapeDtypeStruct((n, h, w, pp), jnp.bfloat16),
                   jax.ShapeDtypeStruct((n, 8, pp), jnp.float32)),
        scratch_shapes=[pltpu.VMEM((h, w, 9 * pp), jnp.bfloat16)],   # im2col slab
        compiler_params=_cparams(1),
        cost_estimate=pl.CostEstimate(
            flops=2 * m * 9 * pp * pp, transcendentals=0,
            bytes_accessed=4 * m * pp + 2 * 9 * pp * pp),
    )(y1_img, s1, g1, b1, w2)
    s2 = jnp.sum(ps2, axis=0)[:2]

    # ---- Pass C: BN2+ReLU + conv3 (1x1) + BN3 partial stats, grid over M tiles.
    y2 = y2_img.reshape(m, pp)
    y3, ps3 = pl.pallas_call(
        functools.partial(_bn_relu_conv1x1_stats_kernel, m_total=m),
        grid=(mt,),
        in_specs=[pl.BlockSpec((tm, pp), lambda i: (i, 0)),
                  pl.BlockSpec((2, pp), lambda i: (0, 0)),
                  pl.BlockSpec((1, pp), lambda i: (0, 0)),
                  pl.BlockSpec((1, pp), lambda i: (0, 0)),
                  pl.BlockSpec((pp, c4p), lambda i: (0, 0))],
        out_specs=(pl.BlockSpec((tm, c4p), lambda i: (i, 0)),
                   pl.BlockSpec((1, 8, c4p), lambda i: (i, 0, 0))),
        out_shape=(jax.ShapeDtypeStruct((m, c4p), jnp.bfloat16),
                   jax.ShapeDtypeStruct((mt, 8, c4p), jnp.float32)),
        compiler_params=_cparams(1),
        cost_estimate=pl.CostEstimate(
            flops=2 * m * pp * c4p, transcendentals=0,
            bytes_accessed=2 * m * pp + 2 * pp * c4p + 2 * m * c4p),
    )(y2, s2, g2, b2, w3)
    s3 = jnp.sum(ps3, axis=0)[:2]

    # ---- Pass D: BN3 + residual (bf16) + ReLU, grid over M tiles.
    out2d = pl.pallas_call(
        functools.partial(_bn_add_relu_kernel, m_total=m),
        grid=(mt,),
        in_specs=[pl.BlockSpec((tm, c4p), lambda i: (i, 0)),
                  pl.BlockSpec((2, c4p), lambda i: (0, 0)),
                  pl.BlockSpec((1, c4p), lambda i: (0, 0)),
                  pl.BlockSpec((1, c4p), lambda i: (0, 0)),
                  pl.BlockSpec((tm, c4p), lambda i: (i, 0))],   # bf16 residual = x2d
        out_specs=pl.BlockSpec((tm, c4p), lambda i: (i, 0)),
        out_shape=jax.ShapeDtypeStruct((m, c4p), jnp.float32),
        compiler_params=_cparams(1),
        cost_estimate=pl.CostEstimate(
            flops=4 * m * c4p, transcendentals=0,
            bytes_accessed=2 * m * c4p + 2 * m * c4p + 4 * m * c4p),
    )(y3, s3, g3, b3, x2d)

    out = out2d[:, :c4].reshape(n, h, w, c4)          # drop padded lanes
    return jnp.transpose(out, (0, 3, 1, 2))           # back to NCHW


# --------------------------- pure-JAX reference ----------------------------- #
def bottleneck_reference_nchw(x, params):
    def conv(x, w_oihw, pad=0):
        return jax.lax.conv_general_dilated(
            x, w_oihw, (1, 1), [(pad, pad), (pad, pad)],
            dimension_numbers=("NCHW", "OIHW", "NCHW"))

    def bn(x, g, b):
        mean = jnp.mean(x, axis=(0, 2, 3), keepdims=True)
        var = jnp.mean(jnp.square(x - mean), axis=(0, 2, 3), keepdims=True)
        xh = (x - mean) / jnp.sqrt(var + _EPS)
        return xh * g.reshape(1, -1, 1, 1) + b.reshape(1, -1, 1, 1)

    out = jax.nn.relu(bn(conv(x, params["w1_oihw"]), params["g1"], params["b1"]))
    out = jax.nn.relu(bn(conv(out, params["w2_oihw"], pad=1),
                         params["g2"], params["b2"]))
    out = bn(conv(out, params["w3_oihw"]), params["g3"], params["b3"])
    return jax.nn.relu(out + x)


# ------------------------------- parameters --------------------------------- #
def make_params(key, inplanes, planes):
    ks = jax.random.split(key, 9)
    expansion = 4
    w1_oihw = 0.1 * jax.random.normal(ks[0], (planes, inplanes, 1, 1), jnp.float32)
    w2_oihw = 0.1 * jax.random.normal(ks[1], (planes, planes, 3, 3), jnp.float32)
    w3_oihw = 0.1 * jax.random.normal(
        ks[2], (planes * expansion, planes, 1, 1), jnp.float32)
    g1 = 1.0 + 0.1 * jax.random.normal(ks[3], (planes,), jnp.float32)
    b1 = 0.1 * jax.random.normal(ks[4], (planes,), jnp.float32)
    g2 = 1.0 + 0.1 * jax.random.normal(ks[5], (planes,), jnp.float32)
    b2 = 0.1 * jax.random.normal(ks[6], (planes,), jnp.float32)
    g3 = 1.0 + 0.1 * jax.random.normal(ks[7], (planes * expansion,), jnp.float32)
    b3 = 0.1 * jax.random.normal(ks[8], (planes * expansion,), jnp.float32)

    # bf16 matmul layouts for the Pallas kernels (f32 accumulation in-kernel).
    w1 = jnp.transpose(w1_oihw[:, :, 0, 0], (1, 0)).astype(jnp.bfloat16)   # (Cin, P)
    w2 = jnp.transpose(w2_oihw, (2, 3, 1, 0)).reshape(                     # (9, P, P)
        9, planes, planes).astype(jnp.bfloat16)                            # k = ky*3+kx
    w3 = jnp.transpose(w3_oihw[:, :, 0, 0], (1, 0)).astype(jnp.bfloat16)   # (P, 4P)

    return dict(w1=w1, w2=w2, w3=w3,
                w1_oihw=w1_oihw, w2_oihw=w2_oihw, w3_oihw=w3_oihw,
                g1=g1, b1=b1, g2=g2, b2=b2, g3=g3, b3=b3)


if __name__ == "__main__":
    key = jax.random.PRNGKey(0)
    k_x, k_p = jax.random.split(key)

    inplanes, planes = 16, 4      # inplanes == planes * expansion (no downsample)
    n, h, w = 2, 16, 16           # M = N*H*W = 512 -> 4 grid steps at tile_m=128
    x = jax.random.normal(k_x, (n, inplanes, h, w), jnp.float32)   # NCHW like PyTorch
    params = make_params(k_p, inplanes, planes)

    out = jax.block_until_ready(bottleneck_forward(x, params, tile_m=128))
    ref = bottleneck_reference_nchw(x, params)

    assert out.shape == ref.shape == (n, inplanes, h, w)
    max_abs = float(jnp.max(jnp.abs(out - ref)))
    rel = float(jnp.linalg.norm(out - ref) / (jnp.linalg.norm(ref) + 1e-12))
    # bf16 matmul operands / intermediates / residual vs. an all-f32 reference.
    assert rel < 2e-2 and max_abs < 0.2, (rel, max_abs)

    print("KERNEL_OK")
</pallas_src>

<mosaic_0001>
module attributes {stable_mosaic.version = 11 : i64} {
  func.func @_conv1x1_stats_kernel(%arg0: i32, %arg1: memref<128x128xbf16, #tpu.memory_space<vmem>>, %arg2: memref<128x128xbf16, #tpu.memory_space<vmem>>, %arg3: memref<128x128xbf16, #tpu.memory_space<vmem>>, %arg4: memref<1x8x128xf32, #tpu.memory_space<vmem>>) attributes {dimension_semantics = [#tpu.dimension_semantics<parallel>], iteration_bounds = array<i64: 4>, scalar_prefetch = 0 : i64, scratch_operands = 0 : i64, tpu.core_type = #tpu.core_type<tc>, window_params = [{transform_indices = @transform_0, window_bounds = array<i64: 128, 128>}, {pipeline_mode = #tpu.pipeline_mode<synchronous>, transform_indices = @transform_1, window_bounds = array<i64: 128, 128>}, {transform_indices = @transform_2, window_bounds = array<i64: 128, 128>}, {transform_indices = @transform_3, window_bounds = array<i64: 1, 8, 128>}]} {
    %c0 = arith.constant 0 : index
    %c0_0 = arith.constant 0 : index
    %0 = vector.load %arg1[%c0, %c0_0] : memref<128x128xbf16, #tpu.memory_space<vmem>>, vector<128x128xbf16>
    %c0_1 = arith.constant 0 : index
    %c0_2 = arith.constant 0 : index
    %1 = vector.load %arg2[%c0_1, %c0_2] : memref<128x128xbf16, #tpu.memory_space<vmem>>, vector<128x128xbf16>
    %cst = arith.constant dense<0.000000e+00> : vector<128x128xf32>
    %2 = tpu.matmul %0, %1, %cst {dimension_numbers = #tpu.dot_dimension_numbers<[1], [0], [0], [1], [0, 0, 1, 1], [], []>} : vector<128x128xbf16>, vector<128x128xbf16>, vector<128x128xf32> -> vector<128x128xf32>
    %3 = arith.truncf %2 : vector<128x128xf32> to vector<128x128xbf16>
    %c0_3 = arith.constant 0 : index
    %c0_4 = arith.constant 0 : index
    %4 = vector.load %arg3[%c0_3, %c0_4] : memref<128x128xbf16, #tpu.memory_space<vmem>>, vector<128x128xbf16>
    tpu.vector_store %arg3[%c0_3, %c0_4], %3 {strides = array<i32>} : memref<128x128xbf16, #tpu.memory_space<vmem>>, vector<128x128xbf16>,
    %5 = tpu.iota {dimensions = array<i32: 0>} : vector<128x1xi32>
    %c128_i32 = arith.constant 128 : i32
    %6 = arith.muli %arg0, %c128_i32 : i32
    %7 = vector.broadcast %6 : i32 to vector<128x1xi32>
    %8 = arith.addi %5, %7 : vector<128x1xi32>
    %c512_i32 = arith.constant 512 : i32
    %9 = vector.broadcast %c512_i32 : i32 to vector<128x1xi32>
    %10 = arith.cmpi slt, %8, %9 : vector<128x1xi32>
    %cst_5 = arith.constant 0.000000e+00 : f32
    %11 = vector.shape_cast %10 : vector<128x1xi1> to vector<128x1xi1>
    %12 = vector.broadcast %11 : vector<128x1xi1> to vector<128x128xi1>
    %13 = vector.broadcast %cst_5 : f32 to vector<128x128xf32>
    %14 = arith.select %12, %2, %13 : vector<128x128xi1>, vector<128x128xf32>
    %cst_6 = arith.constant dense<0.000000e+00> : vector<128xf32>
    %15 = vector.multi_reduction <add>, %14, %cst_6 [0] : vector<128x128xf32> to vector<128xf32>
    %16 = vector.shape_cast %15 : vector<128xf32> to vector<1x128xf32>
    %17 = arith.mulf %14, %14 : vector<128x128xf32>
    %cst_7 = arith.constant dense<0.000000e+00> : vector<128xf32>
    %18 = vector.multi_reduction <add>, %17, %cst_7 [0] : vector<128x128xf32> to vector<128xf32>
    %19 = vector.shape_cast %18 : vector<128xf32> to vector<1x128xf32>
    %cst_8 = arith.constant 0.000000e+00 : f32
    %20 = vector.broadcast %cst_8 : f32 to vector<6x128xf32>
    %21 = tpu.concatenate %16, %19, %20 in 0 : vector<1x128xf32>, vector<1x128xf32>, vector<6x128xf32> -> vector<8x128xf32>
    %c0_9 = arith.constant 0 : index
    %c0_10 = arith.constant 0 : index
    %c0_11 = arith.constant 0 : index
    %22 = vector.load %arg4[%c0_9, %c0_10, %c0_11] : memref<1x8x128xf32, #tpu.memory_space<vmem>>, vector<1x8x128xf32>
    %23 = vector.shape_cast %22 : vector<1x8x128xf32> to vector<8x128xf32>
    %24 = vector.shape_cast %21 : vector<8x128xf32> to vector<1x8x128xf32>
    tpu.vector_store %arg4[%c0_9, %c0_10, %c0_11], %24 {strides = array<i32>} : memref<1x8x128xf32, #tpu.memory_space<vmem>>, vector<1x8x128xf32>,
    return
  }
  func.func @transform_0(%arg0: i32) -> (i32, i32) {
    %c0_i32 = arith.constant 0 : i32
    %c0_i32_0 = arith.constant 0 : i32
    return %arg0, %c0_i32 : i32, i32
  }
  func.func @transform_1(%arg0: i32) -> (i32, i32) {
    %c0_i32 = arith.constant 0 : i32
    %c0_i32_0 = arith.constant 0 : i32
    %c0_i32_1 = arith.constant 0 : i32
    return %c0_i32, %c0_i32_0 : i32, i32
  }
  func.func @transform_2(%arg0: i32) -> (i32, i32) {
    %c0_i32 = arith.constant 0 : i32
    %c0_i32_0 = arith.constant 0 : i32
    return %arg0, %c0_i32 : i32, i32
  }
  func.func @transform_3(%arg0: i32) -> (i32, i32, i32) {
    %c0_i32 = arith.constant 0 : i32
    %c0_i32_0 = arith.constant 0 : i32
    %c0_i32_1 = arith.constant 0 : i32
    return %arg0, %c0_i32, %c0_i32_0 : i32, i32, i32
  }
}

module attributes {stable_mosaic.version = 11 : i64} {
  func.func @_bn_relu_conv3x3_stats_kernel(%arg0: i32, %arg1: memref<1x16x16x128xbf16, #tpu.memory_space<vmem>>, %arg2: memref<2x128xf32, #tpu.memory_space<vmem>>, %arg3: memref<1x128xf32, #tpu.memory_space<vmem>>, %arg4: memref<1x128xf32, #tpu.memory_space<vmem>>, %arg5: memref<1152x128xbf16, #tpu.memory_space<vmem>>, %arg6: memref<1x16x16x128xbf16, #tpu.memory_space<vmem>>, %arg7: memref<1x8x128xf32, #tpu.memory_space<vmem>>, %arg8: memref<16x16x1152xbf16, #tpu.memory_space<vmem>>) attributes {dimension_semantics = [#tpu.dimension_semantics<parallel>], iteration_bounds = array<i64: 2>, scalar_prefetch = 0 : i64, scratch_operands = 1 : i64, tpu.core_type = #tpu.core_type<tc>, window_params = [{transform_indices = @transform_0, window_bounds = array<i64: 1, 16, 16, 128>}, {pipeline_mode = #tpu.pipeline_mode<synchronous>, transform_indices = @transform_1, window_bounds = array<i64: 2, 128>}, {pipeline_mode = #tpu.pipeline_mode<synchronous>, transform_indices = @transform_2, window_bounds = array<i64: 1, 128>}, {pipeline_mode = #tpu.pipeline_mode<synchronous>, transform_indices = @transform_3, window_bounds = array<i64: 1, 128>}, {pipeline_mode = #tpu.pipeline_mode<synchronous>, transform_indices = @transform_4, window_bounds = array<i64: 1152, 128>}, {transform_indices = @transform_5, window_bounds = array<i64: 1, 16, 16, 128>}, {transform_indices = @transform_6, window_bounds = array<i64: 1, 8, 128>}]} {
    %c0 = arith.constant 0 : index
    %c0_0 = arith.constant 0 : index
    %0 = vector.load %arg2[%c0, %c0_0] : memref<2x128xf32, #tpu.memory_space<vmem>>, vector<1x128xf32>
    %cst = arith.constant 0.001953125 : f32
    %1 = vector.broadcast %cst : f32 to vector<1x128xf32>
    %2 = arith.mulf %0, %1 : vector<1x128xf32>
    %c1 = arith.constant 1 : index
    %c0_1 = arith.constant 0 : index
    %3 = vector.load %arg2[%c1, %c0_1] : memref<2x128xf32, #tpu.memory_space<vmem>>, vector<1x128xf32>
    %cst_2 = arith.constant 0.001953125 : f32
    %4 = vector.broadcast %cst_2 : f32 to vector<1x128xf32>
    %5 = arith.mulf %3, %4 : vector<1x128xf32>
    %6 = arith.mulf %2, %2 : vector<1x128xf32>
    %7 = arith.subf %5, %6 : vector<1x128xf32>
    %cst_3 = arith.constant 9.99999974E-6 : f32
    %8 = vector.broadcast %cst_3 : f32 to vector<1x128xf32>
    %9 = arith.addf %7, %8 : vector<1x128xf32>
    %10 = math.rsqrt %9 : vector<1x128xf32>
    %c0_4 = arith.constant 0 : index
    %c0_5 = arith.constant 0 : index
    %11 = vector.load %arg3[%c0_4, %c0_5] : memref<1x128xf32, #tpu.memory_space<vmem>>, vector<1x128xf32>
    %12 = arith.mulf %10, %11 : vector<1x128xf32>
    %c0_6 = arith.constant 0 : index
    %c0_7 = arith.constant 0 : index
    %13 = vector.load %arg4[%c0_6, %c0_7] : memref<1x128xf32, #tpu.memory_space<vmem>>, vector<1x128xf32>
    %14 = arith.mulf %2, %12 : vector<1x128xf32>
    %15 = arith.subf %13, %14 : vector<1x128xf32>
    %c0_8 = arith.constant 0 : index
    %c0_9 = arith.constant 0 : index
    %c0_10 = arith.constant 0 : index
    %c0_11 = arith.constant 0 : index
    %16 = vector.load %arg1[%c0_8, %c0_9, %c0_10, %c0_11] : memref<1x16x16x128xbf16, #tpu.memory_space<vmem>>, vector<1x16x16x128xbf16>
    %17 = vector.shape_cast %16 : vector<1x16x16x128xbf16> to vector<16x16x128xbf16>
    %18 = arith.extf %17 : vector<16x16x128xbf16> to vector<16x16x128xf32>
    %19 = vector.shape_cast %12 : vector<1x128xf32> to vector<1x1x128xf32>
    %20 = vector.broadcast %19 : vector<1x1x128xf32> to vector<16x16x128xf32>
    %21 = arith.mulf %18, %20 : vector<16x16x128xf32>
    %22 = vector.shape_cast %15 : vector<1x128xf32> to vector<1x1x128xf32>
    %23 = vector.broadcast %22 : vector<1x1x128xf32> to vector<16x16x128xf32>
    %24 = arith.addf %21, %23 : vector<16x16x128xf32>
    %cst_12 = arith.constant 0.000000e+00 : f32
    %25 = vector.broadcast %cst_12 : f32 to vector<16x16x128xf32>
    %26 = arith.maximumf %24, %25 : vector<16x16x128xf32>
    %27 = arith.truncf %26 : vector<16x16x128xf32> to vector<16x16x128xbf16>
    %cst_13 = arith.constant 0.000000e+00 : bf16
    %28 = vector.broadcast %cst_13 : bf16 to vector<1x16x128xbf16>
    %c0_14 = arith.constant 0 : index
    %c0_15 = arith.constant 0 : index
    %c0_16 = arith.constant 0 : index
    %29 = vector.load %arg8[%c0_14, %c0_15, %c0_16] : memref<16x16x1152xbf16, #tpu.memory_space<vmem>>, vector<1x16x128xbf16>
    tpu.vector_store %arg8[%c0_14, %c0_15, %c0_16], %28 {strides = array<i32>} : memref<16x16x1152xbf16, #tpu.memory_space<vmem>>, vector<1x16x128xbf16>,
    %cst_17 = arith.constant 0.000000e+00 : bf16
    %30 = vector.broadcast %cst_17 : bf16 to vector<16x1x128xbf16>
    %c0_18 = arith.constant 0 : index
    %c0_19 = arith.constant 0 : index
    %c0_20 = arith.constant 0 : index
    %31 = vector.load %arg8[%c0_18, %c0_19, %c0_20] : memref<16x16x1152xbf16, #tpu.memory_space<vmem>>, vector<16x1x128xbf16>
    tpu.vector_store %arg8[%c0_18, %c0_19, %c0_20], %30 {strides = array<i32>} : memref<16x16x1152xbf16, #tpu.memory_space<vmem>>, vector<16x1x128xbf16>,
    %32 = vector.extract_strided_slice %27 {offsets = [0, 0, 0], sizes = [15, 15, 128], strides = [1, 1, 1]} : vector<16x16x128xbf16> to vector<15x15x128xbf16>
    %c1_21 = arith.constant 1 : index
    %c1_22 = arith.constant 1 : index
    %c0_23 = arith.constant 0 : index
    %33 = vector.load %arg8[%c1_21, %c1_22, %c0_23] : memref<16x16x1152xbf16, #tpu.memory_space<vmem>>, vector<15x15x128xbf16>
    tpu.vector_store %arg8[%c1_21, %c1_22, %c0_23], %32 {strides = array<i32>} : memref<16x16x1152xbf16, #tpu.memory_space<vmem>>, vector<15x15x128xbf16>,
    %cst_24 = arith.constant 0.000000e+00 : bf16
    %34 = vector.broadcast %cst_24 : bf16 to vector<1x16x128xbf16>
    %c0_25 = arith.constant 0 : index
    %c0_26 = arith.constant 0 : index
    %c128 = arith.constant 128 : index
    %35 = vector.load %arg8[%c0_25, %c0_26, %c128] : memref<16x16x1152xbf16, #tpu.memory_space<vmem>>, vector<1x16x128xbf16>
    tpu.vector_store %arg8[%c0_25, %c0_26, %c128], %34 {strides = array<i32>} : memref<16x16x1152xbf16, #tpu.memory_space<vmem>>, vector<1x16x128xbf16>,
    %36 = vector.extract_strided_slice %27 {offsets = [0, 0, 0], sizes = [15, 16, 128], strides = [1, 1, 1]} : vector<16x16x128xbf16> to vector<15x16x128xbf16>
    %c1_27 = arith.constant 1 : index
    %c0_28 = arith.constant 0 : index
    %c128_29 = arith.constant 128 : index
    %37 = vector.load %arg8[%c1_27, %c0_28, %c128_29] : memref<16x16x1152xbf16, #tpu.memory_space<vmem>>, vector<15x16x128xbf16>
    tpu.vector_store %arg8[%c1_27, %c0_28, %c128_29], %36 {strides = array<i32>} : memref<16x16x1152xbf16, #tpu.memory_space<vmem>>, vector<15x16x128xbf16>,
    %cst_30 = arith.constant 0.000000e+00 : bf16
    %38 = vector.broadcast %cst_30 : bf16 to vector<1x16x128xbf16>
    %c0_31 = arith.constant 0 : index
    %c0_32 = arith.constant 0 : index
    %c256 = arith.constant 256 : index
    %39 = vector.load %arg8[%c0_31, %c0_32, %c256] : memref<16x16x1152xbf16, #tpu.memory_space<vmem>>, vector<1x16x128xbf16>
    tpu.vector_store %arg8[%c0_31, %c0_32, %c256], %38 {strides = array<i32>} : memref<16x16x1152xbf16, #tpu.memory_space<vmem>>, vector<1x16x128xbf16>,
    %cst_33 = arith.constant 0.000000e+00 : bf16
    %40 = vector.broadcast %cst_33 : bf16 to vector<16x1x128xbf16>
    %c0_34 = arith.constant 0 : index
    %c15 = arith.constant 15 : index
    %c256_35 = arith.constant 256 : index
    %41 = vector.load %arg8[%c0_34, %c15, %c256_35] : memref<16x16x1152xbf16, #tpu.memory_space<vmem>>, vector<16x1x128xbf16>
    tpu.vector_store %arg8[%c0_34, %c15, %c256_35], %40 {strides = array<i32>} : memref<16x16x1152xbf16, #tpu.memory_space<vmem>>, vector<16x1x128xbf16>,
    %42 = vector.extract_strided_slice %27 {offsets = [0, 1, 0], sizes = [15, 15, 128], strides = [1, 1, 1]} : vector<16x16x128xbf16> to vector<15x15x128xbf16>
    %c1_36 = arith.constant 1 : index
    %c0_37 = arith.constant 0 : index
    %c256_38 = arith.constant 256 : index
    %43 = vector.load %arg8[%c1_36, %c0_37, %c256_38] : memref<16x16x1152xbf16, #tpu.memory_space<vmem>>, vector<15x15x128xbf16>
    tpu.vector_store %arg8[%c1_36, %c0_37, %c256_38], %42 {strides = array<i32>} : memref<16x16x1152xbf16, #tpu.memory_space<vmem>>, vector<15x15x128xbf16>,
    %cst_39 = arith.constant 0.000000e+00 : bf16
    %44 = vector.broadcast %cst_39 : bf16 to vector<16x1x128xbf16>
    %c0_40 = arith.constant 0 : index
    %c0_41 = arith.constant 0 : index
    %c384 = arith.constant 384 : index
    %45 = vector.load %arg8[%c0_40, %c0_41, %c384] : memref<16x16x1152xbf16, #tpu.memory_space<vmem>>, vector<16x1x128xbf16>
    tpu.vector_store %arg8[%c0_40, %c0_41, %c384], %44 {strides = array<i32>} : memref<16x16x1152xbf16, #tpu.memory_space<vmem>>, vector<16x1x128xbf16>,
    %46 = vector.extract_strided_slice %27 {offsets = [0, 0, 0], sizes = [16, 15, 128], strides = [1, 1, 1]} : vector<16x16x128xbf16> to vector<16x15x128xbf16>
    %c0_42 = arith.constant 0 : index
    %c1_43 = arith.constant 1 : index
    %c384_44 = arith.constant 384 : index
    %47 = vector.load %arg8[%c0_42, %c1_43, %c384_44] : memref<16x16x1152xbf16, #tpu.memory_space<vmem>>, vector<16x15x128xbf16>
    tpu.vector_store %arg8[%c0_42, %c1_43, %c384_44], %46 {strides = array<i32>} : memref<16x16x1152xbf16, #tpu.memory_space<vmem>>, vector<16x15x128xbf16>,
    %c0_45 = arith.constant 0 : index
    %c0_46 = arith.constant 0 : index
    %c512 = arith.constant 512 : index
    %48 = vector.load %arg8[%c0_45, %c0_46, %c512] : memref<16x16x1152xbf16, #tpu.memory_space<vmem>>, vector<16x16x128xbf16>
    tpu.vector_store %arg8[%c0_45, %c0_46, %c512], %27 {strides = array<i32>} : memref<16x16x1152xbf16, #tpu.memory_space<vmem>>, vector<16x16x128xbf16>,
    %cst_47 = arith.constant 0.000000e+00 : bf16
    %49 = vector.broadcast %cst_47 : bf16 to vector<16x1x128xbf16>
    %c0_48 = arith.constant 0 : index
    %c15_49 = arith.constant 15 : index
    %c640 = arith.constant 640 : index
    %50 = vector.load %arg8[%c0_48, %c15_49, %c640] : memref<16x16x1152xbf16, #tpu.memory_space<vmem>>, vector<16x1x128xbf16>
    tpu.vector_store %arg8[%c0_48, %c15_49, %c640], %49 {strides = array<i32>} : memref<16x16x1152xbf16, #tpu.memory_space<vmem>>, vector<16x1x128xbf16>,
    %51 = vector.extract_strided_slice %27 {offsets = [0, 1, 0], sizes = [16, 15, 128], strides = [1, 1, 1]} : vector<16x16x128xbf16> to vector<16x15x128xbf16>
    %c0_50 = arith.constant 0 : index
    %c0_51 = arith.constant 0 : index
    %c640_52 = arith.constant 640 : index
    %52 = vector.load %arg8[%c0_50, %c0_51, %c640_52] : memref<16x16x1152xbf16, #tpu.memory_space<vmem>>, vector<16x15x128xbf16>
    tpu.vector_store %arg8[%c0_50, %c0_51, %c640_52], %51 {strides = array<i32>} : memref<16x16x1152xbf16, #tpu.memory_space<vmem>>, vector<16x15x128xbf16>,
    %cst_53 = arith.constant 0.000000e+00 : bf16
    %53 = vector.broadcast %cst_53 : bf16 to vector<1x16x128xbf16>
    %c15_54 = arith.constant 15 : index
    %c0_55 = arith.constant 0 : index
    %c768 = arith.constant 768 : index
    %54 = vector.load %arg8[%c15_54, %c0_55, %c768] : memref<16x16x1152xbf16, #tpu.memory_space<vmem>>, vector<1x16x128xbf16>
    tpu.vector_store %arg8[%c15_54, %c0_55, %c768], %53 {strides = array<i32>} : memref<16x16x1152xbf16, #tpu.memory_space<vmem>>, vector<1x16x128xbf16>,
    %cst_56 = arith.constant 0.000000e+00 : bf16
    %55 = vector.broadcast %cst_56 : bf16 to vector<16x1x128xbf16>
    %c0_57 = arith.constant 0 : index
    %c0_58 = arith.constant 0 : index
    %c768_59 = arith.constant 768 : index
    %56 = vector.load %arg8[%c0_57, %c0_58, %c768_59] : memref<16x16x1152xbf16, #tpu.memory_space<vmem>>, vector<16x1x128xbf16>
    tpu.vector_store %arg8[%c0_57, %c0_58, %c768_59], %55 {strides = array<i32>} : memref<16x16x1152xbf16, #tpu.memory_space<vmem>>, vector<16x1x128xbf16>,
    %57 = vector.extract_strided_slice %27 {offsets = [1, 0, 0], sizes = [15, 15, 128], strides = [1, 1, 1]} : vector<16x16x128xbf16> to vector<15x15x128xbf16>
    %c0_60 = arith.constant 0 : index
    %c1_61 = arith.constant 1 : index
    %c768_62 = arith.constant 768 : index
    %58 = vector.load %arg8[%c0_60, %c1_61, %c768_62] : memref<16x16x1152xbf16, #tpu.memory_space<vmem>>, vector<15x15x128xbf16>
    tpu.vector_store %arg8[%c0_60, %c1_61, %c768_62], %57 {strides = array<i32>} : memref<16x16x1152xbf16, #tpu.memory_space<vmem>>, vector<15x15x128xbf16>,
    %cst_63 = arith.constant 0.000000e+00 : bf16
    %59 = vector.broadcast %cst_63 : bf16 to vector<1x16x128xbf16>
    %c15_64 = arith.constant 15 : index
    %c0_65 = arith.constant 0 : index
    %c896 = arith.constant 896 : index
    %60 = vector.load %arg8[%c15_64, %c0_65, %c896] : memref<16x16x1152xbf16, #tpu.memory_space<vmem>>, vector<1x16x128xbf16>
    tpu.vector_store %arg8[%c15_64, %c0_65, %c896], %59 {strides = array<i32>} : memref<16x16x1152xbf16, #tpu.memory_space<vmem>>, vector<1x16x128xbf16>,
    %61 = vector.extract_strided_slice %27 {offsets = [1, 0, 0], sizes = [15, 16, 128], strides = [1, 1, 1]} : vector<16x16x128xbf16> to vector<15x16x128xbf16>
    %c0_66 = arith.constant 0 : index
    %c0_67 = arith.constant 0 : index
    %c896_68 = arith.constant 896 : index
    %62 = vector.load %arg8[%c0_66, %c0_67, %c896_68] : memref<16x16x1152xbf16, #tpu.memory_space<vmem>>, vector<15x16x128xbf16>
    tpu.vector_store %arg8[%c0_66, %c0_67, %c896_68], %61 {strides = array<i32>} : memref<16x16x1152xbf16, #tpu.memory_space<vmem>>, vector<15x16x128xbf16>,
    %cst_69 = arith.constant 0.000000e+00 : bf16
    %63 = vector.broadcast %cst_69 : bf16 to vector<1x16x128xbf16>
    %c15_70 = arith.constant 15 : index
    %c0_71 = arith.constant 0 : index
    %c1024 = arith.constant 1024 : index
    %64 = vector.load %arg8[%c15_70, %c0_71, %c1024] : memref<16x16x1152xbf16, #tpu.memory_space<vmem>>, vector<1x16x128xbf16>
    tpu.vector_store %arg8[%c15_70, %c0_71, %c1024], %63 {strides = array<i32>} : memref<16x16x1152xbf16, #tpu.memory_space<vmem>>, vector<1x16x128xbf16>,
    %cst_72 = arith.constant 0.000000e+00 : bf16
    %65 = vector.broadcast %cst_72 : bf16 to vector<16x1x128xbf16>
    %c0_73 = arith.constant 0 : index
    %c15_74 = arith.constant 15 : index
    %c1024_75 = arith.constant 1024 : index
    %66 = vector.load %arg8[%c0_73, %c15_74, %c1024_75] : memref<16x16x1152xbf16, #tpu.memory_space<vmem>>, vector<16x1x128xbf16>
    tpu.vector_store %arg8[%c0_73, %c15_74, %c1024_75], %65 {strides = array<i32>} : memref<16x16x1152xbf16, #tpu.memory_space<vmem>>, vector<16x1x128xbf16>,
    %67 = vector.extract_strided_slice %27 {offsets = [1, 1, 0], sizes = [15, 15, 128], strides = [1, 1, 1]} : vector<16x16x128xbf16> to vector<15x15x128xbf16>
    %c0_76 = arith.constant 0 : index
    %c0_77 = arith.constant 0 : index
    %c1024_78 = arith.constant 1024 : index
    %68 = vector.load %arg8[%c0_76, %c0_77, %c1024_78] : memref<16x16x1152xbf16, #tpu.memory_space<vmem>>, vector<15x15x128xbf16>
    tpu.vector_store %arg8[%c0_76, %c0_77, %c1024_78], %67 {strides = array<i32>} : memref<16x16x1152xbf16, #tpu.memory_space<vmem>>, vector<15x15x128xbf16>,
    %c0_79 = arith.constant 0 : index
    %c0_80 = arith.constant 0 : index
    %c0_81 = arith.constant 0 : index
    %69 = vector.load %arg8[%c0_79, %c0_80, %c0_81] : memref<16x16x1152xbf16, #tpu.memory_space<vmem>>, vector<16x16x1152xbf16>
    %70 = vector.shape_cast %69 : vector<16x16x1152xbf16> to vector<256x1152xbf16>
    %c0_82 = arith.constant 0 : index
    %c0_83 = arith.constant 0 : index
    %71 = vector.load %arg5[%c0_82, %c0_83] : memref<1152x128xbf16, #tpu.memory_space<vmem>>, vector<1152x128xbf16>
    %cst_84 = arith.constant dense<0.000000e+00> : vector<256x128xf32>
    %72 = tpu.matmul %70, %71, %cst_84 {dimension_numbers = #tpu.dot_dimension_numbers<[1], [0], [0], [1], [0, 0, 1, 1], [], []>} : vector<256x1152xbf16>, vector<1152x128xbf16>, vector<256x128xf32> -> vector<256x128xf32>
    %73 = vector.shape_cast %72 : vector<256x128xf32> to vector<1x16x16x128xf32>
    %74 = arith.truncf %73 : vector<1x16x16x128xf32> to vector<1x16x16x128xbf16>
    %c0_85 = arith.constant 0 : index
    %c0_86 = arith.constant 0 : index
    %c0_87 = arith.constant 0 : index
    %c0_88 = arith.constant 0 : index
    %75 = vector.load %arg6[%c0_85, %c0_86, %c0_87, %c0_88] : memref<1x16x16x128xbf16, #tpu.memory_space<vmem>>, vector<1x16x16x128xbf16>
    tpu.vector_store %arg6[%c0_85, %c0_86, %c0_87, %c0_88], %74 {strides = array<i32>} : memref<1x16x16x128xbf16, #tpu.memory_space<vmem>>, vector<1x16x16x128xbf16>,
    %cst_89 = arith.constant dense<0.000000e+00> : vector<128xf32>
    %76 = vector.multi_reduction <add>, %72, %cst_89 [0] : vector<256x128xf32> to vector<128xf32>
    %77 = vector.shape_cast %76 : vector<128xf32> to vector<1x128xf32>
    %78 = arith.mulf %72, %72 : vector<256x128xf32>
    %cst_90 = arith.constant dense<0.000000e+00> : vector<128xf32>
    %79 = vector.multi_reduction <add>, %78, %cst_90 [0] : vector<256x128xf32> to vector<128xf32>
    %80 = vector.shape_cast %79 : vector<128xf32> to vector<1x128xf32>
    %cst_91 = arith.constant 0.000000e+00 : f32
    %81 = vector.broadcast %cst_91 : f32 to vector<6x128xf32>
    %82 = tpu.concatenate %77, %80, %81 in 0 : vector<1x128xf32>, vector<1x128xf32>, vector<6x128xf32> -> vector<8x128xf32>
    %c0_92 = arith.constant 0 : index
    %c0_93 = arith.constant 0 : index
    %c0_94 = arith.constant 0 : index
    %83 = vector.load %arg7[%c0_92, %c0_93, %c0_94] : memref<1x8x128xf32, #tpu.memory_space<vmem>>, vector<1x8x128xf32>
    %84 = vector.shape_cast %83 : vector<1x8x128xf32> to vector<8x128xf32>
    %85 = vector.shape_cast %82 : vector<8x128xf32> to vector<1x8x128xf32>
    tpu.vector_store %arg7[%c0_92, %c0_93, %c0_94], %85 {strides = array<i32>} : memref<1x8x128xf32, #tpu.memory_space<vmem>>, vector<1x8x128xf32>,
    return
  }
  func.func @transform_0(%arg0: i32) -> (i32, i32, i32, i32) {
    %c0_i32 = arith.constant 0 : i32
    %c0_i32_0 = arith.constant 0 : i32
    %c0_i32_1 = arith.constant 0 : i32
    %c0_i32_2 = arith.constant 0 : i32
    return %arg0, %c0_i32, %c0_i32_0, %c0_i32_1 : i32, i32, i32, i32
  }
  func.func @transform_1(%arg0: i32) -> (i32, i32) {
    %c0_i32 = arith.constant 0 : i32
    %c0_i32_0 = arith.constant 0 : i32
    %c0_i32_1 = arith.constant 0 : i32
    return %c0_i32, %c0_i32_0 : i32, i32
  }
  func.func @transform_2(%arg0: i32) -> (i32, i32) {
    %c0_i32 = arith.constant 0 : i32
    %c0_i32_0 = arith.constant 0 : i32
    %c0_i32_1 = arith.constant 0 : i32
    return %c0_i32, %c0_i32_0 : i32, i32
  }
  func.func @transform_3(%arg0: i32) -> (i32, i32) {
    %c0_i32 = arith.constant 0 : i32
    %c0_i32_0 = arith.constant 0 : i32
    %c0_i32_1 = arith.constant 0 : i32
    return %c0_i32, %c0_i32_0 : i32, i32
  }
  func.func @transform_4(%arg0: i32) -> (i32, i32) {
    %c0_i32 = arith.constant 0 : i32
    %c0_i32_0 = arith.constant 0 : i32
    %c0_i32_1 = arith.constant 0 : i32
    return %c0_i32, %c0_i32_0 : i32, i32
  }
  func.func @transform_5(%arg0: i32) -> (i32, i32, i32, i32) {
    %c0_i32 = arith.constant 0 : i32
    %c0_i32_0 = arith.constant 0 : i32
    %c0_i32_1 = arith.constant 0 : i32
    %c0_i32_2 = arith.constant 0 : i32
    return %arg0, %c0_i32, %c0_i32_0, %c0_i32_1 : i32, i32, i32, i32
  }
  func.func @transform_6(%arg0: i32) -> (i32, i32, i32) {
    %c0_i32 = arith.constant 0 : i32
    %c0_i32_0 = arith.constant 0 : i32
    %c0_i32_1 = arith.constant 0 : i32
    return %arg0, %c0_i32, %c0_i32_0 : i32, i32, i32
  }
}

module attributes {stable_mosaic.version = 11 : i64} {
  func.func @_bn_relu_conv1x1_stats_kernel(%arg0: i32, %arg1: memref<128x128xbf16, #tpu.memory_space<vmem>>, %arg2: memref<2x128xf32, #tpu.memory_space<vmem>>, %arg3: memref<1x128xf32, #tpu.memory_space<vmem>>, %arg4: memref<1x128xf32, #tpu.memory_space<vmem>>, %arg5: memref<128x128xbf16, #tpu.memory_space<vmem>>, %arg6: memref<128x128xbf16, #tpu.memory_space<vmem>>, %arg7: memref<1x8x128xf32, #tpu.memory_space<vmem>>) attributes {dimension_semantics = [#tpu.dimension_semantics<parallel>], iteration_bounds = array<i64: 4>, scalar_prefetch = 0 : i64, scratch_operands = 0 : i64, tpu.core_type = #tpu.core_type<tc>, window_params = [{transform_indices = @transform_0, window_bounds = array<i64: 128, 128>}, {pipeline_mode = #tpu.pipeline_mode<synchronous>, transform_indices = @transform_1, window_bounds = array<i64: 2, 128>}, {pipeline_mode = #tpu.pipeline_mode<synchronous>, transform_indices = @transform_2, window_bounds = array<i64: 1, 128>}, {pipeline_mode = #tpu.pipeline_mode<synchronous>, transform_indices = @transform_3, window_bounds = array<i64: 1, 128>}, {pipeline_mode = #tpu.pipeline_mode<synchronous>, transform_indices = @transform_4, window_bounds = array<i64: 128, 128>}, {transform_indices = @transform_5, window_bounds = array<i64: 128, 128>}, {transform_indices = @transform_6, window_bounds = array<i64: 1, 8, 128>}]} {
    %c0 = arith.constant 0 : index
    %c0_0 = arith.constant 0 : index
    %0 = vector.load %arg2[%c0, %c0_0] : memref<2x128xf32, #tpu.memory_space<vmem>>, vector<1x128xf32>
    %cst = arith.constant 0.001953125 : f32
    %1 = vector.broadcast %cst : f32 to vector<1x128xf32>
    %2 = arith.mulf %0, %1 : vector<1x128xf32>
    %c1 = arith.constant 1 : index
    %c0_1 = arith.constant 0 : index
    %3 = vector.load %arg2[%c1, %c0_1] : memref<2x128xf32, #tpu.memory_space<vmem>>, vector<1x128xf32>
    %cst_2 = arith.constant 0.001953125 : f32
    %4 = vector.broadcast %cst_2 : f32 to vector<1x128xf32>
    %5 = arith.mulf %3, %4 : vector<1x128xf32>
    %6 = arith.mulf %2, %2 : vector<1x128xf32>
    %7 = arith.subf %5, %6 : vector<1x128xf32>
    %cst_3 = arith.constant 9.99999974E-6 : f32
    %8 = vector.broadcast %cst_3 : f32 to vector<1x128xf32>
    %9 = arith.addf %7, %8 : vector<1x128xf32>
    %10 = math.rsqrt %9 : vector<1x128xf32>
    %c0_4 = arith.constant 0 : index
    %c0_5 = arith.constant 0 : index
    %11 = vector.load %arg3[%c0_4, %c0_5] : memref<1x128xf32, #tpu.memory_space<vmem>>, vector<1x128xf32>
    %12 = arith.mulf %10, %11 : vector<1x128xf32>
    %c0_6 = arith.constant 0 : index
    %c0_7 = arith.constant 0 : index
    %13 = vector.load %arg4[%c0_6, %c0_7] : memref<1x128xf32, #tpu.memory_space<vmem>>, vector<1x128xf32>
    %14 = arith.mulf %2, %12 : vector<1x128xf32>
    %15 = arith.subf %13, %14 : vector<1x128xf32>
    %c0_8 = arith.constant 0 : index
    %c0_9 = arith.constant 0 : index
    %16 = vector.load %arg1[%c0_8, %c0_9] : memref<128x128xbf16, #tpu.memory_space<vmem>>, vector<128x128xbf16>
    %17 = arith.extf %16 : vector<128x128xbf16> to vector<128x128xf32>
    %18 = vector.broadcast %12 : vector<1x128xf32> to vector<128x128xf32>
    %19 = arith.mulf %17, %18 : vector<128x128xf32>
    %20 = vector.broadcast %15 : vector<1x128xf32> to vector<128x128xf32>
    %21 = arith.addf %19, %20 : vector<128x128xf32>
    %cst_10 = arith.constant 0.000000e+00 : f32
    %22 = vector.broadcast %cst_10 : f32 to vector<128x128xf32>
    %23 = arith.maximumf %21, %22 : vector<128x128xf32>
    %24 = arith.truncf %23 : vector<128x128xf32> to vector<128x128xbf16>
    %c0_11 = arith.constant 0 : index
    %c0_12 = arith.constant 0 : index
    %25 = vector.load %arg5[%c0_11, %c0_12] : memref<128x128xbf16, #tpu.memory_space<vmem>>, vector<128x128xbf16>
    %cst_13 = arith.constant dense<0.000000e+00> : vector<128x128xf32>
    %26 = tpu.matmul %24, %25, %cst_13 {dimension_numbers = #tpu.dot_dimension_numbers<[1], [0], [0], [1], [0, 0, 1, 1], [], []>} : vector<128x128xbf16>, vector<128x128xbf16>, vector<128x128xf32> -> vector<128x128xf32>
    %27 = arith.truncf %26 : vector<128x128xf32> to vector<128x128xbf16>
    %c0_14 = arith.constant 0 : index
    %c0_15 = arith.constant 0 : index
    %28 = vector.load %arg6[%c0_14, %c0_15] : memref<128x128xbf16, #tpu.memory_space<vmem>>, vector<128x128xbf16>
    tpu.vector_store %arg6[%c0_14, %c0_15], %27 {strides = array<i32>} : memref<128x128xbf16, #tpu.memory_space<vmem>>, vector<128x128xbf16>,
    %29 = tpu.iota {dimensions = array<i32: 0>} : vector<128x1xi32>
    %c128_i32 = arith.constant 128 : i32
    %30 = arith.muli %arg0, %c128_i32 : i32
    %31 = vector.broadcast %30 : i32 to vector<128x1xi32>
    %32 = arith.addi %29, %31 : vector<128x1xi32>
    %c512_i32 = arith.constant 512 : i32
    %33 = vector.broadcast %c512_i32 : i32 to vector<128x1xi32>
    %34 = arith.cmpi slt, %32, %33 : vector<128x1xi32>
    %cst_16 = arith.constant 0.000000e+00 : f32
    %35 = vector.shape_cast %34 : vector<128x1xi1> to vector<128x1xi1>
    %36 = vector.broadcast %35 : vector<128x1xi1> to vector<128x128xi1>
    %37 = vector.broadcast %cst_16 : f32 to vector<128x128xf32>
    %38 = arith.select %36, %26, %37 : vector<128x128xi1>, vector<128x128xf32>
    %cst_17 = arith.constant dense<0.000000e+00> : vector<128xf32>
    %39 = vector.multi_reduction <add>, %38, %cst_17 [0] : vector<128x128xf32> to vector<128xf32>
    %40 = vector.shape_cast %39 : vector<128xf32> to vector<1x128xf32>
    %41 = arith.mulf %38, %38 : vector<128x128xf32>
    %cst_18 = arith.constant dense<0.000000e+00> : vector<128xf32>
    %42 = vector.multi_reduction <add>, %41, %cst_18 [0] : vector<128x128xf32> to vector<128xf32>
    %43 = vector.shape_cast %42 : vector<128xf32> to vector<1x128xf32>
    %cst_19 = arith.constant 0.000000e+00 : f32
    %44 = vector.broadcast %cst_19 : f32 to vector<6x128xf32>
    %45 = tpu.concatenate %40, %43, %44 in 0 : vector<1x128xf32>, vector<1x128xf32>, vector<6x128xf32> -> vector<8x128xf32>
    %c0_20 = arith.constant 0 : index
    %c0_21 = arith.constant 0 : index
    %c0_22 = arith.constant 0 : index
    %46 = vector.load %arg7[%c0_20, %c0_21, %c0_22] : memref<1x8x128xf32, #tpu.memory_space<vmem>>, vector<1x8x128xf32>
    %47 = vector.shape_cast %46 : vector<1x8x128xf32> to vector<8x128xf32>
    %48 = vector.shape_cast %45 : vector<8x128xf32> to vector<1x8x128xf32>
    tpu.vector_store %arg7[%c0_20, %c0_21, %c0_22], %48 {strides = array<i32>} : memref<1x8x128xf32, #tpu.memory_space<vmem>>, vector<1x8x128xf32>,
    return
  }
  func.func @transform_0(%arg0: i32) -> (i32, i32) {
    %c0_i32 = arith.constant 0 : i32
    %c0_i32_0 = arith.constant 0 : i32
    return %arg0, %c0_i32 : i32, i32
  }
  func.func @transform_1(%arg0: i32) -> (i32, i32) {
    %c0_i32 = arith.constant 0 : i32
    %c0_i32_0 = arith.constant 0 : i32
    %c0_i32_1 = arith.constant 0 : i32
    return %c0_i32, %c0_i32_0 : i32, i32
  }
  func.func @transform_2(%arg0: i32) -> (i32, i32) {
    %c0_i32 = arith.constant 0 : i32
    %c0_i32_0 = arith.constant 0 : i32
    %c0_i32_1 = arith.constant 0 : i32
    return %c0_i32, %c0_i32_0 : i32, i32
  }
  func.func @transform_3(%arg0: i32) -> (i32, i32) {
    %c0_i32 = arith.constant 0 : i32
    %c0_i32_0 = arith.constant 0 : i32
    %c0_i32_1 = arith.constant 0 : i32
    return %c0_i32, %c0_i32_0 : i32, i32
  }
  func.func @transform_4(%arg0: i32) -> (i32, i32) {
    %c0_i32 = arith.constant 0 : i32
    %c0_i32_0 = arith.constant 0 : i32
    %c0_i32_1 = arith.constant 0 : i32
    return %c0_i32, %c0_i32_0 : i32, i32
  }
  func.func @transform_5(%arg0: i32) -> (i32, i32) {
    %c0_i32 = arith.constant 0 : i32
    %c0_i32_0 = arith.constant 0 : i32
    return %arg0, %c0_i32 : i32, i32
  }
  func.func @transform_6(%arg0: i32) -> (i32, i32, i32) {
    %c0_i32 = arith.constant 0 : i32
    %c0_i32_0 = arith.constant 0 : i32
    %c0_i32_1 = arith.constant 0 : i32
    return %arg0, %c0_i32, %c0_i32_0 : i32, i32, i32
  }
}

module attributes {stable_mosaic.version = 11 : i64} {
  func.func @_bn_add_relu_kernel(%arg0: i32, %arg1: memref<128x128xbf16, #tpu.memory_space<vmem>>, %arg2: memref<2x128xf32, #tpu.memory_space<vmem>>, %arg3: memref<1x128xf32, #tpu.memory_space<vmem>>, %arg4: memref<1x128xf32, #tpu.memory_space<vmem>>, %arg5: memref<128x128xbf16, #tpu.memory_space<vmem>>, %arg6: memref<128x128xf32, #tpu.memory_space<vmem>>) attributes {dimension_semantics = [#tpu.dimension_semantics<parallel>], iteration_bounds = array<i64: 4>, scalar_prefetch = 0 : i64, scratch_operands = 0 : i64, tpu.core_type = #tpu.core_type<tc>, window_params = [{transform_indices = @transform_0, window_bounds = array<i64: 128, 128>}, {pipeline_mode = #tpu.pipeline_mode<synchronous>, transform_indices = @transform_1, window_bounds = array<i64: 2, 128>}, {pipeline_mode = #tpu.pipeline_mode<synchronous>, transform_indices = @transform_2, window_bounds = array<i64: 1, 128>}, {pipeline_mode = #tpu.pipeline_mode<synchronous>, transform_indices = @transform_3, window_bounds = array<i64: 1, 128>}, {transform_indices = @transform_4, window_bounds = array<i64: 128, 128>}, {transform_indices = @transform_5, window_bounds = array<i64: 128, 128>}]} {
    %c0 = arith.constant 0 : index
    %c0_0 = arith.constant 0 : index
    %0 = vector.load %arg2[%c0, %c0_0] : memref<2x128xf32, #tpu.memory_space<vmem>>, vector<1x128xf32>
    %cst = arith.constant 0.001953125 : f32
    %1 = vector.broadcast %cst : f32 to vector<1x128xf32>
    %2 = arith.mulf %0, %1 : vector<1x128xf32>
    %c1 = arith.constant 1 : index
    %c0_1 = arith.constant 0 : index
    %3 = vector.load %arg2[%c1, %c0_1] : memref<2x128xf32, #tpu.memory_space<vmem>>, vector<1x128xf32>
    %cst_2 = arith.constant 0.001953125 : f32
    %4 = vector.broadcast %cst_2 : f32 to vector<1x128xf32>
    %5 = arith.mulf %3, %4 : vector<1x128xf32>
    %6 = arith.mulf %2, %2 : vector<1x128xf32>
    %7 = arith.subf %5, %6 : vector<1x128xf32>
    %cst_3 = arith.constant 9.99999974E-6 : f32
    %8 = vector.broadcast %cst_3 : f32 to vector<1x128xf32>
    %9 = arith.addf %7, %8 : vector<1x128xf32>
    %10 = math.rsqrt %9 : vector<1x128xf32>
    %c0_4 = arith.constant 0 : index
    %c0_5 = arith.constant 0 : index
    %11 = vector.load %arg3[%c0_4, %c0_5] : memref<1x128xf32, #tpu.memory_space<vmem>>, vector<1x128xf32>
    %12 = arith.mulf %10, %11 : vector<1x128xf32>
    %c0_6 = arith.constant 0 : index
    %c0_7 = arith.constant 0 : index
    %13 = vector.load %arg4[%c0_6, %c0_7] : memref<1x128xf32, #tpu.memory_space<vmem>>, vector<1x128xf32>
    %14 = arith.mulf %2, %12 : vector<1x128xf32>
    %15 = arith.subf %13, %14 : vector<1x128xf32>
    %c0_8 = arith.constant 0 : index
    %c0_9 = arith.constant 0 : index
    %16 = vector.load %arg1[%c0_8, %c0_9] : memref<128x128xbf16, #tpu.memory_space<vmem>>, vector<128x128xbf16>
    %17 = arith.extf %16 : vector<128x128xbf16> to vector<128x128xf32>
    %18 = vector.broadcast %12 : vector<1x128xf32> to vector<128x128xf32>
    %19 = arith.mulf %17, %18 : vector<128x128xf32>
    %20 = vector.broadcast %15 : vector<1x128xf32> to vector<128x128xf32>
    %21 = arith.addf %19, %20 : vector<128x128xf32>
    %c0_10 = arith.constant 0 : index
    %c0_11 = arith.constant 0 : index
    %22 = vector.load %arg5[%c0_10, %c0_11] : memref<128x128xbf16, #tpu.memory_space<vmem>>, vector<128x128xbf16>
    %23 = arith.extf %22 : vector<128x128xbf16> to vector<128x128xf32>
    %24 = arith.addf %21, %23 : vector<128x128xf32>
    %cst_12 = arith.constant 0.000000e+00 : f32
    %25 = vector.broadcast %cst_12 : f32 to vector<128x128xf32>
    %26 = arith.maximumf %24, %25 : vector<128x128xf32>
    %c0_13 = arith.constant 0 : index
    %c0_14 = arith.constant 0 : index
    %27 = vector.load %arg6[%c0_13, %c0_14] : memref<128x128xf32, #tpu.memory_space<vmem>>, vector<128x128xf32>
    tpu.vector_store %arg6[%c0_13, %c0_14], %26 {strides = array<i32>} : memref<128x128xf32, #tpu.memory_space<vmem>>, vector<128x128xf32>,
    return
  }
  func.func @transform_0(%arg0: i32) -> (i32, i32) {
    %c0_i32 = arith.constant 0 : i32
    %c0_i32_0 = arith.constant 0 : i32
    return %arg0, %c0_i32 : i32, i32
  }
  func.func @transform_1(%arg0: i32) -> (i32, i32) {
    %c0_i32 = arith.constant 0 : i32
    %c0_i32_0 = arith.constant 0 : i32
    %c0_i32_1 = arith.constant 0 : i32
    return %c0_i32, %c0_i32_0 : i32, i32
  }
  func.func @transform_2(%arg0: i32) -> (i32, i32) {
    %c0_i32 = arith.constant 0 : i32
    %c0_i32_0 = arith.constant 0 : i32
    %c0_i32_1 = arith.constant 0 : i32
    return %c0_i32, %c0_i32_0 : i32, i32
  }
  func.func @transform_3(%arg0: i32) -> (i32, i32) {
    %c0_i32 = arith.constant 0 : i32
    %c0_i32_0 = arith.constant 0 : i32
    %c0_i32_1 = arith.constant 0 : i32
    return %c0_i32, %c0_i32_0 : i32, i32
  }
  func.func @transform_4(%arg0: i32) -> (i32, i32) {
    %c0_i32 = arith.constant 0 : i32
    %c0_i32_0 = arith.constant 0 : i32
    return %arg0, %c0_i32 : i32, i32
  }
  func.func @transform_5(%arg0: i32) -> (i32, i32) {
    %c0_i32 = arith.constant 0 : i32
    %c0_i32_0 = arith.constant 0 : i32
    return %arg0, %c0_i32 : i32, i32
  }
}

</mosaic_0001>

<bundles_post_ra>
// kernel: bottleneck_forward.4
= control target key start
LH: loop header
LB: loop body
LE: loop exit
PB: predicated region body
PF: predicated region fallthrough
CT: control target
= control target key end

     0   :  { %s964_s12 = smov 0   ;;  %s1109_s0 = inlined_call_operand.vmem [shape: bf16[512,128], index: 0, kind: input, shape index: {}]   ;;  %s1110_s1 = inlined_call_operand.vmem [shape: bf16[128,128], index: 1, kind: input, shape index: {}]   ;;  %s1111_s2 = inlined_call_operand.vmem [shape: bf16[512,128], index: 2, kind: output, shape index: {0}]   ;;  %s1112_s3 = inlined_call_operand.vmem [shape: f32[4,8,128], index: 3, kind: output, shape index: {1}]  }
   0x1 LB: > { %s970_s13 = sadd.s32 4294967295, %s942_s12   ;;  %p744_p0 = scmp.ge.s32.totalorder %s942_s12, 1  ;;  %s942_s12 = sphi %s964_s12, %s14_s12  }
   0x2   : > { %p141_p1 = scmp.lt.s32.totalorder %s942_s12, 5 }
   0x4   : > { %p142_p2 = pnand %p744_p0, %p141_p1 }
   0x5   : > { %v920_v0 = vld [vmem:[%s1110_s1] sm:$0xff] (!%p142_p2)   ;;  %s745_s16 = sshll.u32 (!%p142_p2), %s970_s13, 4  ;;  %v921_v1 = vld [vmem:[%s1110_s1 + $0x8] sm:$0xff] (!%p142_p2)   ;;  %v922_v2 = vld [vmem:[%s1110_s1 + $0x10] sm:$0xff] (!%p142_p2)   ;;  %v491_v16 = vlaneseq (!%p142_p2)  ;;  %s782_s8 = sshll.u32 (!%p142_p2), %s970_s13, 7 }
   0x6   : > { %145 = sbr.rel (%p142_p2) target bundleno = 301 (0x12d), region = 28  ;;  %p170_p3 = scmp.lt.s32.totalorder (!%p142_p2), %s745_s16, 63  ;;  %864 = vmatprep.subr.bf16.mxu0 (!%p142_p2), %v920_v0  ;;  %896 = vmatprep.subr.bf16.mxu1 (!%p142_p2), %v920_v0  ;;  %v923_v3 = vld [vmem:[%s1110_s1 + $0x18] sm:$0xff] (!%p142_p2)   ;;  %v924_v5 = vld [vmem:[%s1110_s1 + $0x20] sm:$0xff] (!%p142_p2)   ;;  %v925_v7 = vld [vmem:[%s1110_s1 + $0x28] sm:$0xff] (!%p142_p2)   ;;  %v1020_v18 = vstv (!%p142_p2), %s782_s8 }
   0x7   : > { %865 = vmatpush3.bf16.msra.mxu0 (!%p142_p2), %v920_v0  ;;  %904 = vmatpush3.bf16.msra.mxu1 (!%p142_p2), %v920_v0  ;;  %v926_v8 = vld [vmem:[%s1110_s1 + $0x30] sm:$0xff] (!%p142_p2)   ;;  %v927_v9 = vld [vmem:[%s1110_s1 + $0x38] sm:$0xff] (!%p142_p2)   ;;  %v1017_v17 = vshrl.u32 (!%p142_p2), %v491_v16, 7  ;;  %p181_p4 = scmp.lt.s32.totalorder (!%p142_p2), %s970_s13, 3 }
   0x8   : > { %866 = vmatprep.subr.bf16.mxu0 (!%p142_p2), %v921_v1  ;;  %897 = vmatprep.subr.bf16.mxu1 (!%p142_p2), %v921_v1 }
   0x9   : > { %v494_v19 = vadd.s32 (!%p142_p2), 16, %v1017_v17  ;;  %v495_v20 = vadd.s32 (!%p142_p2), 24, %v1017_v17  ;;  %v493_v21 = vadd.s32 (!%p142_p2), 8, %v1017_v17  ;;  %v510_v22 = vadd.s32 (!%p142_p2), %v1020_v18, %v1017_v17 }
   0xa   : > { %v498_v26 = vadd.s32 (!%p142_p2), 48, %v1017_v17  ;;  %v496_v27 = vadd.s32 (!%p142_p2), 32, %v1017_v17  ;;  %v499_v28 = vadd.s32 (!%p142_p2), 56, %v1017_v17  ;;  %v497_v29 = vadd.s32 (!%p142_p2), 40, %v1017_v17 }
   0xb   : > { %867 = vmatpush3.bf16.msra.mxu0 (!%p142_p2), %v921_v1  ;;  %905 = vmatpush3.bf16.msra.mxu1 (!%p142_p2), %v921_v1  ;;  %v512_v23 = vadd.s32 (!%p142_p2), %v1020_v18, %v494_v19  ;;  %v513_v24 = vadd.s32 (!%p142_p2), %v1020_v18, %v495_v20  ;;  %v511_v25 = vadd.s32 (!%p142_p2), %v1020_v18, %v493_v21  ;;  %vm526_vm0 = vcmp.lt.s32.totalorder (!%p142_p2), %v510_v22, 512 }
   0xc   : > { %868 = vmatprep.subr.bf16.mxu0 (!%p142_p2), %v922_v2  ;;  %898 = vmatprep.subr.bf16.mxu1 (!%p142_p2), %v922_v2  ;;  %v516_v33 = vadd.s32 (!%p142_p2), %v1020_v18, %v498_v26  ;;  %v514_v37 = vadd.s32 (!%p142_p2), %v1020_v18, %v496_v27  ;;  %v517_v38 = vadd.s32 (!%p142_p2), %v1020_v18, %v499_v28  ;;  %v500_v39 = vadd.s32 (!%p142_p2), 64, %v1017_v17 }
   0xd   : > { %s1114_s16 = smov (!%p170_p3, %s745_s16), 63  ;;  %vm528_vm1 = vcmp.lt.s32.totalorder %v512_v23, 512  ;;  %vm529_vm2 = vcmp.lt.s32.totalorder %v513_v24, 512  ;;  %vm527_vm3 = vcmp.lt.s32.totalorder %v511_v25, 512  ;;  %v515_v43 = vadd.s32 %v1020_v18, %v497_v29  ;;  %s1116_s13 = smov (!%p181_p4, %s970_s13), 3 }
   0xe   : > { %s746_s21 = sshll.u32 %s1114_s16, 2  ;;  %v502_v44 = vadd.s32 80, %v1017_v17  ;;  %v501_v46 = vadd.s32 72, %v1017_v17  ;;  %v518_v56 = vadd.s32 %v1020_v18, %v500_v39  ;;  %v503_v57 = vadd.s32 88, %v1017_v17  ;;  %s749_s14 = sshll.u32 %s1116_s13, 3 }
   0xf   : > { %s992_s24 = scalar_lea.vmem %s1109_s0, %s746_s21  ;;  %869 = vmatpush3.bf16.msra.mxu0 %v922_v2  ;;  %906 = vmatpush3.bf16.msra.mxu1 %v922_v2  ;;  %s1044_s11 = scalar_lea.vmem %s1111_s2, %s746_s21  ;;  %vm530_vm4 = vcmp.lt.s32.totalorder %v514_v37, 512  ;;  %vm532_vm5 = vcmp.lt.s32.totalorder %v516_v33, 512  ;;  %vm533_vm6 = vcmp.lt.s32.totalorder %v517_v38, 512  ;;  %vm531_vm7 = vcmp.lt.s32.totalorder %v515_v43, 512 }
  0x10   : > { %v928_v4 = vld [vmem:[%s992_s24] sm:$0xff]   ;;  %870 = vmatprep.subr.bf16.mxu0 %v923_v3  ;;  %899 = vmatprep.subr.bf16.mxu1 %v923_v3  ;;  %v929_v10 = vld [vmem:[%s992_s24 + $0x8] sm:$0xff]   ;;  %v930_v12 = vld [vmem:[%s992_s24 + $0x10] sm:$0xff]   ;;  %v519_v62 = vadd.s32 %v1020_v18, %v501_v46  ;;  %vm534_vm8 = vcmp.lt.s32.totalorder %v518_v56, 512  ;;  %v505_v25 = vadd.s32 104, %v1017_v17  ;;  %s184_s17 = scalar_lea.vmem %s1112_s3, %s749_s14 }
  0x11   : > { %880 = vmatprep.mubr.bf16.mxu0 %v928_v4  ;;  %v932_v6 = vld [vmem:[%s992_s24 + $0x20] sm:$0xff]   ;;  %v933_v11 = vld [vmem:[%s992_s24 + $0x28] sm:$0xff]   ;;  %v934_v13 = vld [vmem:[%s992_s24 + $0x30] sm:$0xff]   ;;  %v520_v4 = vadd.s32 %v1020_v18, %v502_v44 }
  0x12   : > { %888 = vmatprep.mubr.bf16.mxu1 %v932_v6  ;;  %v931_v14 = vld [vmem:[%s992_s24 + $0x18] sm:$0xff]   ;;  %vm535_vm9 = vcmp.lt.s32.totalorder %v519_v62, 512  ;;  %v523_v46 = vadd.s32 %v1020_v18, %v505_v25 }
  0x13   : > { %871 = vmatpush3.bf16.msra.mxu0 %v923_v3  ;;  %907 = vmatpush3.bf16.msra.mxu1 %v923_v3  ;;  %v935_v15 = vld [vmem:[%s992_s24 + $0x38] sm:$0xff]   ;;  %vm536_vm10 = vcmp.lt.s32.totalorder %v520_v4, 512 }
  0x14   : > { %872 = vmatprep.subr.bf16.mxu0 %v924_v5  ;;  %900 = vmatprep.subr.bf16.mxu1 %v924_v5  ;;  %vm539_vm13 = vcmp.lt.s32.totalorder %v523_v46, 512 }
  0x17   : > { %873 = vmatpush3.bf16.msra.mxu0 %v924_v5  ;;  %908 = vmatpush3.bf16.msra.mxu1 %v924_v5 }
  0x18   : > { %874 = vmatprep.subr.bf16.mxu0 %v925_v7  ;;  %901 = vmatprep.subr.bf16.mxu1 %v925_v7 }
  0x1b   : > { %875 = vmatpush3.bf16.msra.mxu0 %v925_v7  ;;  %909 = vmatpush3.bf16.msra.mxu1 %v925_v7 }
  0x1c   : > { %876 = vmatprep.subr.bf16.mxu0 %v926_v8  ;;  %902 = vmatprep.subr.bf16.mxu1 %v926_v8 }
  0x1f   : > { %877 = vmatpush3.bf16.msra.mxu0 %v926_v8  ;;  %910 = vmatpush3.bf16.msra.mxu1 %v926_v8  ;;  %v521_v8 = vadd.s32 %v1020_v18, %v503_v57 }
  0x20   : > { %878 = vmatprep.subr.bf16.mxu0 %v927_v9  ;;  %903 = vmatprep.subr.bf16.mxu1 %v927_v9 }
  0x21   : > { %vm537_vm11 = vcmp.lt.s32.totalorder %v521_v8, 512 }
  0x23   : > { %879 = vmatpush3.bf16.msra.mxu0 %v927_v9  ;;  %911 = vmatpush3.bf16.msra.mxu1 %v927_v9  ;;  %v504_v9 = vadd.s32 96, %v1017_v17 }
  0x26   : > { %881 = vmatmul.mubr.bf16.vlgmr.msra.gmra.mrb[0].mxu0 %v929_v10  ;;  %889 = vmatmul.mubr.bf16.vlgmr.msra.gmra.mrb[0].mxu1 %v933_v11 }
  0x27   : > { %884 = vmatprep.mubr.bf16.mxu0 %v930_v12  ;;  %892 = vmatprep.mubr.bf16.mxu1 %v934_v13 }
  0x2e   : > { %885 = vmatmul.mubr.bf16.gmra.mrb[4].mxu0 %v931_v14  ;;  %893 = vmatmul.mubr.bf16.gmra.mrb[4].mxu1 %v935_v15 }
  0xf9   : > { %v882_v30 = vpop.f32.mrb[0].mxu0  ;;  %v1034_v31 = vpop.f32.mrb[0].mxu1 }
  0xfa   : > { %v348_v32 = vpop.f32.mrb[1].mxu0  ;;  %v1037_v34 = vpop.f32.mrb[1].mxu1  ;;  %v576_v47 = vsel %vm528_vm1, %v882_v30, 0.0  ;;  %vm650_vm1 = vcmask 1041408  }
  0xfb   : > { %v574_v35 = vsel %vm526_vm0, %v348_v32, 0.0  ;;  %v883_v36 = vpop.f32.mrb[2].mxu0  ;;  %v1049_v40 = vpop.f32.mrb[2].mxu1  ;;  %v613_v58 = vmul.f32 %v576_v47, %v576_v47  ;;  %v582_v27 = vsel %vm534_vm8, %v1037_v34, 0.0  ;;  %vm648_vm0 = vcmask 1040384  }
  0xfc   : > { %v809_v41 = vpack.c.bf16 %v883_v36, %v882_v30  ;;  %v351_v42 = vpop.f32.mrb[3].mxu0  ;;  %v1053_v45 = vpop.f32.mrb[3].mxu1  ;;  %v829_v50 = vpack.c.bf16 %v1049_v40, %v1034_v31  ;;  %v611_v51 = vmul.f32 %v574_v35, %v574_v35  ;;  %v577_v55 = vsel %vm529_vm2, %v883_v36, 0.0 }
  0xfd   : > { %v804_v48 = vpack.c.bf16 %v351_v42, %v348_v32  ;;  %v575_v49 = vsel %vm527_vm3, %v351_v42, 0.0  ;;  %v824_v54 = vpack.c.bf16 %v1053_v45, %v1037_v34  ;;  %v614_v0 = vmul.f32 %v577_v55, %v577_v55 }
  0xfe   : > { %841 = vst [vmem:[%s1044_s11 + $0x8] sm:$0xff] %v809_v41   ;;  %v590_v52 = vadd.f32 %v575_v49, %v574_v35  ;;  %v612_v53 = vmul.f32 %v575_v49, %v575_v49  ;;  %845 = vst [vmem:[%s1044_s11 + $0x28] sm:$0xff] %v829_v50   ;;  %v522_v35 = vadd.s32 %v1020_v18, %v504_v9  ;;  %v506_v36 = vadd.s32 112, %v1017_v17 }
  0xff   : > { %805 = vst [vmem:[%s1044_s11] sm:$0xff] %v804_v48   ;;  %844 = vst [vmem:[%s1044_s11 + $0x20] sm:$0xff] %v824_v54   ;;  %v619_v41 = vmul.f32 %v582_v27, %v582_v27  ;;  %v583_v34 = vsel %vm535_vm9, %v1053_v45, 0.0  ;;  %v507_v42 = vadd.s32 120, %v1017_v17 }
 0x100   : > { %v591_v59 = vadd.f32 %v590_v52, %v576_v47  ;;  %v627_v60 = vadd.f32 %v612_v53, %v611_v51  ;;  %vm538_vm12 = vcmp.lt.s32.totalorder %v522_v35, 512  ;;  %v584_v47 = vsel %vm536_vm10, %v1034_v31, 0.0 }
 0x101   : > { %v886_v61 = vpop.f32.mrb[4].mxu0  ;;  %v1070_v63 = vpop.f32.mrb[4].mxu1  ;;  %v524_v48 = vadd.s32 %v1020_v18, %v506_v36  ;;  %v620_v51 = vmul.f32 %v583_v34, %v583_v34  ;;  %v585_v52 = vsel %vm537_vm11, %v1049_v40, 0.0  ;;  %v525_v54 = vadd.s32 %v1020_v18, %v507_v42 }
 0x102   : > { %v628_v1 = vadd.f32 %v627_v60, %v613_v58  ;;  %v364_v2 = vpop.f32.mrb[5].mxu0  ;;  %v592_v3 = vadd.f32 %v591_v59, %v577_v55  ;;  %v396_v5 = vpop.f32.mrb[5].mxu1  ;;  %v580_v19 = vsel %vm532_vm5, %v886_v61, 0.0  ;;  %v621_v45 = vmul.f32 %v584_v47, %v584_v47 }
 0x103   : > { %v578_v6 = vsel %vm530_vm4, %v364_v2, 0.0  ;;  %v887_v7 = vpop.f32.mrb[6].mxu0  ;;  %v1075_v10 = vpop.f32.mrb[6].mxu1  ;;  %v617_v30 = vmul.f32 %v580_v19, %v580_v19  ;;  %v586_v53 = vsel %vm538_vm12, %v396_v5, 0.0  ;;  %vm540_vm14 = vcmp.lt.s32.totalorder %v524_v48, 512 }
 0x104   : > { %v593_v11 = vadd.f32 %v592_v3, %v578_v6  ;;  %v615_v12 = vmul.f32 %v578_v6, %v578_v6  ;;  %v629_v13 = vadd.f32 %v628_v1, %v614_v0  ;;  %v819_v14 = vpack.c.bf16 %v887_v7, %v886_v61  ;;  %v367_v15 = vpop.f32.mrb[7].mxu0  ;;  %v399_v16 = vpop.f32.mrb[7].mxu1 }
 0x105   : > { %v814_v20 = vpack.c.bf16 %v367_v15, %v364_v2  ;;  %v579_v21 = vsel %vm531_vm7, %v367_v15, 0.0  ;;  %v581_v26 = vsel %vm533_vm6, %v887_v7, 0.0  ;;  %v839_v28 = vpack.c.bf16 %v1075_v10, %v1070_v63 }
 0x106   : > { %v630_v22 = vadd.f32 %v629_v13, %v615_v12  ;;  %843 = vst [vmem:[%s1044_s11 + $0x18] sm:$0xff] %v819_v14   ;;  %v594_v23 = vadd.f32 %v593_v11, %v579_v21  ;;  %v616_v24 = vmul.f32 %v579_v21, %v579_v21  ;;  %v834_v29 = vpack.c.bf16 %v399_v16, %v396_v5 }
 0x107   : > { %842 = vst [vmem:[%s1044_s11 + $0x10] sm:$0xff] %v814_v20   ;;  %847 = vst [vmem:[%s1044_s11 + $0x38] sm:$0xff] %v839_v28   ;;  %v618_v37 = vmul.f32 %v581_v26, %v581_v26  ;;  %v622_v56 = vmul.f32 %v585_v52, %v585_v52  ;;  %v623_v59 = vmul.f32 %v586_v53, %v586_v53  ;;  %v587_v31 = vsel %vm539_vm13, %v399_v16, 0.0 }
 0x108   : > { %v595_v32 = vadd.f32 %v594_v23, %v580_v19  ;;  %v631_v33 = vadd.f32 %v630_v22, %v616_v24  ;;  %846 = vst [vmem:[%s1044_s11 + $0x30] sm:$0xff] %v834_v29   ;;  %vm541_vm15 = vcmp.lt.s32.totalorder %v525_v54, 512  ;;  %v588_v62 = vsel %vm540_vm14, %v1070_v63, 0.0 }
 0x109   : > { %v624_v18 = vmul.f32 %v587_v31, %v587_v31  ;;  %v589_v1 = vsel %vm541_vm15, %v1075_v10, 0.0  ;;  %v625_v2 = vmul.f32 %v588_v62, %v588_v62 }
 0x10a   : > { %v632_v38 = vadd.f32 %v631_v33, %v617_v30  ;;  %v596_v39 = vadd.f32 %v595_v32, %v581_v26  ;;  %v626_v5 = vmul.f32 %v589_v1, %v589_v1 }
 0x10c   : > { %v597_v43 = vadd.f32 %v596_v39, %v582_v27  ;;  %v633_v44 = vadd.f32 %v632_v38, %v618_v37 }
 0x10e   : > { %v634_v49 = vadd.f32 %v633_v44, %v619_v41  ;;  %v598_v50 = vadd.f32 %v597_v43, %v583_v34 }
 0x110   : > { %v599_v55 = vadd.f32 %v598_v50, %v584_v47  ;;  %v635_v17 = vadd.f32 %v634_v49, %v620_v51 }
 0x112   : > { %v636_v57 = vadd.f32 %v635_v17, %v621_v45  ;;  %v600_v58 = vadd.f32 %v599_v55, %v585_v52 }
 0x114   : > { %v601_v60 = vadd.f32 %v600_v58, %v586_v53  ;;  %v637_v61 = vadd.f32 %v636_v57, %v622_v56 }
 0x116   : > { %v638_v40 = vadd.f32 %v637_v61, %v623_v59  ;;  %v602_v0 = vadd.f32 %v601_v60, %v587_v31 }
 0x118   : > { %v603_v3 = vadd.f32 %v602_v0, %v588_v62  ;;  %v639_v4 = vadd.f32 %v638_v40, %v624_v18 }
 0x11a   : > { %v604_v6 = vadd.f32 %v603_v3, %v589_v1  ;;  %v640_v7 = vadd.f32 %v639_v4, %v625_v2 }
 0x11c   : > { %v605_v8 = vrot.slane %v604_v6, 4  ;;  %v641_v9 = vadd.f32 %v640_v7, %v626_v5 }
 0x11e   : > { %v606_v11 = vadd.f32 %v605_v8, %v604_v6  ;;  %v642_v12 = vrot.slane %v641_v9, 4 }
 0x120   : > { %v607_v13 = vrot.slane %v606_v11, 2  ;;  %v643_v14 = vadd.f32 %v642_v12, %v641_v9 }
 0x122   : > { %v608_v63 = vadd.f32 %v607_v13, %v606_v11  ;;  %v644_v15 = vrot.slane %v643_v14, 2 }
 0x124   : > { %v609_v16 = vrot.slane %v608_v63, 1  ;;  %v645_v19 = vadd.f32 %v644_v15, %v643_v14 }
 0x126   : > { %v646_v10 = vrot.slane %v645_v19, 1  ;;  %v610_v20 = vadd.f32 %v609_v16, %v608_v63 }
 0x128   : > { %v647_v21 = vadd.f32 %v646_v10, %v645_v19 }
 0x12a   : > { %v649_v22 = vsel %vm648_vm0, %v610_v20, %v647_v21 }
 0x12b   : > { %v651_v23 = vsel %vm650_vm1, %v649_v22, 0.0 }
 0x12c   : > { %652 = vst [vmem:[%s184_s17] sm:$0xff] %v651_v23 }
 0x12d PF: > { %s14_s12 = sadd.s32 1, %s942_s12  }
 0x12e   : > { %p11_p5 = scmp.ge.s32.totalorder %s14_s12, 6  }
 0x130   :  { %13 = sbr.rel (!%p11_p5) target bundleno = 1 (0x1), region = 70 }

// kernel: bottleneck_forward.6
= control target key start
LH: loop header
LB: loop body
LE: loop exit
PB: predicated region body
PF: predicated region fallthrough
CT: control target
= control target key end

     0   :  { %s1132_s21 = smov 0   ;;  %s1267_s0 = inlined_call_operand.vmem [shape: bf16[512,128], index: 0, kind: input, shape index: {}]   ;;  %s1268_s1 = inlined_call_operand.vmem [shape: f32[2,128], index: 1, kind: input, shape index: {}]   ;;  %s1269_s2 = inlined_call_operand.vmem [shape: f32[1,128], index: 2, kind: input, shape index: {}]   ;;  %s1270_s3 = inlined_call_operand.vmem [shape: f32[1,128], index: 3, kind: input, shape index: {}]   ;;  %s1271_s4 = inlined_call_operand.vmem [shape: bf16[128,128], index: 4, kind: input, shape index: {}]   ;;  %s1272_s5 = inlined_call_operand.vmem [shape: bf16[512,128], index: 5, kind: output, shape index: {0}]   ;;  %s1273_s6 = inlined_call_operand.vmem [shape: f32[4,8,128], index: 6, kind: output, shape index: {1}]  }
   0x1 LB: > { %s1138_s22 = sadd.s32 4294967295, %s1095_s21   ;;  %p872_p0 = scmp.ge.s32.totalorder %s1095_s21, 1  ;;  %s1095_s21 = sphi %s1132_s21, %s17_s21  }
   0x2   : > { %p216_p1 = scmp.lt.s32.totalorder %s1095_s21, 5 }
   0x4   : > { %p217_p2 = pnand %p872_p0, %p216_p1 }
   0x5   : > { %v1079_v0 = vld [vmem:[%s1271_s4] sm:$0xff] (!%p217_p2)   ;;  %v1080_v1 = vld [vmem:[%s1271_s4 + $0x8] sm:$0xff] (!%p217_p2)   ;;  %v1081_v2 = vld [vmem:[%s1271_s4 + $0x10] sm:$0xff] (!%p217_p2)   ;;  %s873_s29 = sshll.u32 (!%p217_p2), %s1138_s22, 4  ;;  %v312_v13 = vlaneseq (!%p217_p2)  ;;  %s902_s7 = sshll.u32 (!%p217_p2), %s1138_s22, 7 }
   0x6   : > { %220 = sbr.rel (%p217_p2) target bundleno = 305 (0x131), region = 40  ;;  %1023 = vmatprep.subr.bf16.mxu0 (!%p217_p2), %v1079_v0  ;;  %1055 = vmatprep.subr.bf16.mxu1 (!%p217_p2), %v1079_v0  ;;  %v1082_v3 = vld [vmem:[%s1271_s4 + $0x18] sm:$0xff] (!%p217_p2)   ;;  %v267_v4 = vld [vmem:[%s1268_s1] sm:$0x1] (!%p217_p2)  ;;  %v269_v5 = vld [vmem:[%s1268_s1 + $0x1] sm:$0x1] (!%p217_p2) }
   0x7   : > { %1024 = vmatpush3.bf16.msra.mxu0 (!%p217_p2), %v1079_v0  ;;  %1063 = vmatpush3.bf16.msra.mxu1 (!%p217_p2), %v1079_v0  ;;  %v268_v6 = vmul.f32 (!%p217_p2), 0.001953125, %v267_v4  ;;  %v270_v7 = vmul.f32 (!%p217_p2), 0.001953125, %v269_v5  ;;  %p251_p3 = scmp.lt.s32.totalorder (!%p217_p2), %s873_s29, 63  ;;  %v1083_v9 = vld [vmem:[%s1271_s4 + $0x20] sm:$0xff] (!%p217_p2)   ;;  %v1084_v12 = vld [vmem:[%s1271_s4 + $0x28] sm:$0xff] (!%p217_p2)   ;;  %v1085_v14 = vld [vmem:[%s1271_s4 + $0x30] sm:$0xff] (!%p217_p2)  }
   0x8   : > { %1025 = vmatprep.subr.bf16.mxu0 (!%p217_p2), %v1080_v1  ;;  %1056 = vmatprep.subr.bf16.mxu1 (!%p217_p2), %v1080_v1  ;;  %v1178_v15 = vshrl.u32 (!%p217_p2), %v312_v13, 7  ;;  %v1086_v16 = vld [vmem:[%s1271_s4 + $0x38] sm:$0xff] (!%p217_p2)   ;;  %v275_v18 = vld [vmem:[%s1269_s2] sm:$0x1] (!%p217_p2)  ;;  %p262_p4 = scmp.lt.s32.totalorder (!%p217_p2), %s1138_s22, 3 }
   0x9   : > { %v271_v8 = vmul.f32 (!%p217_p2), %v268_v6, %v268_v6  ;;  %v277_v34 = vld [vmem:[%s1270_s3] sm:$0x1] (!%p217_p2) }
   0xa   : > { %v314_v21 = vsub.s32 (!%p217_p2), 0, %v1178_v15 }
   0xb   : > { %1026 = vmatpush3.bf16.msra.mxu0 (!%p217_p2), %v1080_v1  ;;  %1064 = vmatpush3.bf16.msra.mxu1 (!%p217_p2), %v1080_v1  ;;  %v272_v10 = vsub.f32 (!%p217_p2), %v270_v7, %v271_v8 }
   0xc   : > { %1027 = vmatprep.subr.bf16.mxu0 (!%p217_p2), %v1081_v2  ;;  %1057 = vmatprep.subr.bf16.mxu1 (!%p217_p2), %v1081_v2 }
   0xd   : > { %s1275_s29 = smov (!%p251_p3, %s873_s29), 63  ;;  %v273_v11 = vadd.f32 1e-05, %v272_v10  ;;  %s1277_s22 = smov (!%p262_p4, %s1138_s22), 3 }
   0xe   : > { %s874_s16 = sshll.u32 %s1275_s29, 2  ;;  %s877_s29 = sshll.u32 %s1277_s22, 3 }
   0xf   : > { %1028 = vmatpush3.bf16.msra.mxu0 %v1081_v2  ;;  %1065 = vmatpush3.bf16.msra.mxu1 %v1081_v2  ;;  %1087 = vrsqrt.f32 %v273_v11  ;;  %s254_s23 = scalar_lea.vmem %s1267_s0, %s874_s16  ;;  %s1215_s10 = scalar_lea.vmem %s1272_s5, %s874_s16 }
  0x10   : > { %1029 = vmatprep.subr.bf16.mxu0 %v1082_v3  ;;  %1058 = vmatprep.subr.bf16.mxu1 %v1082_v3  ;;  %v922_v17 = vld [vmem:[%s254_s23] sm:$0xff]   ;;  %v993_v19 = vld [vmem:[%s254_s23 + $0x8] sm:$0xff]   ;;  %v994_v20 = vld [vmem:[%s254_s23 + $0x10] sm:$0xff]   ;;  %s265_s13 = scalar_lea.vmem %s1273_s6, %s877_s29 }
  0x11   : > { %v995_v22 = vld [vmem:[%s254_s23 + $0x18] sm:$0xff]   ;;  %v996_v23 = vld [vmem:[%s254_s23 + $0x20] sm:$0xff]   ;;  %v923_v25 = vunpack.c.l.bf16 %v922_v17  ;;  %v924_v26 = vunpack.c.h.bf16 %v922_v17  ;;  %v997_v27 = vld [vmem:[%s254_s23 + $0x28] sm:$0xff]   ;;  %v927_v29 = vunpack.c.l.bf16 %v993_v19  ;;  %v928_v30 = vunpack.c.h.bf16 %v993_v19 }
  0x12   : > { %v931_v31 = vunpack.c.l.bf16 %v994_v20  ;;  %v998_v32 = vld [vmem:[%s254_s23 + $0x30] sm:$0xff]   ;;  %v1187_v33 = vld [vmem:[%s254_s23 + $0x38] sm:$0xff]   ;;  %v932_v35 = vunpack.c.h.bf16 %v994_v20  ;;  %v935_v36 = vunpack.c.l.bf16 %v995_v22  ;;  %v936_v37 = vunpack.c.h.bf16 %v995_v22 }
  0x13   : > { %1030 = vmatpush3.bf16.msra.mxu0 %v1082_v3  ;;  %1066 = vmatpush3.bf16.msra.mxu1 %v1082_v3  ;;  %v939_v38 = vunpack.c.l.bf16 %v996_v23  ;;  %v940_v41 = vunpack.c.h.bf16 %v996_v23  ;;  %v943_v42 = vunpack.c.l.bf16 %v997_v27  ;;  %v944_v43 = vunpack.c.h.bf16 %v997_v27 }
  0x14   : > { %1031 = vmatprep.subr.bf16.mxu0 %v1083_v9  ;;  %1059 = vmatprep.subr.bf16.mxu1 %v1083_v9  ;;  %v947_v44 = vunpack.c.l.bf16 %v998_v32  ;;  %v948_v45 = vunpack.c.h.bf16 %v998_v32  ;;  %v951_v46 = vunpack.c.l.bf16 %v1187_v33 }
  0x17   : > { %1032 = vmatpush3.bf16.msra.mxu0 %v1083_v9  ;;  %1067 = vmatpush3.bf16.msra.mxu1 %v1083_v9 }
  0x18   : > { %1033 = vmatprep.subr.bf16.mxu0 %v1084_v12  ;;  %1060 = vmatprep.subr.bf16.mxu1 %v1084_v12 }
  0x19   : > { %v1088_v24 = vpop.eup %1087 }
  0x1a   : > { %v276_v28 = vmul.f32 %v1088_v24, %v275_v18 }
  0x1b   : > { %1034 = vmatpush3.bf16.msra.mxu0 %v1084_v12  ;;  %1068 = vmatpush3.bf16.msra.mxu1 %v1084_v12 }
  0x1c   : > { %1035 = vmatprep.subr.bf16.mxu0 %v1085_v14  ;;  %1061 = vmatprep.subr.bf16.mxu1 %v1085_v14  ;;  %v278_v39 = vmul.f32 %v276_v28, %v268_v6  ;;  %v315_v40 = vrot.slane %v276_v28, %v314_v21 }
  0x1e   : > { %v279_v47 = vsub.f32 %v277_v34, %v278_v39  ;;  %v316_v48 = vmul.f32 %v923_v25, %v315_v40  ;;  %v317_v49 = vmul.f32 %v924_v26, %v315_v40  ;;  %v318_v50 = vmul.f32 %v927_v29, %v315_v40 }
  0x1f   : > { %1036 = vmatpush3.bf16.msra.mxu0 %v1085_v14  ;;  %1069 = vmatpush3.bf16.msra.mxu1 %v1085_v14  ;;  %v319_v51 = vmul.f32 %v928_v30, %v315_v40  ;;  %v320_v52 = vmul.f32 %v931_v31, %v315_v40  ;;  %v321_v53 = vmul.f32 %v932_v35, %v315_v40  ;;  %v952_v14 = vunpack.c.h.bf16 %v1187_v33 }
  0x20   : > { %1037 = vmatprep.subr.bf16.mxu0 %v1086_v16  ;;  %1062 = vmatprep.subr.bf16.mxu1 %v1086_v16  ;;  %v322_v54 = vmul.f32 %v935_v36, %v315_v40  ;;  %v336_v55 = vrot.slane %v279_v47, %v314_v21  ;;  %v323_v56 = vmul.f32 %v936_v37, %v315_v40  ;;  %v623_v47 = vadd.s32 24, %v1178_v15 }
  0x21   : > { %v324_v57 = vmul.f32 %v939_v38, %v315_v40  ;;  %v325_v58 = vmul.f32 %v940_v41, %v315_v40  ;;  %v326_v59 = vmul.f32 %v943_v42, %v315_v40  ;;  %v327_v60 = vmul.f32 %v944_v43, %v315_v40 }
  0x22   : > { %v328_v61 = vmul.f32 %v947_v44, %v315_v40  ;;  %v329_v62 = vmul.f32 %v948_v45, %v315_v40  ;;  %v338_v63 = vadd.f32 %v336_v55, %v316_v48  ;;  %v339_v0 = vadd.f32 %v336_v55, %v317_v49 }
  0x23   : > { %1038 = vmatpush3.bf16.msra.mxu0 %v1086_v16  ;;  %1070 = vmatpush3.bf16.msra.mxu1 %v1086_v16  ;;  %v340_v1 = vadd.f32 %v336_v55, %v318_v50  ;;  %v341_v2 = vadd.f32 %v336_v55, %v319_v51  ;;  %v342_v3 = vadd.f32 %v336_v55, %v320_v52  ;;  %v622_v44 = vadd.s32 16, %v1178_v15 }
  0x24   : > { %v343_v4 = vadd.f32 %v336_v55, %v321_v53  ;;  %v344_v5 = vadd.f32 %v336_v55, %v322_v54  ;;  %v345_v6 = vadd.f32 %v336_v55, %v323_v56  ;;  %v354_v7 = vmax.f32 %v338_v63, 0.0 }
  0x25   : > { %v355_v8 = vmax.f32 %v339_v0, 0.0  ;;  %v356_v9 = vmax.f32 %v340_v1, 0.0  ;;  %v357_v10 = vmax.f32 %v341_v2, 0.0  ;;  %v358_v11 = vmax.f32 %v342_v3, 0.0 }
  0x26   : > { %v359_v12 = vmax.f32 %v343_v4, 0.0  ;;  %v360_v13 = vmax.f32 %v344_v5, 0.0  ;;  %v346_v18 = vadd.f32 %v336_v55, %v324_v57  ;;  %v347_v19 = vadd.f32 %v336_v55, %v325_v58 }
  0x27   : > { %v370_v16 = vpack.c.bf16 %v355_v8, %v354_v7  ;;  %v371_v17 = vpack.c.bf16 %v357_v10, %v356_v9  ;;  %v361_v21 = vmax.f32 %v345_v6, 0.0  ;;  %v348_v22 = vadd.f32 %v336_v55, %v326_v59 }
  0x28   : > { %v372_v20 = vpack.c.bf16 %v359_v12, %v358_v11  ;;  %v349_v23 = vadd.f32 %v336_v55, %v327_v60  ;;  %v362_v24 = vmax.f32 %v346_v18, 0.0  ;;  %v363_v25 = vmax.f32 %v347_v19, 0.0 }
  0x29   : > { %1039 = vmatprep.mubr.bf16.mxu0 %v370_v16  ;;  %v350_v26 = vadd.f32 %v336_v55, %v328_v61  ;;  %v351_v27 = vadd.f32 %v336_v55, %v329_v62  ;;  %v364_v28 = vmax.f32 %v348_v22, 0.0  ;;  %v330_v30 = vmul.f32 %v951_v46, %v315_v40 }
  0x2a   : > { %1040 = vmatmul.mubr.bf16.vlgmr.msra.gmra.mrb[0].mxu0 %v371_v17  ;;  %v365_v29 = vmax.f32 %v349_v23, 0.0  ;;  %v331_v31 = vmul.f32 %v952_v14, %v315_v40  ;;  %v374_v32 = vpack.c.bf16 %v363_v25, %v362_v24  ;;  %v373_v39 = vpack.c.bf16 %v361_v21, %v360_v13 }
  0x2b   : > { %1043 = vmatprep.mubr.bf16.mxu0 %v372_v20  ;;  %v366_v33 = vmax.f32 %v350_v26, 0.0  ;;  %v367_v34 = vmax.f32 %v351_v27, 0.0  ;;  %v352_v36 = vadd.f32 %v336_v55, %v330_v30  ;;  %v1195_v40 = vstv %s902_s7 }
  0x2c   : > { %v375_v35 = vpack.c.bf16 %v365_v29, %v364_v28  ;;  %v353_v37 = vadd.f32 %v336_v55, %v331_v31  ;;  %1047 = vmatprep.mubr.bf16.mxu1 %v374_v32  ;;  %v621_v45 = vadd.s32 8, %v1178_v15  ;;  %v638_v46 = vadd.s32 %v1195_v40, %v1178_v15 }
  0x2d   : > { %v376_v38 = vpack.c.bf16 %v367_v34, %v366_v33  ;;  %v368_v41 = vmax.f32 %v352_v36, 0.0  ;;  %v640_v48 = vadd.s32 %v1195_v40, %v622_v44  ;;  %v626_v50 = vadd.s32 48, %v1178_v15 }
  0x2e   : > { %1048 = vmatmul.mubr.bf16.vlgmr.msra.gmra.mrb[0].mxu1 %v375_v35  ;;  %v369_v42 = vmax.f32 %v353_v37, 0.0  ;;  %v639_v49 = vadd.s32 %v1195_v40, %v621_v45  ;;  %v624_v51 = vadd.s32 32, %v1178_v15  ;;  %vm654_vm0 = vcmp.lt.s32.totalorder %v638_v46, 512 }
  0x2f   : > { %1051 = vmatprep.mubr.bf16.mxu1 %v376_v38  ;;  %v641_v52 = vadd.s32 %v1195_v40, %v623_v47  ;;  %v627_v53 = vadd.s32 56, %v1178_v15  ;;  %v625_v55 = vadd.s32 40, %v1178_v15  ;;  %vm656_vm1 = vcmp.lt.s32.totalorder %v640_v48, 512 }
  0x30   : > { %v377_v43 = vpack.c.bf16 %v369_v42, %v368_v41  ;;  %vm655_vm2 = vcmp.lt.s32.totalorder %v639_v49, 512  ;;  %v644_v57 = vadd.s32 %v1195_v40, %v626_v50  ;;  %v642_v60 = vadd.s32 %v1195_v40, %v624_v51 }
  0x31   : > { %v628_v61 = vadd.s32 64, %v1178_v15  ;;  %vm657_vm3 = vcmp.lt.s32.totalorder %v641_v52, 512  ;;  %v645_v0 = vadd.s32 %v1195_v40, %v627_v53  ;;  %v643_v4 = vadd.s32 %v1195_v40, %v625_v55 }
  0x32   : > { %1044 = vmatmul.mubr.bf16.gmra.mrb[4].mxu0 %v373_v39  ;;  %vm660_vm4 = vcmp.lt.s32.totalorder %v644_v57, 512  ;;  %vm658_vm5 = vcmp.lt.s32.totalorder %v642_v60, 512  ;;  %v629_v13 = vadd.s32 72, %v1178_v15  ;;  %v630_v21 = vadd.s32 80, %v1178_v15 }
  0x33   : > { %v646_v11 = vadd.s32 %v1195_v40, %v628_v61  ;;  %vm661_vm6 = vcmp.lt.s32.totalorder %v645_v0, 512  ;;  %vm659_vm7 = vcmp.lt.s32.totalorder %v643_v4, 512  ;;  %v631_v27 = vadd.s32 88, %v1178_v15 }
  0x34   : > { %v647_v30 = vadd.s32 %v1195_v40, %v629_v13  ;;  %v632_v31 = vadd.s32 96, %v1178_v15  ;;  %v648_v41 = vadd.s32 %v1195_v40, %v630_v21  ;;  %v633_v51 = vadd.s32 104, %v1178_v15 }
  0x35   : > { %vm662_vm8 = vcmp.lt.s32.totalorder %v646_v11, 512  ;;  %v649_v46 = vadd.s32 %v1195_v40, %v631_v27  ;;  %v634_v57 = vadd.s32 112, %v1178_v15 }
  0x36   : > { %1052 = vmatmul.mubr.bf16.gmra.mrb[4].mxu1 %v377_v43  ;;  %vm663_vm9 = vcmp.lt.s32.totalorder %v647_v30, 512  ;;  %v650_v55 = vadd.s32 %v1195_v40, %v632_v31  ;;  %vm664_vm10 = vcmp.lt.s32.totalorder %v648_v41, 512  ;;  %v651_v4 = vadd.s32 %v1195_v40, %v633_v51 }
  0x37   : > { %vm665_vm11 = vcmp.lt.s32.totalorder %v649_v46, 512 }
  0x38   : > { %vm666_vm12 = vcmp.lt.s32.totalorder %v650_v55, 512  ;;  %vm667_vm13 = vcmp.lt.s32.totalorder %v651_v4, 512 }
  0xfd   : > { %v1041_v54 = vpop.f32.mrb[0].mxu0 }
  0xfe   : > { %v476_v56 = vpop.f32.mrb[1].mxu0  ;;  %v704_v1 = vsel %vm656_vm1, %v1041_v54, 0.0  ;;  %vm778_vm1 = vcmask 1041408  }
  0xff   : > { %v702_v58 = vsel %vm654_vm0, %v476_v56, 0.0  ;;  %v1042_v59 = vpop.f32.mrb[2].mxu0  ;;  %v741_v14 = vmul.f32 %v704_v1, %v704_v1  ;;  %vm776_vm0 = vcmask 1040384  }
 0x100   : > { %v961_v62 = vpack.c.bf16 %v1042_v59, %v1041_v54  ;;  %v479_v63 = vpop.f32.mrb[3].mxu0  ;;  %v739_v6 = vmul.f32 %v702_v58, %v702_v58  ;;  %v705_v10 = vsel %vm657_vm3, %v1042_v59, 0.0 }
 0x101   : > { %v956_v2 = vpack.c.bf16 %v479_v63, %v476_v56  ;;  %v703_v3 = vsel %vm655_vm2, %v479_v63, 0.0  ;;  %v1221_v5 = vpop.f32.mrb[0].mxu1  ;;  %v742_v23 = vmul.f32 %v705_v10, %v705_v10 }
 0x102   : > { %1000 = vst [vmem:[%s1215_s10 + $0x8] sm:$0xff] %v961_v62   ;;  %v718_v7 = vadd.f32 %v703_v3, %v702_v58  ;;  %v740_v8 = vmul.f32 %v703_v3, %v703_v3  ;;  %v508_v9 = vpop.f32.mrb[1].mxu1 }
 0x103   : > { %957 = vst [vmem:[%s1215_s10] sm:$0xff] %v956_v2   ;;  %v1226_v12 = vpop.f32.mrb[2].mxu1  ;;  %v710_v49 = vsel %vm662_vm8, %v508_v9, 0.0 }
 0x104   : > { %v719_v16 = vadd.f32 %v718_v7, %v704_v1  ;;  %v755_v17 = vadd.f32 %v740_v8, %v739_v6  ;;  %v981_v18 = vpack.c.bf16 %v1226_v12, %v1221_v5  ;;  %v511_v19 = vpop.f32.mrb[3].mxu1  ;;  %v747_v63 = vmul.f32 %v710_v49, %v710_v49 }
 0x105   : > { %v1045_v20 = vpop.f32.mrb[4].mxu0  ;;  %v976_v22 = vpack.c.bf16 %v511_v19, %v508_v9  ;;  %v711_v0 = vsel %vm663_vm9, %v511_v19, 0.0  ;;  %v635_v1 = vadd.s32 120, %v1178_v15  ;;  %v712_v6 = vsel %vm664_vm10, %v1221_v5, 0.0 }
 0x106   : > { %v756_v24 = vadd.f32 %v755_v17, %v741_v14  ;;  %v492_v25 = vpop.f32.mrb[5].mxu0  ;;  %v720_v26 = vadd.f32 %v719_v16, %v705_v10  ;;  %1004 = vst [vmem:[%s1215_s10 + $0x28] sm:$0xff] %v981_v18   ;;  %v708_v37 = vsel %vm660_vm4, %v1045_v20, 0.0  ;;  %v652_v7 = vadd.s32 %v1195_v40, %v634_v57 }
 0x107   : > { %v706_v28 = vsel %vm658_vm5, %v492_v25, 0.0  ;;  %v1046_v29 = vpop.f32.mrb[6].mxu0  ;;  %1003 = vst [vmem:[%s1215_s10 + $0x20] sm:$0xff] %v976_v22   ;;  %v745_v52 = vmul.f32 %v708_v37, %v708_v37  ;;  %v748_v10 = vmul.f32 %v711_v0, %v711_v0  ;;  %v713_v11 = vsel %vm665_vm11, %v1226_v12, 0.0 }
 0x108   : > { %v721_v32 = vadd.f32 %v720_v26, %v706_v28  ;;  %v743_v33 = vmul.f32 %v706_v28, %v706_v28  ;;  %v757_v34 = vadd.f32 %v756_v24, %v742_v23  ;;  %v971_v35 = vpack.c.bf16 %v1046_v29, %v1045_v20  ;;  %v495_v36 = vpop.f32.mrb[7].mxu0 }
 0x109   : > { %v966_v38 = vpack.c.bf16 %v495_v36, %v492_v25  ;;  %v707_v39 = vsel %vm659_vm7, %v495_v36, 0.0  ;;  %v1053_v42 = vpop.f32.mrb[4].mxu1  ;;  %v709_v48 = vsel %vm661_vm6, %v1046_v29, 0.0  ;;  %v653_v14 = vadd.s32 %v1195_v40, %v635_v1 }
 0x10a   : > { %v758_v43 = vadd.f32 %v757_v34, %v743_v33  ;;  %1002 = vst [vmem:[%s1215_s10 + $0x18] sm:$0xff] %v971_v35   ;;  %v722_v44 = vadd.f32 %v721_v32, %v707_v39  ;;  %v744_v45 = vmul.f32 %v707_v39, %v707_v39  ;;  %v524_v47 = vpop.f32.mrb[5].mxu1  ;;  %v746_v60 = vmul.f32 %v709_v48, %v709_v48 }
 0x10b   : > { %1001 = vst [vmem:[%s1215_s10 + $0x10] sm:$0xff] %v966_v38   ;;  %v1054_v50 = vpop.f32.mrb[6].mxu1  ;;  %v714_v13 = vsel %vm666_vm12, %v524_v47, 0.0  ;;  %v749_v15 = vmul.f32 %v712_v6, %v712_v6  ;;  %vm668_vm14 = vcmp.lt.s32.totalorder %v652_v7, 512  ;;  %v750_v18 = vmul.f32 %v713_v11, %v713_v11 }
 0x10c   : > { %v723_v53 = vadd.f32 %v722_v44, %v708_v37  ;;  %v759_v54 = vadd.f32 %v758_v43, %v744_v45  ;;  %v527_v56 = vpop.f32.mrb[7].mxu1  ;;  %v991_v58 = vpack.c.bf16 %v1054_v50, %v1053_v42  ;;  %v751_v21 = vmul.f32 %v714_v13, %v714_v13 }
 0x10d   : > { %v986_v59 = vpack.c.bf16 %v527_v56, %v524_v47  ;;  %v715_v5 = vsel %vm667_vm13, %v527_v56, 0.0  ;;  %vm669_vm15 = vcmp.lt.s32.totalorder %v653_v14, 512  ;;  %v716_v24 = vsel %vm668_vm14, %v1053_v42, 0.0 }
 0x10e   : > { %v760_v61 = vadd.f32 %v759_v54, %v745_v52  ;;  %v724_v62 = vadd.f32 %v723_v53, %v709_v48  ;;  %1006 = vst [vmem:[%s1215_s10 + $0x38] sm:$0xff] %v991_v58   ;;  %v752_v26 = vmul.f32 %v715_v5, %v715_v5  ;;  %v717_v40 = vsel %vm669_vm15, %v1054_v50, 0.0 }
 0x10f   : > { %1005 = vst [vmem:[%s1215_s10 + $0x30] sm:$0xff] %v986_v59   ;;  %v753_v27 = vmul.f32 %v716_v24, %v716_v24  ;;  %v754_v30 = vmul.f32 %v717_v40, %v717_v40 }
 0x110   : > { %v725_v2 = vadd.f32 %v724_v62, %v710_v49  ;;  %v761_v3 = vadd.f32 %v760_v61, %v746_v60 }
 0x112   : > { %v762_v8 = vadd.f32 %v761_v3, %v747_v63  ;;  %v726_v9 = vadd.f32 %v725_v2, %v711_v0 }
 0x114   : > { %v727_v16 = vadd.f32 %v726_v9, %v712_v6  ;;  %v763_v17 = vadd.f32 %v762_v8, %v748_v10 }
 0x116   : > { %v764_v19 = vadd.f32 %v763_v17, %v749_v15  ;;  %v728_v20 = vadd.f32 %v727_v16, %v713_v11 }
 0x118   : > { %v729_v22 = vadd.f32 %v728_v20, %v714_v13  ;;  %v765_v23 = vadd.f32 %v764_v19, %v750_v18 }
 0x11a   : > { %v766_v25 = vadd.f32 %v765_v23, %v751_v21  ;;  %v730_v12 = vadd.f32 %v729_v22, %v715_v5 }
 0x11c   : > { %v731_v28 = vadd.f32 %v730_v12, %v716_v24  ;;  %v767_v29 = vadd.f32 %v766_v25, %v752_v26 }
 0x11e   : > { %v732_v31 = vadd.f32 %v731_v28, %v717_v40  ;;  %v768_v32 = vadd.f32 %v767_v29, %v753_v27 }
 0x120   : > { %v733_v33 = vrot.slane %v732_v31, 4  ;;  %v769_v34 = vadd.f32 %v768_v32, %v754_v30 }
 0x122   : > { %v734_v35 = vadd.f32 %v733_v33, %v732_v31  ;;  %v770_v36 = vrot.slane %v769_v34, 4 }
 0x124   : > { %v735_v37 = vrot.slane %v734_v35, 2  ;;  %v771_v38 = vadd.f32 %v770_v36, %v769_v34 }
 0x126   : > { %v736_v39 = vadd.f32 %v735_v37, %v734_v35  ;;  %v772_v41 = vrot.slane %v771_v38, 2 }
 0x128   : > { %v737_v42 = vrot.slane %v736_v39, 1  ;;  %v773_v43 = vadd.f32 %v772_v41, %v771_v38 }
 0x12a   : > { %v774_v44 = vrot.slane %v773_v43, 1  ;;  %v738_v45 = vadd.f32 %v737_v42, %v736_v39 }
 0x12c   : > { %v775_v46 = vadd.f32 %v774_v44, %v773_v43 }
 0x12e   : > { %v777_v47 = vsel %vm776_vm0, %v738_v45, %v775_v46 }
 0x12f   : > { %v779_v48 = vsel %vm778_vm1, %v777_v47, 0.0 }
 0x130   : > { %780 = vst [vmem:[%s265_s13] sm:$0xff] %v779_v48 }
 0x131 PF: > { %s17_s21 = sadd.s32 1, %s1095_s21  }
 0x132   : > { %p14_p5 = scmp.ge.s32.totalorder %s17_s21, 6  }
 0x134   :  { %16 = sbr.rel (!%p14_p5) target bundleno = 1 (0x1), region = 82 }

// kernel: bottleneck_forward.7
= control target key start
LH: loop header
LB: loop body
LE: loop exit
PB: predicated region body
PF: predicated region fallthrough
CT: control target
= control target key end

     0   :  { %s624_s18 = smov 0   ;;  %s781_s0 = inlined_call_operand.vmem [shape: bf16[512,128], index: 0, kind: input, shape index: {}]   ;;  %s782_s1 = inlined_call_operand.vmem [shape: f32[2,128], index: 1, kind: input, shape index: {}]   ;;  %s783_s2 = inlined_call_operand.vmem [shape: f32[1,128], index: 2, kind: input, shape index: {}]   ;;  %s784_s3 = inlined_call_operand.vmem [shape: f32[1,128], index: 3, kind: input, shape index: {}]   ;;  %s785_s4 = inlined_call_operand.vmem [shape: bf16[512,128], index: 4, kind: input, shape index: {}]   ;;  %s786_s5 = inlined_call_operand.vmem [shape: f32[512,128], index: 5, kind: output, shape index: {}]  }
   0x1 LB: > { %s485_s19 = sadd.s32 4294967295, %s592_s18   ;;  %p489_p0 = scmp.ge.s32.totalorder %s592_s18, 1  ;;  %s592_s18 = sphi %s624_s18, %s15_s18  }
   0x2   : > { %p199_p1 = scmp.lt.s32.totalorder %s592_s18, 5 }
   0x4   : > { %p200_p2 = pnand %p489_p0, %p199_p1 }
   0x5   : > { %s490_s20 = sshll.u32 (!%p200_p2), %s485_s19, 4  ;;  %v250_v0 = vld [vmem:[%s782_s1] sm:$0x1] (!%p200_p2)  ;;  %v252_v1 = vld [vmem:[%s782_s1 + $0x1] sm:$0x1] (!%p200_p2)  ;;  %v295_v7 = vlaneseq (!%p200_p2) }
   0x6   : > { %203 = sbr.rel (%p200_p2) target bundleno = 50 (0x32), region = 40  ;;  %p233_p3 = scmp.lt.s32.totalorder (!%p200_p2), %s490_s20, 63  ;;  %v251_v2 = vmul.f32 (!%p200_p2), 0.001953125, %v250_v0  ;;  %v253_v3 = vmul.f32 (!%p200_p2), 0.001953125, %v252_v1  ;;  %v258_v27 = vld [vmem:[%s783_s2] sm:$0x1] (!%p200_p2) }
   0x7   : > { %v651_v8 = vshrl.u32 (!%p200_p2), %v295_v7, 7  ;;  %v260_v51 = vld [vmem:[%s784_s3] sm:$0x1] (!%p200_p2) }
   0x8   : > { %v254_v4 = vmul.f32 (!%p200_p2), %v251_v2, %v251_v2 }
   0x9   : > { %v297_v16 = vsub.s32 (!%p200_p2), 0, %v651_v8 }
   0xa   : > { %v255_v5 = vsub.f32 (!%p200_p2), %v253_v3, %v254_v4 }
   0xc   : > { %v256_v6 = vadd.f32 (!%p200_p2), 1e-05, %v255_v5 }
   0xd   : > { %s788_s20 = smov (!%p233_p3, %s490_s20), 63 }
   0xe   : > { %s491_s25 = sshll.u32 %s788_s20, 2  ;;  %584 = vrsqrt.f32 %v256_v6  ;;  %s495_s11 = sshll.u32 %s788_s20, 3 }
   0xf   : > { %s644_s28 = scalar_lea.vmem %s781_s0, %s491_s25  ;;  %s649_s6 = scalar_lea.vmem %s785_s4, %s491_s25 }
  0x10   : > { %v499_v9 = vld [vmem:[%s644_s28] sm:$0xff]   ;;  %v562_v11 = vld [vmem:[%s644_s28 + $0x8] sm:$0xff]   ;;  %v563_v13 = vld [vmem:[%s644_s28 + $0x10] sm:$0xff]   ;;  %s740_s14 = scalar_lea.vmem %s786_s5, %s495_s11 }
  0x11   : > { %v655_v10 = vld [vmem:[%s649_s6] sm:$0xff]   ;;  %v659_v12 = vld [vmem:[%s649_s6 + $0x8] sm:$0xff]   ;;  %v663_v14 = vld [vmem:[%s649_s6 + $0x10] sm:$0xff]   ;;  %v500_v15 = vunpack.c.l.bf16 %v499_v9  ;;  %v501_v18 = vunpack.c.h.bf16 %v499_v9  ;;  %v504_v22 = vunpack.c.l.bf16 %v562_v11  ;;  %v505_v24 = vunpack.c.h.bf16 %v562_v11 }
  0x12   : > { %v532_v17 = vunpack.c.l.bf16 %v655_v10  ;;  %v564_v19 = vld [vmem:[%s644_s28 + $0x18] sm:$0xff]   ;;  %v533_v21 = vunpack.c.h.bf16 %v655_v10  ;;  %v536_v23 = vunpack.c.l.bf16 %v659_v12  ;;  %v565_v25 = vld [vmem:[%s644_s28 + $0x20] sm:$0xff]   ;;  %v537_v28 = vunpack.c.h.bf16 %v659_v12  ;;  %v566_v32 = vld [vmem:[%s644_s28 + $0x28] sm:$0xff]  }
  0x13   : > { %v669_v20 = vld [vmem:[%s649_s6 + $0x18] sm:$0xff]   ;;  %v675_v26 = vld [vmem:[%s649_s6 + $0x20] sm:$0xff]   ;;  %v508_v29 = vunpack.c.l.bf16 %v563_v13  ;;  %v540_v30 = vunpack.c.l.bf16 %v663_v14  ;;  %v509_v31 = vunpack.c.h.bf16 %v563_v13  ;;  %v684_v33 = vld [vmem:[%s649_s6 + $0x28] sm:$0xff]   ;;  %v541_v34 = vunpack.c.h.bf16 %v663_v14 }
  0x14   : > { %v512_v35 = vunpack.c.l.bf16 %v564_v19  ;;  %v544_v36 = vunpack.c.l.bf16 %v669_v20  ;;  %v513_v37 = vunpack.c.h.bf16 %v564_v19  ;;  %v567_v38 = vld [vmem:[%s644_s28 + $0x30] sm:$0xff]   ;;  %v545_v41 = vunpack.c.h.bf16 %v669_v20  ;;  %v697_v49 = vld [vmem:[%s644_s28 + $0x38] sm:$0xff]  }
  0x15   : > { %v690_v39 = vld [vmem:[%s649_s6 + $0x30] sm:$0xff]   ;;  %v516_v42 = vunpack.c.l.bf16 %v565_v25  ;;  %v548_v43 = vunpack.c.l.bf16 %v675_v26  ;;  %v517_v44 = vunpack.c.h.bf16 %v565_v25  ;;  %v549_v46 = vunpack.c.h.bf16 %v675_v26  ;;  %v700_v50 = vld [vmem:[%s649_s6 + $0x38] sm:$0xff]  }
  0x16   : > { %v520_v47 = vunpack.c.l.bf16 %v566_v32  ;;  %v552_v48 = vunpack.c.l.bf16 %v684_v33  ;;  %v521_v52 = vunpack.c.h.bf16 %v566_v32  ;;  %v553_v53 = vunpack.c.h.bf16 %v684_v33 }
  0x17   : > { %v524_v54 = vunpack.c.l.bf16 %v567_v38  ;;  %v556_v55 = vunpack.c.l.bf16 %v690_v39  ;;  %v525_v58 = vunpack.c.h.bf16 %v567_v38  ;;  %v557_v59 = vunpack.c.h.bf16 %v690_v39 }
  0x18   : > { %v585_v40 = vpop.eup %584  ;;  %v528_v60 = vunpack.c.l.bf16 %v697_v49  ;;  %v560_v61 = vunpack.c.l.bf16 %v700_v50  ;;  %v529_v62 = vunpack.c.h.bf16 %v697_v49  ;;  %v561_v63 = vunpack.c.h.bf16 %v700_v50 }
  0x19   : > { %v259_v45 = vmul.f32 %v585_v40, %v258_v27 }
  0x1b   : > { %v261_v56 = vmul.f32 %v259_v45, %v251_v2  ;;  %v707_v57 = vrot.slane %v259_v45, %v297_v16 }
  0x1d   : > { %v262_v0 = vsub.f32 %v260_v51, %v261_v56  ;;  %v299_v1 = vmul.f32 %v500_v15, %v707_v57  ;;  %v300_v3 = vmul.f32 %v501_v18, %v707_v57  ;;  %v301_v2 = vmul.f32 %v504_v22, %v707_v57 }
  0x1e   : > { %v302_v4 = vmul.f32 %v505_v24, %v707_v57  ;;  %v303_v5 = vmul.f32 %v508_v29, %v707_v57  ;;  %v304_v6 = vmul.f32 %v509_v31, %v707_v57  ;;  %v305_v7 = vmul.f32 %v512_v35, %v707_v57 }
  0x1f   : > { %v319_v8 = vrot.slane %v262_v0, %v297_v16  ;;  %v306_v9 = vmul.f32 %v513_v37, %v707_v57  ;;  %v307_v11 = vmul.f32 %v516_v42, %v707_v57  ;;  %v308_v13 = vmul.f32 %v517_v44, %v707_v57 }
  0x20   : > { %v309_v15 = vmul.f32 %v520_v47, %v707_v57  ;;  %v310_v18 = vmul.f32 %v521_v52, %v707_v57  ;;  %v311_v19 = vmul.f32 %v524_v54, %v707_v57  ;;  %v312_v20 = vmul.f32 %v525_v58, %v707_v57 }
  0x21   : > { %v321_v22 = vadd.f32 %v319_v8, %v299_v1  ;;  %v322_v24 = vadd.f32 %v319_v8, %v300_v3  ;;  %v323_v25 = vadd.f32 %v319_v8, %v301_v2  ;;  %v324_v27 = vadd.f32 %v319_v8, %v302_v4 }
  0x22   : > { %v325_v16 = vadd.f32 %v319_v8, %v303_v5  ;;  %v326_v29 = vadd.f32 %v319_v8, %v304_v6  ;;  %v327_v31 = vadd.f32 %v319_v8, %v305_v7  ;;  %v328_v32 = vadd.f32 %v319_v8, %v306_v9 }
  0x23   : > { %v369_v35 = vadd.f32 %v532_v17, %v321_v22  ;;  %v370_v37 = vadd.f32 %v533_v21, %v322_v24  ;;  %v371_v38 = vadd.f32 %v536_v23, %v323_v25  ;;  %v372_v40 = vadd.f32 %v537_v28, %v324_v27 }
  0x24   : > { %v373_v17 = vadd.f32 %v540_v30, %v325_v16  ;;  %v374_v10 = vadd.f32 %v541_v34, %v326_v29  ;;  %v375_v21 = vadd.f32 %v544_v36, %v327_v31  ;;  %v376_v42 = vadd.f32 %v545_v41, %v328_v32 }
  0x25   : > { %v385_v44 = vmax.f32 %v369_v35, 0.0  ;;  %v386_v23 = vmax.f32 %v370_v37, 0.0  ;;  %v387_v12 = vmax.f32 %v371_v38, 0.0  ;;  %v388_v28 = vmax.f32 %v372_v40, 0.0 }
  0x26   : > { %v389_v45 = vmax.f32 %v373_v17, 0.0  ;;  %v390_v47 = vmax.f32 %v374_v10, 0.0  ;;  %v391_v49 = vmax.f32 %v375_v21, 0.0  ;;  %v392_v14 = vmax.f32 %v376_v42, 0.0 }
  0x27   : > { %401 = vst [vmem:[%s740_s14] sm:$0xff] %v385_v44  ;;  %402 = vst [vmem:[%s740_s14 + $0x8] sm:$0xff] %v386_v23  ;;  %v329_v30 = vadd.f32 %v319_v8, %v307_v11  ;;  %v330_v34 = vadd.f32 %v319_v8, %v308_v13  ;;  %v331_v36 = vadd.f32 %v319_v8, %v309_v15 }
  0x28   : > { %403 = vst [vmem:[%s740_s14 + $0x10] sm:$0xff] %v387_v12  ;;  %404 = vst [vmem:[%s740_s14 + $0x18] sm:$0xff] %v388_v28  ;;  %v332_v41 = vadd.f32 %v319_v8, %v310_v18  ;;  %v333_v51 = vadd.f32 %v319_v8, %v311_v19  ;;  %v334_v52 = vadd.f32 %v319_v8, %v312_v20 }
  0x29   : > { %405 = vst [vmem:[%s740_s14 + $0x20] sm:$0xff] %v389_v45  ;;  %406 = vst [vmem:[%s740_s14 + $0x28] sm:$0xff] %v390_v47  ;;  %v313_v54 = vmul.f32 %v528_v60, %v707_v57  ;;  %v314_v56 = vmul.f32 %v529_v62, %v707_v57  ;;  %v377_v58 = vadd.f32 %v548_v43, %v329_v30 }
  0x2a   : > { %407 = vst [vmem:[%s740_s14 + $0x30] sm:$0xff] %v391_v49  ;;  %408 = vst [vmem:[%s740_s14 + $0x38] sm:$0xff] %v392_v14  ;;  %v378_v0 = vadd.f32 %v549_v46, %v330_v34  ;;  %v379_v1 = vadd.f32 %v552_v48, %v331_v36  ;;  %v380_v3 = vadd.f32 %v553_v53, %v332_v41 }
  0x2b   : > { %v381_v60 = vadd.f32 %v556_v55, %v333_v51  ;;  %v382_v43 = vadd.f32 %v557_v59, %v334_v52  ;;  %v335_v26 = vadd.f32 %v319_v8, %v313_v54  ;;  %v336_v57 = vadd.f32 %v319_v8, %v314_v56 }
  0x2c   : > { %v393_v46 = vmax.f32 %v377_v58, 0.0  ;;  %v394_v62 = vmax.f32 %v378_v0, 0.0  ;;  %v395_v48 = vmax.f32 %v379_v1, 0.0  ;;  %v396_v2 = vmax.f32 %v380_v3, 0.0 }
  0x2d   : > { %v397_v33 = vmax.f32 %v381_v60, 0.0  ;;  %v398_v4 = vmax.f32 %v382_v43, 0.0  ;;  %v383_v53 = vadd.f32 %v560_v61, %v335_v26  ;;  %v384_v55 = vadd.f32 %v561_v63, %v336_v57 }
  0x2e   : > { %409 = vst [vmem:[%s740_s14 + $0x40] sm:$0xff] %v393_v46  ;;  %410 = vst [vmem:[%s740_s14 + $0x48] sm:$0xff] %v394_v62 }
  0x2f   : > { %411 = vst [vmem:[%s740_s14 + $0x50] sm:$0xff] %v395_v48  ;;  %412 = vst [vmem:[%s740_s14 + $0x58] sm:$0xff] %v396_v2  ;;  %v399_v39 = vmax.f32 %v383_v53, 0.0  ;;  %v400_v59 = vmax.f32 %v384_v55, 0.0 }
  0x30   : > { %413 = vst [vmem:[%s740_s14 + $0x60] sm:$0xff] %v397_v33  ;;  %414 = vst [vmem:[%s740_s14 + $0x68] sm:$0xff] %v398_v4 }
  0x31   : > { %415 = vst [vmem:[%s740_s14 + $0x70] sm:$0xff] %v399_v39  ;;  %416 = vst [vmem:[%s740_s14 + $0x78] sm:$0xff] %v400_v59 }
  0x32 PF: > { %s15_s18 = sadd.s32 1, %s592_s18  }
  0x33   : > { %p12_p4 = scmp.ge.s32.totalorder %s15_s18, 6  }
  0x35   :  { %14 = sbr.rel (!%p12_p4) target bundleno = 1 (0x1), region = 73 }

// kernel: bottleneck_forward.5
= control target key start
LH: loop header
LB: loop body
LE: loop exit
PB: predicated region body
PF: predicated region fallthrough
CT: control target
= control target key end

     0   :  { %s4143_s21 = smov 0   ;;  %s6012_s0 = inlined_call_operand.vmem [shape: bf16[2,16,16,128], index: 0, kind: input, shape index: {}]   ;;  %s6013_s1 = inlined_call_operand.vmem [shape: f32[2,128], index: 1, kind: input, shape index: {}]   ;;  %s6014_s2 = inlined_call_operand.vmem [shape: f32[1,128], index: 2, kind: input, shape index: {}]   ;;  %s6015_s3 = inlined_call_operand.vmem [shape: f32[1,128], index: 3, kind: input, shape index: {}]   ;;  %s6016_s4 = inlined_call_operand.vmem [shape: bf16[1152,128], index: 4, kind: input, shape index: {}]   ;;  %s6017_s5 = inlined_call_operand.vmem [shape: bf16[2,16,16,128], index: 5, kind: output, shape index: {0}]   ;;  %s6018_s6 = inlined_call_operand.vmem [shape: f32[2,8,128], index: 6, kind: output, shape index: {1}]  }
   0x1 LB: > { %s3150_s22 = sadd.s32 4294967295, %s4105_s21   ;;  %p3154_p0 = scmp.ge.s32.totalorder %s4105_s21, 1  ;;  %s4105_s21 = sphi %s4143_s21, %s17_s21  }
   0x2   : > { %p215_p1 = scmp.lt.s32.totalorder %s4105_s21, 3 }
   0x4   : > { %p216_p2 = pnand %p3154_p0, %p215_p1 }
   0x6   : > { %219 = sbr.rel (%p216_p2) target bundleno = 589 (0x24d), region = 40 }
   0xd   : > { %v4019_v0 = vld [vmem:[%s6016_s4 + $0x40] sm:$0xff]   ;;  %v4107_v2 = vmov 0   ;;  %v4021_v3 = vld [vmem:[%s6016_s4 + $0x48] sm:$0xff]   ;;  %v4023_v5 = vld [vmem:[%s6016_s4 + $0x50] sm:$0xff]   ;;  %p249_p3 = scmp.lt.s32.totalorder %s3150_s22, 1  ;;  %vm464_vm0 = vcmask 1040384   ;;  %v341_v31 = vlaneseq }
   0xe   : > { %v4020_v1 = vld [vmem:[%s6016_s4] sm:$0xff]   ;;  %684 = vst [vmem:[#allocation2 + $0x8] sm:$0xff] %v4107_v2  ;;  %2020 = vmatprep.mubr.bf16.mxu0 %v4107_v2  ;;  %463 = vst [vmem:[#allocation2] sm:$0xff] %v4107_v2  ;;  %3474 = vmatprep.subr.bf16.mxu0 %v4019_v0  ;;  %v4022_v4 = vld [vmem:[%s6016_s4 + $0x8] sm:$0xff]   ;;  %vm465_vm1 = vsmask.f32 256 }
   0xf   : > { %700 = vst [vmem:[#allocation2 + $0x10] sm:$0xff] %v4107_v2  ;;  %1064 = vst [vmem:[#allocation2 + $0x468] sm:$0xff] %v4107_v2  ;;  %3994 = vmatprep.subr.bf16.mxu1 %v4019_v0  ;;  %3475 = vmatpush3.bf16.msra.mxu0 %v4020_v1  ;;  %v4024_v6 = vld [vmem:[%s6016_s4 + $0x10] sm:$0xff]   ;;  %v4025_v7 = vld [vmem:[%s6016_s4 + $0x58] sm:$0xff]   ;;  %s6115_s22 = smov (!%p249_p3, %s3150_s22), 1  ;;  %v342_v39 = vshrl.u32 %v341_v31, 7 }
  0x10   : > { %1174 = vst [vmem:[#allocation2 + $0x478] sm:$0xff] %v4107_v2  ;;  %4002 = vmatpush3.bf16.msra.mxu1 %v4020_v1  ;;  %3476 = vmatprep.subr.bf16.mxu0 %v4021_v3  ;;  %v4026_v8 = vld [vmem:[%s6016_s4 + $0x18] sm:$0xff]   ;;  %v4027_v9 = vld [vmem:[%s6016_s4 + $0x60] sm:$0xff]   ;;  %v4029_v11 = vld [vmem:[%s6016_s4 + $0x68] sm:$0xff]   ;;  %s3266_s7 = sshll.u32 %s6115_s22, 7  ;;  %vm636_vm3 = vcmask 1047552  }
  0x11   : > { %3995 = vmatprep.subr.bf16.mxu1 %v4021_v3  ;;  %v4028_v10 = vld [vmem:[%s6016_s4 + $0x20] sm:$0xff]   ;;  %vm4190_vm2 = vmand %vm464_vm0, %vm465_vm1  ;;  %v4030_v19 = vld [vmem:[%s6016_s4 + $0x28] sm:$0xff]   ;;  %s4232_s16 = scalar_lea.vmem %s6012_s0, %s3266_s7  ;;  %v343_v46 = vsub.s32 0, %v342_v39  ;;  %vm637_vm4 = vsmask.f32 7938  ;;  %vm701_vm5 = vcmask 1047559   ;;  %s5945_s13 = scalar_lea.vmem %s6017_s5, %s3266_s7 }
  0x12   : > { %v264_v13 = vld [vmem:[%s6013_s1] sm:$0x1]  ;;  %v266_v16 = vld [vmem:[%s6013_s1 + $0x1] sm:$0x1]  ;;  %v4031_v21 = vld [vmem:[%s6016_s4 + $0x70] sm:$0xff]   ;;  %s3159_s7 = sshll.u32 %s6115_s22, 3 }
  0x13   : > { %3477 = vmatpush3.bf16.msra.mxu0 %v4022_v4  ;;  %v4198_v15 = vmul.f32 0.001953125, %v264_v13  ;;  %v267_v18 = vmul.f32 0.001953125, %v266_v16  ;;  %v470_v23 = vld [vmem:[#allocation2 + $0x48] sm:$0x1]  ;;  %v503_v24 = vld [vmem:[#allocation2 + $0x360] sm:$0x1]  ;;  %vm4343_vm7 = vmand %vm636_vm3, %vm637_vm4  ;;  %s262_s17 = scalar_lea.vmem %s6018_s6, %s3159_s7 }
  0x14   : > { %4003 = vmatpush3.bf16.msra.mxu1 %v4022_v4  ;;  %3478 = vmatprep.subr.bf16.mxu0 %v4023_v5  ;;  %v471_v25 = vsel %vm4190_vm2, 0, %v470_v23  ;;  %v504_v26 = vsel %vm4190_vm2, 0, %v503_v24  ;;  %v4032_v27 = vld [vmem:[%s6016_s4 + $0x30] sm:$0xff]   ;;  %v4033_v28 = vld [vmem:[%s6016_s4 + $0x78] sm:$0xff]   ;;  %v4035_v32 = vld [vmem:[%s6016_s4 + $0xc0] sm:$0xff]   ;;  %vm3061_vm11 = vcmask 1041408  }
  0x15   : > { %3996 = vmatprep.subr.bf16.mxu1 %v4023_v5  ;;  %v467_v12 = vld [vmem:[#allocation2] sm:$0x1]  ;;  %v268_v20 = vmul.f32 %v4198_v15, %v4198_v15  ;;  %472 = vst [vmem:[#allocation2 + $0x48] sm:$0x1] %v471_v25  ;;  %505 = vst [vmem:[#allocation2 + $0x360] sm:$0x1] %v504_v26 }
  0x16   : > { %v468_v17 = vsel %vm4190_vm2, 0, %v467_v12  ;;  %v4034_v30 = vld [vmem:[%s6016_s4 + $0x38] sm:$0xff]   ;;  %v4036_v33 = vld [vmem:[%s6016_s4 + $0x140] sm:$0xff]   ;;  %v473_v34 = vld [vmem:[#allocation2 + $0x90] sm:$0x1] }
  0x17   : > { %3479 = vmatpush3.bf16.msra.mxu0 %v4024_v6  ;;  %469 = vst [vmem:[#allocation2] sm:$0x1] %v468_v17  ;;  %v269_v22 = vsub.f32 %v267_v18, %v268_v20  ;;  %v506_v35 = vld [vmem:[#allocation2 + $0x3a8] sm:$0x1]  ;;  %v474_v36 = vsel %vm4190_vm2, 0, %v473_v34  ;;  %v3301_v38 = vld [vmem:[%s4232_s16] sm:$0xff]  }
  0x18   : > { %4004 = vmatpush3.bf16.msra.mxu1 %v4024_v6  ;;  %3480 = vmatprep.subr.bf16.mxu0 %v4025_v7  ;;  %v507_v37 = vsel %vm4190_vm2, 0, %v506_v35  ;;  %v3454_v40 = vld [vmem:[%s4232_s16 + $0x58] sm:$0xff]   ;;  %v4038_v41 = vld [vmem:[%s6016_s4 + $0x100] sm:$0xff]   ;;  %475 = vst [vmem:[#allocation2 + $0x90] sm:$0x1] %v474_v36  ;;  %v4044_v44 = vld [vmem:[%s6016_s4 + $0x148] sm:$0xff]   ;;  %v3302_v49 = vunpack.c.l.bf16 %v3301_v38  ;;  %v3303_v50 = vunpack.c.h.bf16 %v3301_v38 }
  0x19   : > { %3997 = vmatprep.subr.bf16.mxu1 %v4025_v7  ;;  %v270_v29 = vadd.f32 1e-05, %v269_v22  ;;  %508 = vst [vmem:[#allocation2 + $0x3a8] sm:$0x1] %v507_v37  ;;  %v272_v43 = vld [vmem:[%s6014_s2] sm:$0x1]  ;;  %v3346_v51 = vunpack.c.l.bf16 %v3454_v40  ;;  %v3347_v55 = vunpack.c.h.bf16 %v3454_v40 }
  0x1a   : > { %v3444_v45 = vld [vmem:[%s4232_s16 + $0x8] sm:$0xff]   ;;  %v3455_v47 = vld [vmem:[%s4232_s16 + $0x60] sm:$0xff]   ;;  %v3445_v53 = vld [vmem:[%s4232_s16 + $0x10] sm:$0xff]   ;;  %vm702_vm6 = vsmask.f32 7966 }
  0x1b   : > { %3481 = vmatpush3.bf16.msra.mxu0 %v4026_v8  ;;  %4091 = vrsqrt.f32 %v270_v29  ;;  %v4046_v52 = vld [vmem:[%s6016_s4 + $0x108] sm:$0xff]   ;;  %v3306_v56 = vunpack.c.l.bf16 %v3444_v45  ;;  %v3307_v57 = vunpack.c.h.bf16 %v3444_v45  ;;  %v476_v59 = vld [vmem:[#allocation2 + $0xd8] sm:$0x1]  ;;  %v274_v60 = vld [vmem:[%s6015_s3] sm:$0x1]  ;;  %v3350_v61 = vunpack.c.l.bf16 %v3455_v47 }
  0x1c   : > { %4005 = vmatpush3.bf16.msra.mxu1 %v4026_v8  ;;  %3482 = vmatprep.subr.bf16.mxu0 %v4027_v9  ;;  %v3456_v58 = vld [vmem:[%s4232_s16 + $0x68] sm:$0xff]   ;;  %v3351_v62 = vunpack.c.h.bf16 %v3455_v47  ;;  %v3310_v63 = vunpack.c.l.bf16 %v3445_v53  ;;  %v477_v0 = vsel %vm4190_vm2, 0, %v476_v59  ;;  %v509_v1 = vld [vmem:[#allocation2 + $0x3f0] sm:$0x1]  ;;  %v3311_v4 = vunpack.c.h.bf16 %v3445_v53  ;;  %v4280_v17 = vld [vmem:[%s4232_s16 + $0x18] sm:$0xff]  }
  0x1d   : > { %3998 = vmatprep.subr.bf16.mxu1 %v4027_v9  ;;  %478 = vst [vmem:[#allocation2 + $0xd8] sm:$0x1] %v477_v0  ;;  %v510_v5 = vsel %vm4190_vm2, 0, %v509_v1  ;;  %v3354_v6 = vunpack.c.l.bf16 %v3456_v58  ;;  %v3355_v7 = vunpack.c.h.bf16 %v3456_v58  ;;  %v3314_v24 = vunpack.c.l.bf16 %v4280_v17  ;;  %v4052_v26 = vld [vmem:[%s6016_s4 + $0x150] sm:$0xff]   ;;  %v4037_v0 = vld [vmem:[%s6016_s4 + $0x80] sm:$0xff]   ;;  %vm4442_vm8 = vmand %vm701_vm5, %vm702_vm6 }
  0x1e   : > { %v1268_v42 = vld [vmem:[#allocation2] sm:$0xff]  ;;  %511 = vst [vmem:[#allocation2 + $0x3f0] sm:$0x1] %v510_v5  ;;  %v3315_v25 = vunpack.c.h.bf16 %v4280_v17  ;;  %v4054_v39 = vld [vmem:[%s6016_s4 + $0x110] sm:$0xff]   ;;  %vm797_vm9 = vsmask.f32 7424 }
  0x1f   : > { %3483 = vmatpush3.bf16.msra.mxu0 %v4028_v10  ;;  %v642_v1 = vld [vmem:[#allocation2 + $0x90] sm:$0xff]  ;;  %vm4567_vm10 = vmand %vm636_vm3, %vm797_vm9 }
  0x20   : > { %4006 = vmatpush3.bf16.msra.mxu1 %v4028_v10  ;;  %3484 = vmatprep.subr.bf16.mxu0 %v4029_v11 }
  0x21   : > { %3999 = vmatprep.subr.bf16.mxu1 %v4029_v11 }
  0x23   : > { %3485 = vmatpush3.bf16.msra.mxu0 %v4030_v19 }
  0x24   : > { %4007 = vmatpush3.bf16.msra.mxu1 %v4030_v19  ;;  %3486 = vmatprep.subr.bf16.mxu0 %v4031_v21 }
  0x25   : > { %4000 = vmatprep.subr.bf16.mxu1 %v4031_v21  ;;  %v4092_v48 = vpop.eup %4091 }
  0x26   : > { %v273_v54 = vmul.f32 %v4092_v48, %v272_v43 }
  0x27   : > { %3487 = vmatpush3.bf16.msra.mxu0 %v4032_v27 }
  0x28   : > { %4008 = vmatpush3.bf16.msra.mxu1 %v4032_v27  ;;  %3488 = vmatprep.subr.bf16.mxu0 %v4033_v28  ;;  %v275_v2 = vmul.f32 %v273_v54, %v4198_v15  ;;  %v4268_v3 = vrot.slane %v273_v54, %v343_v46 }
  0x29   : > { %4001 = vmatprep.subr.bf16.mxu1 %v4033_v28 }
  0x2a   : > { %v276_v8 = vsub.f32 %v274_v60, %v275_v2  ;;  %v345_v9 = vmul.f32 %v3302_v49, %v4268_v3  ;;  %v346_v10 = vmul.f32 %v3303_v50, %v4268_v3  ;;  %v367_v11 = vmul.f32 %v3346_v51, %v4268_v3  ;;  %v675_v2 = vld [vmem:[#allocation2 + $0x3a8] sm:$0xff] }
  0x2b   : > { %3489 = vmatpush3.bf16.msra.mxu0 %v4034_v30  ;;  %v368_v12 = vmul.f32 %v3347_v55, %v4268_v3  ;;  %v347_v13 = vmul.f32 %v3306_v56, %v4268_v3  ;;  %v348_v15 = vmul.f32 %v3307_v57, %v4268_v3  ;;  %v369_v16 = vmul.f32 %v3350_v61, %v4268_v3  ;;  %v639_v56 = vld [vmem:[#allocation2 + $0x48] sm:$0xff]  ;;  %v672_v57 = vld [vmem:[#allocation2 + $0x360] sm:$0xff] }
  0x2c   : > { %4009 = vmatpush3.bf16.msra.mxu1 %v4034_v30  ;;  %3698 = vmatprep.subr.bf16.mxu0 %v4036_v33  ;;  %v4282_v18 = vrot.slane %v276_v8, %v343_v46  ;;  %v370_v19 = vmul.f32 %v3351_v62, %v4268_v3  ;;  %v349_v20 = vmul.f32 %v3310_v63, %v4268_v3 }
  0x2d   : > { %3586 = vmatprep.subr.bf16.mxu1 %v4035_v32  ;;  %v350_v21 = vmul.f32 %v3311_v4, %v4268_v3  ;;  %v371_v22 = vmul.f32 %v3354_v6, %v4268_v3  ;;  %v372_v23 = vmul.f32 %v3355_v7, %v4268_v3  ;;  %v4039_v7 = vld [vmem:[%s6016_s4 + $0xc8] sm:$0xff]  }
  0x2e   : > { %2021 = vmatmul.mubr.bf16.vlgmr.msra.gmra.mrb[0].mxu0 %v1268_v42  ;;  %v383_v27 = vadd.f32 %v4282_v18, %v345_v9  ;;  %v384_v28 = vadd.f32 %v4282_v18, %v346_v10  ;;  %v405_v29 = vadd.f32 %v4282_v18, %v367_v11  ;;  %v406_v30 = vadd.f32 %v4282_v18, %v368_v12 }
  0x2f   : > { %3699 = vmatpush3.bf16.msra.mxu0 %v4038_v41  ;;  %v385_v31 = vadd.f32 %v4282_v18, %v347_v13  ;;  %v386_v32 = vadd.f32 %v4282_v18, %v348_v15  ;;  %v407_v33 = vadd.f32 %v4282_v18, %v369_v16  ;;  %v408_v34 = vadd.f32 %v4282_v18, %v370_v19  ;;  %v3457_v19 = vld [vmem:[%s4232_s16 + $0x70] sm:$0xff]  }
  0x30   : > { %3700 = vmatprep.subr.bf16.mxu0 %v4044_v44  ;;  %v415_v35 = vmax.f32 %v383_v27, 0.0  ;;  %v416_v36 = vmax.f32 %v384_v28, 0.0  ;;  %v437_v37 = vmax.f32 %v405_v29, 0.0  ;;  %v438_v38 = vmax.f32 %v406_v30, 0.0  ;;  %v512_v27 = vld [vmem:[#allocation2 + $0x438] sm:$0x1] }
  0x31   : > { %v417_v40 = vmax.f32 %v385_v31, 0.0  ;;  %v418_v41 = vmax.f32 %v386_v32, 0.0  ;;  %v439_v42 = vmax.f32 %v407_v33, 0.0  ;;  %v440_v43 = vmax.f32 %v408_v34, 0.0  ;;  %v4040_v29 = vld [vmem:[%s6016_s4 + $0x88] sm:$0xff]   ;;  %v4059_v30 = vld [vmem:[%s6016_s4 + $0x158] sm:$0xff]  }
  0x32   : > { %v4305_v44 = vpack.c.bf16 %v416_v36, %v415_v35  ;;  %v4307_v45 = vpack.c.bf16 %v438_v38, %v437_v37  ;;  %v387_v46 = vadd.f32 %v4282_v18, %v349_v20  ;;  %v388_v47 = vadd.f32 %v4282_v18, %v350_v21  ;;  %v479_v20 = vld [vmem:[#allocation2 + $0x120] sm:$0x1]  ;;  %v4060_v31 = vld [vmem:[%s6016_s4 + $0x118] sm:$0xff]   ;;  %v4041_v32 = vld [vmem:[%s6016_s4 + $0xd0] sm:$0xff]  }
  0x33   : > { %3701 = vmatpush3.bf16.msra.mxu0 %v4046_v52  ;;  %v4311_v48 = vpack.c.bf16 %v418_v41, %v417_v40  ;;  %v4313_v49 = vpack.c.bf16 %v440_v43, %v439_v42  ;;  %v409_v50 = vadd.f32 %v4282_v18, %v371_v22  ;;  %v410_v51 = vadd.f32 %v4282_v18, %v372_v23  ;;  %v645_v38 = vld [vmem:[#allocation2 + $0xd8] sm:$0xff]  ;;  %v3447_v42 = vld [vmem:[%s4232_s16 + $0x20] sm:$0xff]  }
  0x34   : > { %3702 = vmatprep.subr.bf16.mxu0 %v4052_v26  ;;  %2028 = vmatprep.mubr.bf16.mxu0 %v4305_v44  ;;  %948 = vst [vmem:[#allocation2 + $0x20] sm:$0xff] %v4305_v44  ;;  %959 = vst [vmem:[#allocation2 + $0x338] sm:$0xff] %v4307_v45  ;;  %v516_v52 = vshrl.u32 %v4305_v44, 16  ;;  %v519_v53 = vshll.u32 %v4305_v44, 16  ;;  %v6025_v54 = vshrl.u32 %v4307_v45, 16  ;;  %v6026_v55 = vshll.u32 %v4307_v45, 16 }
  0x35   : > { %2116 = vmatprep.mubr.bf16.mxu1 %v4307_v45  ;;  %1169 = vst [vmem:[#allocation2 + $0x308] sm:$0xff] %v4307_v45  ;;  %949 = vst [vmem:[#allocation2 + $0x68] sm:$0xff] %v4311_v48  ;;  %v523_v58 = vshrl.u32 %v4311_v48, 16  ;;  %v526_v59 = vshll.u32 %v4311_v48, 16  ;;  %v6022_v60 = vshrl.u32 %v4313_v49, 16  ;;  %v6024_v61 = vshll.u32 %v4313_v49, 16 }
  0x36   : > { %1159 = vst [vmem:[#allocation2 + $0x38] sm:$0xff] %v4311_v48  ;;  %960 = vst [vmem:[#allocation2 + $0x380] sm:$0xff] %v4313_v49  ;;  %v518_v62 = vrot.slane %v516_v52, 7  ;;  %v595_v63 = vrot.slane %v6025_v54, 7  ;;  %v419_v4 = vmax.f32 %v387_v46, 0.0  ;;  %v420_v5 = vmax.f32 %v388_v47, 0.0 }
  0x37   : > { %3703 = vmatpush3.bf16.msra.mxu0 %v4054_v39  ;;  %1170 = vst [vmem:[#allocation2 + $0x350] sm:$0xff] %v4313_v49  ;;  %v525_v8 = vrot.slane %v523_v58, 7  ;;  %v602_v9 = vrot.slane %v6022_v60, 7  ;;  %v441_v10 = vmax.f32 %v409_v50, 0.0  ;;  %v442_v11 = vmax.f32 %v410_v51, 0.0  ;;  %v678_v47 = vld [vmem:[#allocation2 + $0x3f0] sm:$0xff] }
  0x38   : > { %v4356_v12 = vor.u32 %v519_v53, %v518_v62  ;;  %v4360_v13 = vor.u32 %v6026_v55, %v595_v63  ;;  %v4362_v15 = vpack.c.bf16 %v420_v5, %v419_v4  ;;  %v351_v16 = vmul.f32 %v3314_v24, %v4268_v3  ;;  %v844_v43 = vld [vmem:[#allocation2 + $0x18] sm:$0x1]  ;;  %v4042_v62 = vld [vmem:[%s6016_s4 + $0x90] sm:$0xff]   ;;  %3704 = vmatprep.subr.bf16.mxu0 %v4059_v30 }
  0x39   : > { %v4370_v21 = vor.u32 %v526_v59, %v525_v8  ;;  %v4374_v22 = vor.u32 %v6024_v61, %v602_v9  ;;  %v4376_v23 = vpack.c.bf16 %v442_v11, %v441_v10  ;;  %v352_v26 = vmul.f32 %v3315_v25, %v4268_v3  ;;  %v704_v5 = vld [vmem:[#allocation2 + $0x10] sm:$0x80]  ;;  %v485_v30 = vld [vmem:[#allocation2 + $0x1b0] sm:$0x1] }
  0x3a   : > { %v640_v24 = vsel %vm4343_vm7, %v4356_v12, %v639_v56  ;;  %v673_v28 = vsel %vm4343_vm7, %v4360_v13, %v672_v57  ;;  %950 = vst [vmem:[#allocation2 + $0xb0] sm:$0xff] %v4362_v15  ;;  %1160 = vst [vmem:[#allocation2 + $0x80] sm:$0xff] %v4362_v15  ;;  %v530_v17 = vshrl.u32 %v4362_v15, 16  ;;  %v533_v25 = vshll.u32 %v4362_v15, 16  ;;  %v482_v57 = vld [vmem:[#allocation2 + $0x168] sm:$0x1] }
  0x3b   : > { %641 = vst [vmem:[#allocation2 + $0x48] sm:$0xff] %v640_v24  ;;  %2029 = vmatmul.mubr.bf16.gmra.mrb[4].mxu0 %v640_v24  ;;  %674 = vst [vmem:[#allocation2 + $0x360] sm:$0xff] %v673_v28  ;;  %2117 = vmatmul.mubr.bf16.vlgmr.msra.gmra.mrb[0].mxu1 %v673_v28  ;;  %v4406_v33 = vsel %vm4343_vm7, %v4370_v21, %v642_v1  ;;  %v4411_v34 = vsel %vm4343_vm7, %v4374_v22, %v675_v2  ;;  %v6021_v35 = vshrl.u32 %v4376_v23, 16  ;;  %v3448_v28 = vld [vmem:[%s4232_s16 + $0x28] sm:$0xff]  }
  0x3c   : > { %961 = vst [vmem:[#allocation2 + $0x3c8] sm:$0xff] %v4376_v23  ;;  %1171 = vst [vmem:[#allocation2 + $0x398] sm:$0xff] %v4376_v23  ;;  %v6023_v36 = vshll.u32 %v4376_v23, 16  ;;  %3587 = vmatpush3.bf16.msra.mxu1 %v4037_v0  ;;  %2036 = vmatprep.mubr.bf16.mxu0 %v4311_v48  ;;  %v532_v37 = vrot.slane %v530_v17, 7  ;;  %v389_v39 = vadd.f32 %v4282_v18, %v351_v16  ;;  %v3358_v41 = vunpack.c.l.bf16 %v3457_v19  ;;  %v847_v16 = vld [vmem:[#allocation2 + $0x60] sm:$0x1] }
  0x3d   : > { %644 = vst [vmem:[#allocation2 + $0x90] sm:$0xff] %v4406_v33  ;;  %677 = vst [vmem:[#allocation2 + $0x3a8] sm:$0xff] %v4411_v34  ;;  %v390_v40 = vadd.f32 %v4282_v18, %v352_v26  ;;  %3588 = vmatprep.subr.bf16.mxu1 %v4039_v7  ;;  %2124 = vmatprep.mubr.bf16.mxu1 %v4313_v49  ;;  %v609_v46 = vrot.slane %v6021_v35, 7  ;;  %v3359_v50 = vunpack.c.h.bf16 %v3457_v19  ;;  %v480_v51 = vsel %vm4190_vm2, 0, %v479_v20  ;;  %v4043_v7 = vld [vmem:[%s6016_s4 + $0xd8] sm:$0xff]   ;;  %v4061_v19 = vld [vmem:[%s6016_s4 + $0x160] sm:$0xff]  }
  0x3e   : > { %v513_v56 = vsel %vm4190_vm2, 0, %v512_v27  ;;  %v4437_v63 = vor.u32 %v533_v25, %v532_v37  ;;  %v421_v0 = vmax.f32 %v389_v39, 0.0  ;;  %v373_v2 = vmul.f32 %v3358_v41, %v4268_v3  ;;  %481 = vst [vmem:[#allocation2 + $0x120] sm:$0x1] %v480_v51  ;;  %3705 = vmatpush3.bf16.msra.mxu0 %v4060_v31  ;;  %v707_v39 = vld [vmem:[#allocation2 + $0x58] sm:$0x80] }
  0x3f   : > { %v422_v1 = vmax.f32 %v390_v40, 0.0  ;;  %514 = vst [vmem:[#allocation2 + $0x438] sm:$0x1] %v513_v56  ;;  %v4451_v8 = vor.u32 %v6023_v36, %v609_v46  ;;  %v374_v9 = vmul.f32 %v3359_v50, %v4268_v3  ;;  %v3318_v10 = vunpack.c.l.bf16 %v3447_v42  ;;  %3706 = vmatprep.subr.bf16.mxu0 %v4061_v19  ;;  %v4045_v56 = vld [vmem:[%s6016_s4 + $0x98] sm:$0xff]   ;;  %v4058_v35 = vld [vmem:[%s6016_s4 + $0x180] sm:$0xff]  }
  0x40   : > { %v3319_v11 = vunpack.c.h.bf16 %v3447_v42  ;;  %3589 = vmatpush3.bf16.msra.mxu1 %v4040_v29  ;;  %v4460_v20 = vsel %vm4343_vm7, %v4437_v63, %v645_v38  ;;  %v411_v27 = vadd.f32 %v4282_v18, %v373_v2  ;;  %v845_v24 = vsel %vm4190_vm2, 0, %v844_v43  ;;  %v4063_v43 = vld [vmem:[%s6016_s4 + $0x120] sm:$0xff]   ;;  %v4055_v48 = vld [vmem:[%s6016_s4 + $0xf8] sm:$0xff]  }
  0x41   : > { %v4462_v26 = vpack.c.bf16 %v422_v1, %v421_v0  ;;  %3590 = vmatprep.subr.bf16.mxu1 %v4041_v32  ;;  %647 = vst [vmem:[#allocation2 + $0xd8] sm:$0xff] %v4460_v20  ;;  %v4472_v29 = vsel %vm4343_vm7, %v4451_v8, %v678_v47  ;;  %v412_v31 = vadd.f32 %v4282_v18, %v374_v9  ;;  %846 = vst [vmem:[#allocation2 + $0x18] sm:$0x1] %v845_v24  ;;  %v4047_v1 = vld [vmem:[%s6016_s4 + $0xe0] sm:$0xff]   ;;  %v1275_v14 = vld [vmem:[#allocation2 + $0x38] sm:$0xff] }
  0x42   : > { %v353_v37 = vmul.f32 %v3318_v10, %v4268_v3  ;;  %v354_v38 = vmul.f32 %v3319_v11, %v4268_v3  ;;  %680 = vst [vmem:[#allocation2 + $0x3f0] sm:$0xff] %v4472_v29  ;;  %v443_v32 = vmax.f32 %v411_v27, 0.0  ;;  %v483_v42 = vsel %vm4190_vm2, 0, %v482_v57  ;;  %3707 = vmatpush3.bf16.msra.mxu0 %v4063_v43  ;;  %v710_v43 = vld [vmem:[#allocation2 + $0xa0] sm:$0x80] }
  0x43   : > { %951 = vst [vmem:[#allocation2 + $0xf8] sm:$0xff] %v4462_v26  ;;  %1161 = vst [vmem:[#allocation2 + $0xc8] sm:$0xff] %v4462_v26  ;;  %v537_v40 = vshrl.u32 %v4462_v26, 16  ;;  %v540_v41 = vshll.u32 %v4462_v26, 16  ;;  %2037 = vmatmul.mubr.bf16.gmra.mrb[8].mxu0 %v4406_v33  ;;  %2125 = vmatmul.mubr.bf16.gmra.mrb[4].mxu1 %v4411_v34  ;;  %v444_v46 = vmax.f32 %v412_v31, 0.0  ;;  %v705_v51 = vsel %vm4442_vm8, 0, %v704_v5 }
  0x44   : > { %v391_v47 = vadd.f32 %v4282_v18, %v353_v37  ;;  %v392_v50 = vadd.f32 %v4282_v18, %v354_v38  ;;  %484 = vst [vmem:[#allocation2 + $0x168] sm:$0x1] %v483_v42  ;;  %3591 = vmatpush3.bf16.msra.mxu1 %v4042_v62  ;;  %2044 = vmatprep.mubr.bf16.mxu0 %v4362_v15  ;;  %706 = vst [vmem:[#allocation2 + $0x10] sm:$0x80] %v705_v51  ;;  %v3322_v34 = vunpack.c.l.bf16 %v3448_v28  ;;  %v4065_v62 = vld [vmem:[%s6016_s4 + $0x168] sm:$0xff]  }
  0x45   : > { %v539_v33 = vrot.slane %v537_v40, 7  ;;  %v3323_v57 = vunpack.c.h.bf16 %v3448_v28  ;;  %v848_v0 = vsel %vm4190_vm2, 0, %v847_v16  ;;  %3592 = vmatprep.subr.bf16.mxu1 %v4043_v7  ;;  %2132 = vmatprep.mubr.bf16.mxu1 %v4376_v23  ;;  %v4508_v2 = vpack.c.bf16 %v444_v46, %v443_v32  ;;  %v648_v5 = vld [vmem:[#allocation2 + $0x120] sm:$0xff]  ;;  %v3449_v16 = vld [vmem:[%s4232_s16 + $0x30] sm:$0xff]   ;;  %v850_v28 = vld [vmem:[#allocation2 + $0xa8] sm:$0x1] }
  0x46   : > { %v423_v9 = vmax.f32 %v391_v47, 0.0  ;;  %v424_v10 = vmax.f32 %v392_v50, 0.0  ;;  %849 = vst [vmem:[#allocation2 + $0x60] sm:$0x1] %v848_v0  ;;  %v486_v11 = vsel %vm4190_vm2, 0, %v485_v30  ;;  %v355_v7 = vmul.f32 %v3322_v34, %v4268_v3  ;;  %v4066_v31 = vld [vmem:[%s6016_s4 + $0x128] sm:$0xff]   ;;  %3708 = vmatprep.subr.bf16.mxu0 %v4065_v62 }
  0x47   : > { %v4515_v19 = vor.u32 %v540_v41, %v539_v33  ;;  %v356_v27 = vmul.f32 %v3323_v57, %v4268_v3  ;;  %487 = vst [vmem:[#allocation2 + $0x1b0] sm:$0x1] %v486_v11  ;;  %v708_v24 = vsel %vm4442_vm8, 0, %v707_v39  ;;  %v4048_v30 = vld [vmem:[%s6016_s4 + $0xa0] sm:$0xff]   ;;  %962 = vst [vmem:[#allocation2 + $0x410] sm:$0xff] %v4508_v2  ;;  %v6019_v37 = vshrl.u32 %v4508_v2, 16  ;;  %3709 = vmatpush3.bf16.msra.mxu0 %v4066_v31 }
  0x48   : > { %1172 = vst [vmem:[#allocation2 + $0x3e0] sm:$0xff] %v4508_v2  ;;  %v6020_v38 = vshll.u32 %v4508_v2, 16  ;;  %v4531_v32 = vpack.c.bf16 %v424_v10, %v423_v9  ;;  %709 = vst [vmem:[#allocation2 + $0x58] sm:$0x80] %v708_v24  ;;  %v752_v39 = vrot.slane %v519_v53, 1  ;;  %3593 = vmatpush3.bf16.msra.mxu1 %v4045_v56  ;;  %v900_v47 = vld [vmem:[#allocation2 + $0x18] sm:$0xff]  ;;  %v393_v50 = vadd.f32 %v4282_v18, %v355_v7 }
  0x49   : > { %v488_v42 = vld [vmem:[#allocation2 + $0x1f8] sm:$0x1]  ;;  %v4538_v46 = vsel %vm4343_vm7, %v4515_v19, %v648_v5  ;;  %v394_v51 = vadd.f32 %v4282_v18, %v356_v27  ;;  %v3326_v33 = vunpack.c.l.bf16 %v3449_v16  ;;  %3594 = vmatprep.subr.bf16.mxu1 %v4047_v1  ;;  %v4049_v53 = vld [vmem:[%s6016_s4 + $0xe8] sm:$0xff]   ;;  %v616_v56 = vrot.slane %v6019_v37, 7  ;;  %v4069_v31 = vld [vmem:[%s6016_s4 + $0x170] sm:$0xff]  }
  0x4a   : > { %650 = vst [vmem:[#allocation2 + $0x120] sm:$0xff] %v4538_v46  ;;  %952 = vst [vmem:[#allocation2 + $0x140] sm:$0xff] %v4531_v32  ;;  %v4553_v34 = vsel %vm4343_vm7, %v4356_v12, %v900_v47  ;;  %v544_v57 = vshrl.u32 %v4531_v32, 16  ;;  %v547_v0 = vshll.u32 %v4531_v32, 16  ;;  %v4050_v62 = vld [vmem:[%s6016_s4 + $0xa8] sm:$0xff]   ;;  %v681_v1 = vld [vmem:[#allocation2 + $0x438] sm:$0xff]  ;;  %v4563_v10 = vor.u32 %v752_v39, %v516_v52  ;;  %3710 = vmatprep.subr.bf16.mxu0 %v4069_v31 }
  0x4b   : > { %1162 = vst [vmem:[#allocation2 + $0x110] sm:$0xff] %v4531_v32  ;;  %902 = vst [vmem:[#allocation2 + $0x18] sm:$0xff] %v4553_v34  ;;  %v425_v5 = vmax.f32 %v393_v50, 0.0  ;;  %v426_v9 = vmax.f32 %v394_v51, 0.0  ;;  %v3327_v11 = vunpack.c.h.bf16 %v3449_v16  ;;  %v4572_v7 = vld [vmem:[%s4232_s16 + $0x38] sm:$0xff]   ;;  %2045 = vmatmul.mubr.bf16.gmra.mrb[12].mxu0 %v4460_v20  ;;  %2133 = vmatmul.mubr.bf16.gmra.mrb[8].mxu1 %v4472_v29  ;;  %v4578_v27 = vor.u32 %v6020_v38, %v616_v56  ;;  %v651_v52 = vld [vmem:[#allocation2 + $0x168] sm:$0xff] }
  0x4c   : > { %v546_v44 = vrot.slane %v544_v57, 7  ;;  %v357_v24 = vmul.f32 %v3326_v33, %v4268_v3  ;;  %v851_v16 = vsel %vm4190_vm2, 0, %v850_v28  ;;  %3595 = vmatpush3.bf16.msra.mxu1 %v4048_v30  ;;  %2052 = vmatprep.mubr.bf16.mxu0 %v4462_v26  ;;  %v489_v47 = vsel %vm4190_vm2, 0, %v488_v42  ;;  %v853_v28 = vld [vmem:[#allocation2 + $0xf0] sm:$0x1]  ;;  %v3451_v38 = vld [vmem:[%s4232_s16 + $0x40] sm:$0xff]  }
  0x4d   : > { %v4589_v20 = vpack.c.bf16 %v426_v9, %v425_v5  ;;  %v903_v29 = vld [vmem:[#allocation2 + $0x60] sm:$0xff]  ;;  %v358_v39 = vmul.f32 %v3327_v11, %v4268_v3  ;;  %852 = vst [vmem:[#allocation2 + $0xa8] sm:$0x1] %v851_v16  ;;  %v711_v50 = vsel %vm4442_vm8, 0, %v710_v43  ;;  %v4070_v51 = vld [vmem:[%s6016_s4 + $0x130] sm:$0xff]   ;;  %3596 = vmatprep.subr.bf16.mxu1 %v4049_v53  ;;  %2140 = vmatprep.mubr.bf16.mxu1 %v4508_v2  ;;  %v754_v53 = vrot.slane %v526_v59, 1 }
  0x4e   : > { %v4051_v30 = vld [vmem:[%s6016_s4 + $0xf0] sm:$0xff]   ;;  %v682_v33 = vsel %vm4343_vm7, %v4578_v27, %v681_v1  ;;  %v4608_v42 = vor.u32 %v547_v0, %v546_v44  ;;  %v4613_v43 = vsel %vm4343_vm7, %v4370_v21, %v903_v29  ;;  %490 = vst [vmem:[#allocation2 + $0x1f8] sm:$0x1] %v489_v47  ;;  %712 = vst [vmem:[#allocation2 + $0xa0] sm:$0x80] %v711_v50  ;;  %3711 = vmatpush3.bf16.msra.mxu0 %v4070_v51  ;;  %v1293_v12 = vld [vmem:[#allocation2 + $0xc8] sm:$0xff] }
  0x4f   : > { %v491_v56 = vld [vmem:[#allocation2 + $0x240] sm:$0x1]  ;;  %v713_v5 = vld [vmem:[#allocation2 + $0xe8] sm:$0x80]  ;;  %683 = vst [vmem:[#allocation2 + $0x438] sm:$0xff] %v682_v33  ;;  %v4053_v1 = vld [vmem:[%s6016_s4 + $0xb0] sm:$0xff]   ;;  %v395_v59 = vadd.f32 %v4282_v18, %v357_v24  ;;  %v396_v16 = vadd.f32 %v4282_v18, %v358_v39  ;;  %v4639_v50 = vor.u32 %v754_v53, %v523_v58  ;;  %v3330_v24 = vunpack.c.l.bf16 %v4572_v7 }
  0x50   : > { %6061 = vst [vmem:[#allocation3_spill] sm:$0xff] %v4608_v42  ;;  %953 = vst [vmem:[#allocation2 + $0x188] sm:$0xff] %v4589_v20  ;;  %v6033_v9 = vshrl.u32 %v4589_v20, 16  ;;  %v554_v11 = vshll.u32 %v4589_v20, 16  ;;  %v799_v44 = vld [vmem:[#allocation2 + $0x58] sm:$0xff]  ;;  %v4630_v29 = vsel %vm4343_vm7, %v4608_v42, %v651_v52  ;;  %3597 = vmatpush3.bf16.msra.mxu1 %v4050_v62  ;;  %v654_v58 = vld [vmem:[#allocation2 + $0x1b0] sm:$0xff] }
  0x51   : > { %1163 = vst [vmem:[#allocation2 + $0x158] sm:$0xff] %v4589_v20  ;;  %905 = vst [vmem:[#allocation2 + $0x60] sm:$0xff] %v4613_v43  ;;  %v4635_v47 = vsel %vm4567_vm10, %v4563_v10, %v799_v44  ;;  %v856_v37 = vld [vmem:[#allocation2 + $0x138] sm:$0x1]  ;;  %v427_v31 = vmax.f32 %v395_v59, 0.0  ;;  %v428_v39 = vmax.f32 %v396_v16, 0.0  ;;  %v3331_v44 = vunpack.c.h.bf16 %v4572_v7  ;;  %3598 = vmatprep.subr.bf16.mxu1 %v4051_v30 }
  0x52   : > { %653 = vst [vmem:[#allocation2 + $0x168] sm:$0xff] %v4630_v29  ;;  %v553_v52 = vrot.slane %v6033_v9, 7  ;;  %801 = vst [vmem:[#allocation2 + $0x58] sm:$0xff] %v4635_v47  ;;  %v359_v62 = vmul.f32 %v3330_v24, %v4268_v3  ;;  %v854_v51 = vsel %vm4190_vm2, 0, %v853_v28  ;;  %v492_v53 = vsel %vm4190_vm2, 0, %v491_v56  ;;  %v4056_v7 = vld [vmem:[%s6016_s4 + $0xb8] sm:$0xff]  }
  0x53   : > { %v714_v59 = vsel %vm4442_vm8, 0, %v713_v5  ;;  %v4665_v16 = vpack.c.bf16 %v428_v39, %v427_v31  ;;  %v360_v24 = vmul.f32 %v3331_v44, %v4268_v3  ;;  %855 = vst [vmem:[#allocation2 + $0xf0] sm:$0x1] %v854_v51  ;;  %493 = vst [vmem:[#allocation2 + $0x240] sm:$0x1] %v492_v53  ;;  %v756_v28 = vrot.slane %v533_v25, 1  ;;  %2053 = vmatmul.mubr.bf16.gmra.mrb[16].mxu0 %v4538_v46 }
  0x54   : > { %v4663_v30 = vor.u32 %v554_v11, %v553_v52  ;;  %715 = vst [vmem:[#allocation2 + $0xe8] sm:$0x80] %v714_v59  ;;  %v494_v56 = vld [vmem:[#allocation2 + $0x288] sm:$0x1]  ;;  %v4073_v5 = vld [vmem:[%s6016_s4 + $0x178] sm:$0xff]   ;;  %2141 = vmatmul.mubr.bf16.gmra.mrb[12].mxu1 %v682_v33  ;;  %v397_v31 = vadd.f32 %v4282_v18, %v359_v62  ;;  %v3334_v39 = vunpack.c.l.bf16 %v3451_v38  ;;  %v3335_v44 = vunpack.c.h.bf16 %v3451_v38  ;;  %2060 = vmatprep.mubr.bf16.mxu0 %v4531_v32 }
  0x55   : > { %v906_v52 = vld [vmem:[#allocation2 + $0xa8] sm:$0xff]  ;;  %v857_v51 = vsel %vm4190_vm2, 0, %v856_v37  ;;  %v716_v53 = vld [vmem:[#allocation2 + $0x130] sm:$0x80]  ;;  %3599 = vmatpush3.bf16.msra.mxu1 %v4053_v1  ;;  %691 = vst [vmem:[#allocation2 + $0x200] sm:$0xff] %v4665_v16  ;;  %1164 = vst [vmem:[#allocation2 + $0x1a0] sm:$0xff] %v4665_v16  ;;  %2181 = vmatprep.mubr.bf16.mxu1 %v4553_v34  ;;  %v398_v59 = vadd.f32 %v4282_v18, %v360_v24 }
  0x56   : > { %6062 = vst [vmem:[#allocation4_spill] sm:$0xff] %v4663_v30  ;;  %v4681_v25 = vsel %vm4343_vm7, %v4663_v30, %v654_v58  ;;  %v4688_v38 = vsel %vm4343_vm7, %v4437_v63, %v906_v52  ;;  %v6027_v37 = vshrl.u32 %v4665_v16, 16  ;;  %v6030_v46 = vshll.u32 %v4665_v16, 16  ;;  %v802_v33 = vld [vmem:[#allocation2 + $0xa0] sm:$0xff]  ;;  %858 = vst [vmem:[#allocation2 + $0x138] sm:$0x1] %v857_v51  ;;  %3600 = vmatprep.subr.bf16.mxu1 %v4055_v48 }
  0x57   : > { %v3452_v1 = vld [vmem:[%s4232_s16 + $0x48] sm:$0xff]   ;;  %v4057_v58 = vld [vmem:[%s6016_s4 + $0x1c0] sm:$0xff]   ;;  %656 = vst [vmem:[#allocation2 + $0x1b0] sm:$0xff] %v4681_v25  ;;  %908 = vst [vmem:[#allocation2 + $0xa8] sm:$0xff] %v4688_v38  ;;  %v4702_v62 = vsel %vm4567_vm10, %v4639_v50, %v802_v33  ;;  %v429_v52 = vmax.f32 %v397_v31, 0.0  ;;  %v4707_v48 = vor.u32 %v756_v28, %v530_v17  ;;  %v361_v24 = vmul.f32 %v3334_v39, %v4268_v3 }
  0x58   : > { %v4074_v34 = vld [vmem:[%s6016_s4 + $0x138] sm:$0xff]   ;;  %v1270_v51 = vld [vmem:[#allocation2 + $0x10] sm:$0xff]  ;;  %v560_v33 = vrot.slane %v6027_v37, 7  ;;  %804 = vst [vmem:[#allocation2 + $0xa0] sm:$0xff] %v4702_v62  ;;  %v362_v15 = vmul.f32 %v3335_v44, %v4268_v3  ;;  %v495_v17 = vsel %vm4190_vm2, 0, %v494_v56  ;;  %3712 = vmatprep.subr.bf16.mxu0 %v4073_v5  ;;  %v4062_v31 = vld [vmem:[%s6016_s4 + $0x1c8] sm:$0xff]   ;;  %v3338_v54 = vunpack.c.l.bf16 %v3452_v1 }
  0x59   : > { %v859_v28 = vld [vmem:[#allocation2 + $0x180] sm:$0x1]  ;;  %v657_v60 = vld [vmem:[#allocation2 + $0x1f8] sm:$0xff]  ;;  %v430_v36 = vmax.f32 %v398_v59, 0.0  ;;  %496 = vst [vmem:[#allocation2 + $0x288] sm:$0x1] %v495_v17  ;;  %3713 = vmatpush3.bf16.msra.mxu0 %v4074_v34  ;;  %3601 = vmatpush3.bf16.msra.mxu1 %v4056_v7  ;;  %v399_v5 = vadd.f32 %v4282_v18, %v361_v24  ;;  %v3339_v59 = vunpack.c.h.bf16 %v3452_v1 }
  0x5a   : > { %v717_v61 = vsel %vm4442_vm8, 0, %v716_v53  ;;  %v758_v39 = vrot.slane %v540_v41, 1  ;;  %v497_v44 = vld [vmem:[#allocation2 + $0x2d0] sm:$0x1]  ;;  %v4731_v56 = vor.u32 %v6030_v46, %v560_v33  ;;  %v400_v55 = vadd.f32 %v4282_v18, %v362_v15  ;;  %3810 = vmatprep.subr.bf16.mxu1 %v4057_v58  ;;  %v719_v24 = vld [vmem:[#allocation2 + $0x178] sm:$0x80] }
  0x5b   : > { %718 = vst [vmem:[#allocation2 + $0x130] sm:$0x80] %v717_v61  ;;  %v4735_v53 = vpack.c.bf16 %v430_v36, %v429_v52  ;;  %v909_v17 = vld [vmem:[#allocation2 + $0xf0] sm:$0xff]  ;;  %v805_v41 = vld [vmem:[#allocation2 + $0xe8] sm:$0xff]  ;;  %v363_v7 = vmul.f32 %v3338_v54, %v4268_v3  ;;  %v860_v33 = vsel %vm4190_vm2, 0, %v859_v28  ;;  %v431_v54 = vmax.f32 %v399_v5, 0.0  ;;  %2061 = vmatmul.mubr.bf16.gmra.mrb[20].mxu0 %v4630_v29 }
  0x5c   : > { %6063 = vst [vmem:[#allocation5_spill] sm:$0xff] %v4731_v56  ;;  %v4739_v34 = vor.u32 %v758_v39, %v537_v40  ;;  %v4747_v61 = vsel %vm4343_vm7, %v4731_v56, %v657_v60  ;;  %v4752_v36 = vsel %vm4343_vm7, %v4515_v19, %v909_v17  ;;  %v4757_v26 = vsel %vm4567_vm10, %v4707_v48, %v805_v41  ;;  %v3453_v40 = vld [vmem:[%s4232_s16 + $0x50] sm:$0xff]   ;;  %v862_v29 = vld [vmem:[#allocation2 + $0x1c8] sm:$0x1]  ;;  %v964_v46 = vld [vmem:[#allocation2 + $0x28] sm:$0x80] }
  0x5d   : > { %861 = vst [vmem:[#allocation2 + $0x180] sm:$0x1] %v860_v33  ;;  %2182 = vmatmul.mubr.bf16.vlgmr.msra.gmra.mrb[16].mxu1 %v1270_v51  ;;  %659 = vst [vmem:[#allocation2 + $0x1f8] sm:$0xff] %v4747_v61  ;;  %v6028_v60 = vshrl.u32 %v4735_v53, 16  ;;  %v6029_v1 = vshll.u32 %v4735_v53, 16  ;;  %v432_v58 = vmax.f32 %v400_v55, 0.0  ;;  %v364_v15 = vmul.f32 %v3339_v59, %v4268_v3  ;;  %2068 = vmatprep.mubr.bf16.mxu0 %v4589_v20 }
  0x5e   : > { %692 = vst [vmem:[#allocation2 + $0x248] sm:$0xff] %v4735_v53  ;;  %1165 = vst [vmem:[#allocation2 + $0x1e8] sm:$0xff] %v4735_v53  ;;  %v912_v52 = vld [vmem:[#allocation2 + $0x138] sm:$0xff]  ;;  %3811 = vmatpush3.bf16.msra.mxu1 %v4058_v35  ;;  %v4064_v51 = vld [vmem:[%s6016_s4 + $0x188] sm:$0xff]   ;;  %v401_v39 = vadd.f32 %v4282_v18, %v363_v7  ;;  %v498_v35 = vsel %vm4190_vm2, 0, %v497_v44  ;;  %v720_v5 = vsel %vm4442_vm8, 0, %v719_v24  ;;  %2189 = vmatprep.mubr.bf16.mxu1 %v4613_v43  ;;  %v3342_v37 = vunpack.c.l.bf16 %v3453_v40 }
  0x5f   : > { %911 = vst [vmem:[#allocation2 + $0xf0] sm:$0xff] %v4752_v36  ;;  %807 = vst [vmem:[#allocation2 + $0xe8] sm:$0xff] %v4757_v26  ;;  %v4776_v28 = vsel %vm4343_vm7, %v4608_v42, %v912_v52  ;;  %v4067_v55 = vld [vmem:[%s6016_s4 + $0x1d0] sm:$0xff]   ;;  %v500_v59 = vld [vmem:[#allocation2 + $0x318] sm:$0x1]  ;;  %3812 = vmatprep.subr.bf16.mxu1 %v4062_v31  ;;  %v567_v17 = vrot.slane %v6028_v60, 7  ;;  %v4789_v41 = vpack.c.bf16 %v432_v58, %v431_v54  ;;  %v3343_v43 = vunpack.c.h.bf16 %v3453_v40 }
  0x60   : > { %914 = vst [vmem:[#allocation2 + $0x138] sm:$0xff] %v4776_v28  ;;  %v402_v33 = vadd.f32 %v4282_v18, %v364_v15  ;;  %499 = vst [vmem:[#allocation2 + $0x2d0] sm:$0x1] %v498_v35  ;;  %v760_v44 = vrot.slane %v547_v0, 1  ;;  %v722_v7 = vld [vmem:[#allocation2 + $0x1c0] sm:$0x80] }
  0x61   : > { %721 = vst [vmem:[#allocation2 + $0x178] sm:$0x80] %v720_v5  ;;  %v660_v24 = vld [vmem:[#allocation2 + $0x240] sm:$0xff]  ;;  %v433_v52 = vmax.f32 %v401_v39, 0.0  ;;  %v863_v31 = vsel %vm4190_vm2, 0, %v862_v29  ;;  %v4804_v58 = vor.u32 %v6029_v1, %v567_v17  ;;  %693 = vst [vmem:[#allocation2 + $0x290] sm:$0xff] %v4789_v41  ;;  %v365_v17 = vmul.f32 %v3342_v37, %v4268_v3 }
  0x62   : > { %v4800_v54 = vld [vmem:[%s6016_s4 + $0x200] sm:$0xff]   ;;  %1166 = vst [vmem:[#allocation2 + $0x230] sm:$0xff] %v4789_v41  ;;  %v6031_v0 = vshrl.u32 %v4789_v41, 16  ;;  %v6032_v40 = vshll.u32 %v4789_v41, 16  ;;  %v808_v15 = vld [vmem:[#allocation2 + $0x130] sm:$0xff]  ;;  %v434_v39 = vmax.f32 %v402_v33, 0.0  ;;  %3813 = vmatpush3.bf16.msra.mxu1 %v4064_v51  ;;  %v4820_v5 = vor.u32 %v760_v44, %v544_v57 }
  0x63   : > { %6064 = vst [vmem:[#allocation6_spill] sm:$0xff] %v4800_v54  ;;  %v4068_v29 = vld [vmem:[%s6016_s4 + $0x190] sm:$0xff]   ;;  %864 = vst [vmem:[#allocation2 + $0x1c8] sm:$0x1] %v863_v31  ;;  %v4816_v35 = vsel %vm4567_vm10, %v4739_v34, %v808_v15  ;;  %v366_v60 = vmul.f32 %v3343_v43, %v4268_v3  ;;  %v4827_v33 = vsel %vm4343_vm7, %v4804_v58, %v660_v24  ;;  %3814 = vmatprep.subr.bf16.mxu1 %v4067_v55  ;;  %v4071_v37 = vld [vmem:[%s6016_s4 + $0x1d8] sm:$0xff]  }
  0x64   : > { %v865_v1 = vld [vmem:[#allocation2 + $0x210] sm:$0x1]  ;;  %v574_v51 = vrot.slane %v6031_v0, 7  ;;  %810 = vst [vmem:[#allocation2 + $0x130] sm:$0xff] %v4816_v35  ;;  %v4832_v32 = vpack.c.bf16 %v434_v39, %v433_v52  ;;  %v915_v57 = vld [vmem:[#allocation2 + $0x180] sm:$0xff]  ;;  %v501_v44 = vsel %vm4190_vm2, 0, %v500_v59  ;;  %3946 = vmatprep.subr.bf16.mxu0 %v4800_v54  ;;  %v403_v52 = vadd.f32 %v4282_v18, %v365_v17  ;;  %2069 = vmatmul.mubr.bf16.gmra.mrb[24].mxu0 %v4681_v25 }
  0x65   : > { %v725_v43 = vld [vmem:[#allocation2 + $0x208] sm:$0x80]  ;;  %v868_v31 = vld [vmem:[#allocation2 + $0x258] sm:$0x1]  ;;  %662 = vst [vmem:[#allocation2 + $0x240] sm:$0xff] %v4827_v33  ;;  %v4844_v24 = vsel %vm4343_vm7, %v4663_v30, %v915_v57  ;;  %v404_v15 = vadd.f32 %v4282_v18, %v366_v60  ;;  %v723_v59 = vsel %vm4442_vm8, 0, %v722_v7  ;;  %2190 = vmatmul.mubr.bf16.gmra.mrb[20].mxu1 %v4635_v47  ;;  %2076 = vmatprep.mubr.bf16.mxu0 %v4665_v16 }
  0x66   : > { %v663_v55 = vld [vmem:[#allocation2 + $0x288] sm:$0xff]  ;;  %502 = vst [vmem:[#allocation2 + $0x318] sm:$0x1] %v501_v44  ;;  %v967_v39 = vld [vmem:[#allocation2 + $0x70] sm:$0x80]  ;;  %v4854_v0 = vor.u32 %v6032_v40, %v574_v51  ;;  %694 = vst [vmem:[#allocation2 + $0x2d8] sm:$0xff] %v4832_v32  ;;  %2197 = vmatprep.mubr.bf16.mxu1 %v4688_v38  ;;  %3815 = vmatpush3.bf16.msra.mxu1 %v4068_v29 }
  0x67   : > { %1167 = vst [vmem:[#allocation2 + $0x278] sm:$0xff] %v4832_v32  ;;  %917 = vst [vmem:[#allocation2 + $0x180] sm:$0xff] %v4844_v24  ;;  %v762_v25 = vrot.slane %v554_v11, 1  ;;  %v4072_v47 = vld [vmem:[%s6016_s4 + $0x198] sm:$0xff]   ;;  %v728_v7 = vld [vmem:[#allocation2 + $0x250] sm:$0x80]  ;;  %3816 = vmatprep.subr.bf16.mxu1 %v4071_v37 }
  0x68   : > { %6065 = vst [vmem:[#allocation7_spill] sm:$0xff] %v4854_v0  ;;  %724 = vst [vmem:[#allocation2 + $0x1c0] sm:$0x80] %v723_v59  ;;  %v811_v51 = vld [vmem:[#allocation2 + $0x178] sm:$0xff]  ;;  %v435_v57 = vmax.f32 %v403_v52, 0.0  ;;  %v436_v44 = vmax.f32 %v404_v15, 0.0  ;;  %v4878_v60 = vsel %vm4343_vm7, %v4854_v0, %v663_v55 }
  0x69   : > { %v866_v40 = vsel %vm4190_vm2, 0, %v865_v1  ;;  %v965_v59 = vsel %vm4442_vm8, 0, %v964_v46  ;;  %v4075_v11 = vld [vmem:[%s6016_s4 + $0x1e0] sm:$0xff]   ;;  %v970_v9 = vld [vmem:[#allocation2 + $0xb8] sm:$0x80]  ;;  %v6066_v38 = vshrl.u32 %v4832_v32, 16  ;;  %v4885_v46 = vsel %vm4567_vm10, %v4820_v5, %v811_v51 }
  0x6a   : > { %v871_v17 = vld [vmem:[#allocation2 + $0x2a0] sm:$0x1]  ;;  %v666_v15 = vld [vmem:[#allocation2 + $0x2d0] sm:$0xff]  ;;  %v6067_v1 = vshrl.u32 %v4589_v20, 16  ;;  %867 = vst [vmem:[#allocation2 + $0x210] sm:$0x1] %v866_v40  ;;  %v4893_v29 = vpack.c.bf16 %v436_v44, %v435_v57  ;;  %3817 = vmatpush3.bf16.msra.mxu1 %v4072_v47 }
  0x6b   : > { %v581_v52 = vrot.slane %v6066_v38, 7  ;;  %966 = vst [vmem:[#allocation2 + $0x28] sm:$0x80] %v965_v59  ;;  %v731_v54 = vld [vmem:[#allocation2 + $0x298] sm:$0x80]  ;;  %665 = vst [vmem:[#allocation2 + $0x288] sm:$0xff] %v4878_v60  ;;  %3818 = vmatprep.subr.bf16.mxu1 %v4075_v11 }
  0x6c   : > { %v4889_v30 = vor.u32 %v762_v25, %v6067_v1  ;;  %v874_v42 = vld [vmem:[#allocation2 + $0x2e8] sm:$0x1]  ;;  %813 = vst [vmem:[#allocation2 + $0x178] sm:$0xff] %v4885_v46  ;;  %v726_v51 = vsel %vm4442_vm8, 0, %v725_v43  ;;  %v6068_v38 = vshll.u32 %v4665_v16, 16  ;;  %v869_v40 = vsel %vm4190_vm2, 0, %v868_v31  ;;  %2077 = vmatmul.mubr.bf16.gmra.mrb[28].mxu0 %v4747_v61 }
  0x6d   : > { %v918_v55 = vld [vmem:[#allocation2 + $0x1c8] sm:$0xff]  ;;  %v973_v25 = vld [vmem:[#allocation2 + $0x100] sm:$0x80]  ;;  %v6069_v59 = vshll.u32 %v4832_v32, 16  ;;  %727 = vst [vmem:[#allocation2 + $0x208] sm:$0x80] %v726_v51  ;;  %2198 = vmatmul.mubr.bf16.gmra.mrb[24].mxu1 %v4702_v62  ;;  %2084 = vmatprep.mubr.bf16.mxu0 %v4735_v53 }
  0x6e   : > { %v764_v20 = vrot.slane %v6068_v38, 1  ;;  %v4908_v57 = vsel %vm4343_vm7, %v4731_v56, %v918_v55  ;;  %870 = vst [vmem:[#allocation2 + $0x258] sm:$0x1] %v869_v40  ;;  %v968_v37 = vsel %vm4442_vm8, 0, %v967_v39  ;;  %v729_v43 = vsel %vm4442_vm8, 0, %v728_v7  ;;  %v4077_v31 = vld [vmem:[%s6016_s4 + $0x1a0] sm:$0xff]   ;;  %2205 = vmatprep.mubr.bf16.mxu1 %v4752_v36 }
  0x6f   : > { %v4903_v1 = vor.u32 %v6069_v59, %v581_v52  ;;  %695 = vst [vmem:[#allocation2 + $0x320] sm:$0xff] %v4893_v29  ;;  %1168 = vst [vmem:[#allocation2 + $0x2c0] sm:$0xff] %v4893_v29  ;;  %v6038_v44 = vshrl.u32 %v4893_v29, 16  ;;  %v589_v52 = vshll.u32 %v4893_v29, 16  ;;  %v6070_v39 = vshll.u32 %v4735_v53, 16  ;;  %v4078_v7 = vld [vmem:[%s6016_s4 + $0x1e8] sm:$0xff]   ;;  %3819 = vmatpush3.bf16.msra.mxu1 %v4077_v31 }
  0x70   : > { %920 = vst [vmem:[#allocation2 + $0x1c8] sm:$0xff] %v4908_v57  ;;  %969 = vst [vmem:[#allocation2 + $0x70] sm:$0x80] %v968_v37  ;;  %v669_v38 = vld [vmem:[#allocation2 + $0x318] sm:$0xff]  ;;  %v872_v40 = vsel %vm4190_vm2, 0, %v871_v17  ;;  %v971_v59 = vsel %vm4442_vm8, 0, %v970_v9  ;;  %3820 = vmatprep.subr.bf16.mxu1 %v4078_v7 }
  0x71   : > { %730 = vst [vmem:[#allocation2 + $0x250] sm:$0x80] %v729_v43  ;;  %v766_v55 = vrot.slane %v6070_v39, 1  ;;  %v4930_v51 = vsel %vm4343_vm7, %v4903_v1, %v666_v15  ;;  %v732_v37 = vsel %vm4442_vm8, 0, %v731_v54  ;;  %v588_v43 = vrot.slane %v6038_v44, 7  ;;  %v814_v39 = vld [vmem:[#allocation2 + $0x1c0] sm:$0xff] }
  0x72   : > { %668 = vst [vmem:[#allocation2 + $0x2d0] sm:$0xff] %v4930_v51  ;;  %v6071_v15 = vshrl.u32 %v4665_v16, 16  ;;  %873 = vst [vmem:[#allocation2 + $0x2a0] sm:$0x1] %v872_v40  ;;  %v6072_v17 = vshll.u32 %v4789_v41, 16  ;;  %v875_v54 = vsel %vm4190_vm2, 0, %v874_v42  ;;  %v4954_v16 = vsel %vm4567_vm10, %v4889_v30, %v814_v39 }
  0x73   : > { %972 = vst [vmem:[#allocation2 + $0xb8] sm:$0x80] %v971_v59  ;;  %733 = vst [vmem:[#allocation2 + $0x298] sm:$0x80] %v732_v37  ;;  %v734_v47 = vld [vmem:[#allocation2 + $0x2e0] sm:$0x80]  ;;  %v4967_v62 = vor.u32 %v589_v52, %v588_v43 }
  0x74   : > { %v4943_v56 = vor.u32 %v764_v20, %v6071_v15  ;;  %v768_v9 = vrot.slane %v6072_v17, 1  ;;  %876 = vst [vmem:[#allocation2 + $0x2e8] sm:$0x1] %v875_v54  ;;  %v974_v11 = vsel %vm4442_vm8, 0, %v973_v25  ;;  %v735_v20 = vsel %vm4442_vm8, 0, %v734_v47  ;;  %v4080_v61 = vld [vmem:[%s6016_s4 + $0x1a8] sm:$0xff]   ;;  %2085 = vmatmul.mubr.bf16.gmra.mrb[32].mxu0 %v4827_v33 }
  0x75   : > { %v6073_v40 = vshll.u32 %v4832_v32, 16  ;;  %816 = vst [vmem:[#allocation2 + $0x1c0] sm:$0xff] %v4954_v16  ;;  %v921_v59 = vld [vmem:[#allocation2 + $0x210] sm:$0xff]  ;;  %v1015_v25 = vld [vmem:[#allocation2 + $0x28] sm:$0xff]  ;;  %v6074_v37 = vshrl.u32 %v4735_v53, 16  ;;  %v772_v15 = vrot.slane %v589_v52, 1  ;;  %3821 = vmatpush3.bf16.msra.mxu1 %v4080_v61  ;;  %2092 = vmatprep.mubr.bf16.mxu0 %v4789_v41 }
  0x76   : > { %975 = vst [vmem:[#allocation2 + $0x100] sm:$0x80] %v974_v11  ;;  %736 = vst [vmem:[#allocation2 + $0x2e0] sm:$0x80] %v735_v20  ;;  %v6075_v17 = vshll.u32 %v4307_v45, 16  ;;  %v4979_v36 = vsel %vm4343_vm7, %v4804_v58, %v921_v59  ;;  %v4984_v43 = vsel %vm4567_vm10, %v4563_v10, %v1015_v25  ;;  %v6076_v53 = vshrl.u32 %v4789_v41, 16  ;;  %2206 = vmatmul.mubr.bf16.gmra.mrb[28].mxu1 %v4757_v26 }
  0x77   : > { %v770_v42 = vrot.slane %v6073_v40, 1  ;;  %v4972_v39 = vor.u32 %v766_v55, %v6074_v37  ;;  %v877_v47 = vld [vmem:[#allocation2 + $0x330] sm:$0x1]  ;;  %v976_v52 = vld [vmem:[#allocation2 + $0x148] sm:$0x80]  ;;  %v4993_v20 = vsel %vm4343_vm7, %v4967_v62, %v669_v38  ;;  %923 = vst [vmem:[#allocation2 + $0x210] sm:$0xff] %v4979_v36  ;;  %2213 = vmatprep.mubr.bf16.mxu1 %v4776_v28 }
  0x78   : > { %v774_v54 = vrot.slane %v6075_v17, 1  ;;  %v4988_v55 = vor.u32 %v768_v9, %v6076_v53  ;;  %v737_v11 = vld [vmem:[#allocation2 + $0x328] sm:$0x80]  ;;  %1017 = vst [vmem:[#allocation2 + $0x28] sm:$0xff] %v4984_v43  ;;  %v924_v10 = vld [vmem:[#allocation2 + $0x258] sm:$0xff]  ;;  %v878_v31 = vsel %vm4190_vm2, 0, %v877_v47 }
  0x79   : > { %v817_v40 = vld [vmem:[#allocation2 + $0x208] sm:$0xff]  ;;  %v977_v9 = vsel %vm4442_vm8, 0, %v976_v52  ;;  %v738_v59 = vsel %vm4442_vm8, 0, %v737_v11  ;;  %671 = vst [vmem:[#allocation2 + $0x318] sm:$0xff] %v4993_v20  ;;  %v5012_v7 = vsel %vm4343_vm7, %v4854_v0, %v924_v10  ;;  %v1018_v25 = vld [vmem:[#allocation2 + $0x70] sm:$0xff]  ;;  %v6077_v53 = vshrl.u32 %v4307_v45, 16 }
  0x7a   : > { %v5007_v38 = vsel %vm4567_vm10, %v4943_v56, %v817_v40  ;;  %v820_v37 = vld [vmem:[#allocation2 + $0x250] sm:$0xff]  ;;  %879 = vst [vmem:[#allocation2 + $0x330] sm:$0x1] %v878_v31  ;;  %978 = vst [vmem:[#allocation2 + $0x148] sm:$0x80] %v977_v9  ;;  %v5023_v52 = vsel %vm4567_vm10, %v4639_v50, %v1018_v25  ;;  %v6078_v40 = vshrl.u32 %v4832_v32, 16 }
  0x7b   : > { %739 = vst [vmem:[#allocation2 + $0x328] sm:$0x80] %v738_v59  ;;  %v880_v17 = vld [vmem:[#allocation2 + $0x378] sm:$0x1]  ;;  %v5016_v47 = vor.u32 %v774_v54, %v6077_v53  ;;  %819 = vst [vmem:[#allocation2 + $0x208] sm:$0xff] %v5007_v38  ;;  %v5028_v11 = vsel %vm4567_vm10, %v4972_v39, %v820_v37  ;;  %v4081_v31 = vld [vmem:[%s6016_s4 + $0x1f0] sm:$0xff]  }
  0x7c   : > { %926 = vst [vmem:[#allocation2 + $0x258] sm:$0xff] %v5012_v7  ;;  %v5032_v10 = vor.u32 %v770_v42, %v6078_v40  ;;  %v881_v45 = vsel %vm4190_vm2, 0, %v880_v17  ;;  %v979_v54 = vld [vmem:[#allocation2 + $0x190] sm:$0x80]  ;;  %1020 = vst [vmem:[#allocation2 + $0x70] sm:$0xff] %v5023_v52  ;;  %v927_v9 = vld [vmem:[#allocation2 + $0x2a0] sm:$0xff]  ;;  %3822 = vmatprep.subr.bf16.mxu1 %v4081_v31  ;;  %2093 = vmatmul.mubr.bf16.gmra.mrb[36].mxu0 %v4878_v60 }
  0x7d   : > { %822 = vst [vmem:[#allocation2 + $0x250] sm:$0xff] %v5028_v11  ;;  %v1021_v59 = vld [vmem:[#allocation2 + $0xb8] sm:$0xff]  ;;  %882 = vst [vmem:[#allocation2 + $0x378] sm:$0x1] %v881_v45  ;;  %v980_v42 = vsel %vm4442_vm8, 0, %v979_v54  ;;  %v6079_v37 = vshll.u32 %v4313_v49, 16  ;;  %v5050_v44 = vsel %vm4343_vm7, %v4903_v1, %v927_v9  ;;  %2100 = vmatprep.mubr.bf16.mxu0 %v4832_v32 }
  0x7e   : > { %v823_v25 = vld [vmem:[#allocation2 + $0x298] sm:$0xff]  ;;  %v6080_v53 = vshll.u32 %v4376_v23, 16  ;;  %v5055_v0 = vsel %vm4567_vm10, %v4707_v48, %v1021_v59  ;;  %v930_v45 = vld [vmem:[#allocation2 + $0x2e8] sm:$0xff]  ;;  %v6081_v54 = vshrl.u32 %v4893_v29, 16  ;;  %981 = vst [vmem:[#allocation2 + $0x190] sm:$0x80] %v980_v42  ;;  %2214 = vmatmul.mubr.bf16.gmra.mrb[32].mxu1 %v4816_v35 }
  0x7f   : > { %v776_v17 = vrot.slane %v6079_v37, 1  ;;  %v5060_v61 = vsel %vm4567_vm10, %v4988_v55, %v823_v25  ;;  %929 = vst [vmem:[#allocation2 + $0x2a0] sm:$0xff] %v5050_v44  ;;  %1023 = vst [vmem:[#allocation2 + $0xb8] sm:$0xff] %v5055_v0  ;;  %v5074_v9 = vsel %vm4343_vm7, %v4967_v62, %v930_v45  ;;  %v1024_v59 = vld [vmem:[#allocation2 + $0x100] sm:$0xff]  ;;  %v6082_v25 = vshrl.u32 %v4313_v49, 16  ;;  %v4083_v28 = vld [vmem:[%s6016_s4 + $0x1b0] sm:$0xff]   ;;  %2221 = vmatprep.mubr.bf16.mxu1 %v4844_v24 }
  0x80   : > { %v778_v40 = vrot.slane %v6080_v53, 1  ;;  %v5064_v37 = vor.u32 %v772_v15, %v6081_v54  ;;  %825 = vst [vmem:[#allocation2 + $0x298] sm:$0xff] %v5060_v61  ;;  %v826_v15 = vld [vmem:[#allocation2 + $0x2e0] sm:$0xff]  ;;  %v6083_v33 = vshrl.u32 %v4376_v23, 16  ;;  %932 = vst [vmem:[#allocation2 + $0x2e8] sm:$0xff] %v5074_v9  ;;  %v5090_v42 = vsel %vm4567_vm10, %v4739_v34, %v1024_v59  ;;  %3823 = vmatpush3.bf16.msra.mxu1 %v4083_v28  ;;  %v3458_v60 = vld [vmem:[%s4232_s16 + $0x78] sm:$0xff]  }
  0x81   : > { %v5078_v31 = vor.u32 %v776_v17, %v6082_v25  ;;  %v5095_v49 = vsel %vm4567_vm10, %v5032_v10, %v826_v15  ;;  %v740_v17 = vld [vmem:[#allocation2 + $0x370] sm:$0x80]  ;;  %1026 = vst [vmem:[#allocation2 + $0x100] sm:$0xff] %v5090_v42  ;;  %v1027_v53 = vld [vmem:[#allocation2 + $0x148] sm:$0xff]  ;;  %v883_v15 = vld [vmem:[#allocation2 + $0x3c0] sm:$0x1]  ;;  %v3362_v32 = vunpack.c.l.bf16 %v3458_v60  ;;  %v3363_v24 = vunpack.c.h.bf16 %v3458_v60 }
  0x82   : > { %v5082_v26 = vor.u32 %v778_v40, %v6083_v33  ;;  %828 = vst [vmem:[#allocation2 + $0x2e0] sm:$0xff] %v5095_v49  ;;  %v741_v23 = vsel %vm4442_vm8, 0, %v740_v17  ;;  %v933_v41 = vld [vmem:[#allocation2 + $0x330] sm:$0xff]  ;;  %v829_v40 = vld [vmem:[#allocation2 + $0x328] sm:$0xff]  ;;  %v5112_v54 = vsel %vm4567_vm10, %v4820_v5, %v1027_v53  ;;  %v982_v25 = vld [vmem:[#allocation2 + $0x1d8] sm:$0x80] }
  0x83   : > { %742 = vst [vmem:[#allocation2 + $0x370] sm:$0x80] %v741_v23  ;;  %v5107_v45 = vsel %vm4343_vm7, %v4360_v13, %v933_v41  ;;  %v5117_v59 = vsel %vm4567_vm10, %v5064_v37, %v829_v40  ;;  %v743_v33 = vld [vmem:[#allocation2 + $0x3b8] sm:$0x80]  ;;  %1029 = vst [vmem:[#allocation2 + $0x148] sm:$0xff] %v5112_v54  ;;  %v884_v23 = vsel %vm4190_vm2, 0, %v883_v15  ;;  %v375_v60 = vmul.f32 %v3362_v32, %v4268_v3 }
  0x84   : > { %6084 = vst [vmem:[#allocation8_spill] sm:$0xff] %v5107_v45  ;;  %6085 = vst [vmem:[#allocation9_spill] sm:$0xff] %v5117_v59  ;;  %v936_v17 = vld [vmem:[#allocation2 + $0x378] sm:$0xff]  ;;  %v983_v41 = vsel %vm4442_vm8, 0, %v982_v25  ;;  %v744_v53 = vsel %vm4442_vm8, 0, %v743_v33  ;;  %2101 = vmatmul.mubr.bf16.gmra.mrb[40].mxu0 %v4930_v51 }
  0x85   : > { %935 = vst [vmem:[#allocation2 + $0x330] sm:$0xff] %v5107_v45  ;;  %831 = vst [vmem:[#allocation2 + $0x328] sm:$0xff] %v5117_v59  ;;  %v886_v28 = vld [vmem:[#allocation2 + $0x408] sm:$0x1]  ;;  %v5131_v40 = vsel %vm4343_vm7, %v4374_v22, %v936_v17  ;;  %v1030_v45 = vld [vmem:[#allocation2 + $0x190] sm:$0xff]  ;;  %2108 = vmatprep.mubr.bf16.mxu0 %v4893_v29 }
  0x86   : > { %6086 = vst [vmem:[#allocation10_spill] sm:$0xff] %v5131_v40  ;;  %885 = vst [vmem:[#allocation2 + $0x3c0] sm:$0x1] %v884_v23  ;;  %v887_v59 = vsel %vm4190_vm2, 0, %v886_v28  ;;  %v985_v15 = vld [vmem:[#allocation2 + $0x220] sm:$0x80]  ;;  %v5139_v25 = vsel %vm4567_vm10, %v4889_v30, %v1030_v45  ;;  %2222 = vmatmul.mubr.bf16.gmra.mrb[36].mxu1 %v4885_v46 }
  0x87   : > { %984 = vst [vmem:[#allocation2 + $0x1d8] sm:$0x80] %v983_v41  ;;  %745 = vst [vmem:[#allocation2 + $0x3b8] sm:$0x80] %v744_v53  ;;  %v986_v33 = vsel %vm4442_vm8, 0, %v985_v15  ;;  %v4084_v17 = vld [vmem:[%s6016_s4 + $0x1f8] sm:$0xff]   ;;  %2229 = vmatprep.mubr.bf16.mxu1 %v4908_v57 }
  0x88   : > { %938 = vst [vmem:[#allocation2 + $0x378] sm:$0xff] %v5131_v40  ;;  %6087 = vst [vmem:[#allocation11_spill] sm:$0xff] %v5139_v25  ;;  %v746_v23 = vld [vmem:[#allocation2 + $0x400] sm:$0x80]  ;;  %3824 = vmatprep.subr.bf16.mxu1 %v4084_v17  ;;  %v889_v35 = vld [vmem:[#allocation2 + $0x450] sm:$0x1]  ;;  %v376_v40 = vmul.f32 %v3363_v24, %v4268_v3 }
  0x89   : > { %888 = vst [vmem:[#allocation2 + $0x408] sm:$0x1] %v887_v59  ;;  %1032 = vst [vmem:[#allocation2 + $0x190] sm:$0xff] %v5139_v25  ;;  %v747_v45 = vsel %vm4442_vm8, 0, %v746_v23  ;;  %v4086_v59 = vld [vmem:[%s6016_s4 + $0x1b8] sm:$0xff]   ;;  %v890_v28 = vsel %vm4190_vm2, 0, %v889_v35 }
  0x8a   : > { %987 = vst [vmem:[#allocation2 + $0x220] sm:$0x80] %v986_v33  ;;  %v832_v41 = vld [vmem:[#allocation2 + $0x370] sm:$0xff]  ;;  %748 = vst [vmem:[#allocation2 + $0x400] sm:$0x80] %v747_v45  ;;  %3825 = vmatpush3.bf16.msra.mxu1 %v4086_v59  ;;  %v6089_v35 = vshll.u32 %v4508_v2, 16 }
  0x8b   : > { %v5160_v53 = vsel %vm4567_vm10, %v5016_v47, %v832_v41  ;;  %v988_v15 = vld [vmem:[#allocation2 + $0x268] sm:$0x80]  ;;  %891 = vst [vmem:[#allocation2 + $0x450] sm:$0x1] %v890_v28  ;;  %v991_v45 = vld [vmem:[#allocation2 + $0x2b0] sm:$0x80] }
  0x8c   : > { %6088 = vst [vmem:[#allocation12_spill] sm:$0xff] %v5160_v53  ;;  %v749_v33 = vld [vmem:[#allocation2 + $0x448] sm:$0x80]  ;;  %834 = vst [vmem:[#allocation2 + $0x370] sm:$0xff] %v5160_v53  ;;  %v989_v17 = vsel %vm4442_vm8, 0, %v988_v15  ;;  %v780_v53 = vrot.slane %v6089_v35, 1  ;;  %2109 = vmatmul.mubr.bf16.gmra.mrb[44].mxu0 %v4993_v20 }
  0x8d   : > { %v750_v23 = vsel %vm4442_vm8, 0, %v749_v33  ;;  %v939_v41 = vld [vmem:[#allocation2 + $0x3c0] sm:$0xff]  ;;  %990 = vst [vmem:[#allocation2 + $0x268] sm:$0x80] %v989_v17  ;;  %v992_v28 = vsel %vm4442_vm8, 0, %v991_v45  ;;  %v413_v17 = vadd.f32 %v4282_v18, %v375_v60  ;;  %2342 = vmatprep.mubr.bf16.mxu0 %v4984_v43 }
  0x8e   : > { %v1033_v25 = vld [vmem:[#allocation2 + $0x1d8] sm:$0xff]  ;;  %751 = vst [vmem:[#allocation2 + $0x448] sm:$0x80] %v750_v23  ;;  %v5178_v15 = vsel %vm4343_vm7, %v4451_v8, %v939_v41  ;;  %993 = vst [vmem:[#allocation2 + $0x2b0] sm:$0x80] %v992_v28  ;;  %v414_v23 = vadd.f32 %v4282_v18, %v376_v40  ;;  %v6090_v28 = vshrl.u32 %v4508_v2, 16  ;;  %2230 = vmatmul.mubr.bf16.gmra.mrb[40].mxu1 %v4954_v16 }
  0x8f   : > { %v835_v59 = vld [vmem:[#allocation2 + $0x3b8] sm:$0xff]  ;;  %v5183_v33 = vsel %vm4567_vm10, %v4943_v56, %v1033_v25  ;;  %941 = vst [vmem:[#allocation2 + $0x3c0] sm:$0xff] %v5178_v15  ;;  %v1065_v45 = vld [vmem:[#allocation2 + $0x30] sm:$0x1]  ;;  %v445_v51 = vmax.f32 %v413_v17, 0.0  ;;  %2237 = vmatprep.mubr.bf16.mxu1 %v4979_v36 }
  0x90   : > { %v5188_v3 = vsel %vm4567_vm10, %v5078_v31, %v835_v59  ;;  %v942_v32 = vld [vmem:[#allocation2 + $0x408] sm:$0xff]  ;;  %1035 = vst [vmem:[#allocation2 + $0x1d8] sm:$0xff] %v5183_v33  ;;  %v994_v41 = vld [vmem:[#allocation2 + $0x2f8] sm:$0x80]  ;;  %v1066_v35 = vsel %vm4190_vm2, 0, %v1065_v45  ;;  %v446_v40 = vmax.f32 %v414_v23, 0.0 }
  0x91   : > { %837 = vst [vmem:[#allocation2 + $0x3b8] sm:$0xff] %v5188_v3  ;;  %v5196_v24 = vsel %vm4343_vm7, %v4578_v27, %v942_v32  ;;  %v1036_v25 = vld [vmem:[#allocation2 + $0x220] sm:$0xff]  ;;  %v995_v60 = vsel %vm4442_vm8, 0, %v994_v41  ;;  %v1068_v18 = vld [vmem:[#allocation2 + $0x78] sm:$0x1]  ;;  %v5217_v32 = vor.u32 %v780_v53, %v6090_v28 }
  0x92   : > { %944 = vst [vmem:[#allocation2 + $0x408] sm:$0xff] %v5196_v24  ;;  %v5206_v59 = vsel %vm4567_vm10, %v4972_v39, %v1036_v25  ;;  %v838_v46 = vld [vmem:[#allocation2 + $0x400] sm:$0xff]  ;;  %1067 = vst [vmem:[#allocation2 + $0x30] sm:$0x1] %v1066_v35  ;;  %v1069_v25 = vsel %vm4190_vm2, 0, %v1068_v18  ;;  %v5229_v2 = vpack.c.bf16 %v446_v40, %v445_v51 }
  0x93   : > { %1038 = vst [vmem:[#allocation2 + $0x220] sm:$0xff] %v5206_v59  ;;  %996 = vst [vmem:[#allocation2 + $0x2f8] sm:$0x80] %v995_v60  ;;  %v997_v45 = vld [vmem:[#allocation2 + $0x340] sm:$0x80]  ;;  %v5224_v29 = vsel %vm4567_vm10, %v5082_v26, %v838_v46 }
  0x94   : > { %1070 = vst [vmem:[#allocation2 + $0x78] sm:$0x1] %v1069_v25  ;;  %v998_v57 = vsel %vm4442_vm8, 0, %v997_v45  ;;  %840 = vst [vmem:[#allocation2 + $0x400] sm:$0xff] %v5224_v29  ;;  %v1071_v53 = vld [vmem:[#allocation2 + $0xc0] sm:$0x1] }
  0x95   : > { %6091 = vst [vmem:[#allocation13_spill] sm:$0xff] %v5229_v2  ;;  %999 = vst [vmem:[#allocation2 + $0x340] sm:$0x80] %v998_v57  ;;  %v1039_v17 = vld [vmem:[#allocation2 + $0x268] sm:$0xff]  ;;  %v1072_v41 = vsel %vm4190_vm2, 0, %v1071_v53  ;;  %v6045_v60 = vshrl.u32 %v5229_v2, 16 }
  0x96   : > { %v841_v23 = vld [vmem:[#allocation2 + $0x448] sm:$0xff]  ;;  %v896_v18 = vshll.u32 %v5229_v2, 16  ;;  %v5238_v46 = vsel %vm4567_vm10, %v4988_v55, %v1039_v17  ;;  %v1042_v40 = vld [vmem:[#allocation2 + $0x2b0] sm:$0xff]  ;;  %1073 = vst [vmem:[#allocation2 + $0xc0] sm:$0x1] %v1072_v41  ;;  %2238 = vmatmul.mubr.bf16.gmra.mrb[44].mxu1 %v5007_v38  ;;  %v6096_v38 = vshrl.u32 %v5229_v2, 16 }
  0x97   : > { %v1000_v35 = vld [vmem:[#allocation2 + $0x388] sm:$0x80]  ;;  %v5243_v51 = vsel %vm4567_vm10, %v5217_v32, %v841_v23  ;;  %1041 = vst [vmem:[#allocation2 + $0x268] sm:$0xff] %v5238_v46  ;;  %v5250_v28 = vsel %vm4567_vm10, %v5032_v10, %v1042_v40  ;;  %v1074_v45 = vld [vmem:[#allocation2 + $0x108] sm:$0x1]  ;;  %v895_v53 = vrot.slane %v6045_v60, 7  ;;  %2245 = vmatprep.mubr.bf16.mxu1 %v5012_v7 }
  0x98   : > { %843 = vst [vmem:[#allocation2 + $0x448] sm:$0xff] %v5243_v51  ;;  %v1001_v25 = vsel %vm4442_vm8, 0, %v1000_v35  ;;  %v1003_v57 = vld [vmem:[#allocation2 + $0x3d0] sm:$0x80]  ;;  %1044 = vst [vmem:[#allocation2 + $0x2b0] sm:$0xff] %v5250_v28  ;;  %v1075_v23 = vsel %vm4190_vm2, 0, %v1074_v45 }
  0x99   : > { %v945_v17 = vld [vmem:[#allocation2 + $0x450] sm:$0xff]  ;;  %1002 = vst [vmem:[#allocation2 + $0x388] sm:$0x80] %v1001_v25  ;;  %v1004_v41 = vsel %vm4442_vm8, 0, %v1003_v57  ;;  %1076 = vst [vmem:[#allocation2 + $0x108] sm:$0x1] %v1075_v23  ;;  %v5265_v60 = vor.u32 %v896_v18, %v895_v53 }
  0x9a   : > { %v1113_v35 = vld [vmem:[#allocation2 + $0x30] sm:$0xff]  ;;  %v1045_v40 = vld [vmem:[#allocation2 + $0x2f8] sm:$0xff]  ;;  %1005 = vst [vmem:[#allocation2 + $0x3d0] sm:$0x80] %v1004_v41 }
  0x9b   : > { %v5270_v25 = vsel %vm4343_vm7, %v4370_v21, %v1113_v35  ;;  %v5275_v20 = vsel %vm4567_vm10, %v5064_v37, %v1045_v40  ;;  %v1116_v16 = vld [vmem:[#allocation2 + $0x78] sm:$0xff]  ;;  %v1077_v45 = vld [vmem:[#allocation2 + $0x150] sm:$0x1]  ;;  %v5289_v53 = vsel %vm4343_vm7, %v5265_v60, %v945_v17  ;;  %v1009_v35 = vld [vmem:[#allocation2 + $0x460] sm:$0x80] }
  0x9c   : > { %1115 = vst [vmem:[#allocation2 + $0x30] sm:$0xff] %v5270_v25  ;;  %1047 = vst [vmem:[#allocation2 + $0x2f8] sm:$0xff] %v5275_v20  ;;  %v5282_v36 = vsel %vm4343_vm7, %v4437_v63, %v1116_v16  ;;  %v1048_v43 = vld [vmem:[#allocation2 + $0x340] sm:$0xff]  ;;  %v1078_v21 = vsel %vm4190_vm2, 0, %v1077_v45  ;;  %v1006_v57 = vld [vmem:[#allocation2 + $0x418] sm:$0x80] }
  0x9d   : > { %6092 = vst [vmem:[#allocation14_spill] sm:$0xff] %v5282_v36  ;;  %1118 = vst [vmem:[#allocation2 + $0x78] sm:$0xff] %v5282_v36  ;;  %v5295_v23 = vsel %vm4567_vm10, %v5016_v47, %v1048_v43  ;;  %v1007_v63 = vsel %vm4442_vm8, 0, %v1006_v57  ;;  %v1080_v41 = vld [vmem:[#allocation2 + $0x198] sm:$0x1]  ;;  %v1119_v40 = vld [vmem:[#allocation2 + $0xc0] sm:$0xff] }
  0x9e   : > { %6093 = vst [vmem:[#allocation15_spill] sm:$0xff] %v5295_v23  ;;  %1079 = vst [vmem:[#allocation2 + $0x150] sm:$0x1] %v1078_v21  ;;  %v1081_v17 = vsel %vm4190_vm2, 0, %v1080_v41  ;;  %v1010_v16 = vsel %vm4442_vm8, 0, %v1009_v35  ;;  %v1272_v45 = vld [vmem:[#allocation2 + $0x20] sm:$0xff]  ;;  %v5308_v43 = vsel %vm4343_vm7, %v4515_v19, %v1119_v40  ;;  %2246 = vmatmul.mubr.bf16.gmra.mrb[48].mxu1 %v5028_v11 }
  0x9f   : > { %947 = vst [vmem:[#allocation2 + $0x450] sm:$0xff] %v5289_v53  ;;  %1050 = vst [vmem:[#allocation2 + $0x340] sm:$0xff] %v5295_v23  ;;  %v1012_v21 = vrot.slane %v896_v18, 1  ;;  %v1083_v57 = vld [vmem:[#allocation2 + $0x1e0] sm:$0x1]  ;;  %2343 = vmatmul.mubr.bf16.vlgmr.msra.gmra.mrb[48].mxu0 %v1272_v45  ;;  %v6097_v7 = vld [vmem:[#allocation6_spill] sm:$0xff]  ;;  %2253 = vmatprep.mubr.bf16.mxu1 %v5050_v44 }
  0xa0   : > { %1008 = vst [vmem:[#allocation2 + $0x418] sm:$0x80] %v1007_v63  ;;  %6094 = vst [vmem:[#allocation16_spill] sm:$0xff] %v5308_v43  ;;  %v4079_v63 = vld [vmem:[%s6016_s4 + $0x208] sm:$0xff]   ;;  %v1084_v35 = vsel %vm4190_vm2, 0, %v1083_v57  ;;  %2350 = vmatprep.mubr.bf16.mxu0 %v5023_v52  ;;  %3947 = vmatpush3.bf16.msra.mxu0 %v6097_v7  ;;  %v6099_v7 = vld [vmem:[#allocation5_spill] sm:$0xff] }
  0xa1   : > { %1082 = vst [vmem:[#allocation2 + $0x198] sm:$0x1] %v1081_v17  ;;  %1011 = vst [vmem:[#allocation2 + $0x460] sm:$0x80] %v1010_v16  ;;  %v1051_v41 = vld [vmem:[#allocation2 + $0x388] sm:$0xff]  ;;  %v1054_v17 = vld [vmem:[#allocation2 + $0x3d0] sm:$0xff]  ;;  %v5343_v45 = vor.u32 %v1012_v21, %v6096_v38  ;;  %3948 = vmatprep.subr.bf16.mxu0 %v4079_v63 }
  0xa2   : > { %1121 = vst [vmem:[#allocation2 + $0xc0] sm:$0xff] %v5308_v43  ;;  %v1175_v23 = vld [vmem:[#allocation2 + $0x40] sm:$0x80]  ;;  %v5319_v19 = vsel %vm4567_vm10, %v5078_v31, %v1051_v41  ;;  %v1122_v40 = vld [vmem:[#allocation2 + $0x108] sm:$0xff]  ;;  %1085 = vst [vmem:[#allocation2 + $0x1e0] sm:$0x1] %v1084_v35  ;;  %v5333_v41 = vsel %vm4567_vm10, %v5082_v26, %v1054_v17 }
  0xa3   : > { %v1176_v18 = vsel %vm4442_vm8, 0, %v1175_v23  ;;  %v1086_v16 = vld [vmem:[#allocation2 + $0x228] sm:$0x1]  ;;  %1053 = vst [vmem:[#allocation2 + $0x388] sm:$0xff] %v5319_v19  ;;  %v6095_v43 = vld [vmem:[#allocation3_spill] sm:$0xff]  ;;  %1056 = vst [vmem:[#allocation2 + $0x3d0] sm:$0xff] %v5333_v41 }
  0xa4   : > { %v5328_v57 = vsel %vm4343_vm7, %v6095_v43, %v1122_v40  ;;  %1177 = vst [vmem:[#allocation2 + $0x40] sm:$0x80] %v1176_v18  ;;  %v1087_v23 = vsel %vm4190_vm2, 0, %v1086_v16  ;;  %v1178_v35 = vld [vmem:[#allocation2 + $0x88] sm:$0x80]  ;;  %3949 = vmatpush3.bf16.msra.mxu0 %v4079_v63 }
  0xa5   : > { %v1181_v36 = vld [vmem:[#allocation2 + $0xd0] sm:$0x80]  ;;  %1124 = vst [vmem:[#allocation2 + $0x108] sm:$0xff] %v5328_v57  ;;  %1088 = vst [vmem:[#allocation2 + $0x228] sm:$0x1] %v1087_v23  ;;  %v1179_v43 = vsel %vm4442_vm8, 0, %v1178_v35 }
  0xa6   : > { %v1182_v40 = vsel %vm4442_vm8, 0, %v1181_v36  ;;  %v1089_v17 = vld [vmem:[#allocation2 + $0x270] sm:$0x1]  ;;  %v1184_v18 = vld [vmem:[#allocation2 + $0x118] sm:$0x80]  ;;  %v6098_v35 = vld [vmem:[#allocation4_spill] sm:$0xff]  ;;  %2254 = vmatmul.mubr.bf16.gmra.mrb[52].mxu1 %v5060_v61 }
  0xa7   : > { %v1125_v52 = vld [vmem:[#allocation2 + $0x150] sm:$0xff]  ;;  %1180 = vst [vmem:[#allocation2 + $0x88] sm:$0x80] %v1179_v43  ;;  %1183 = vst [vmem:[#allocation2 + $0xd0] sm:$0x80] %v1182_v40  ;;  %v1090_v16 = vsel %vm4190_vm2, 0, %v1089_v17  ;;  %2261 = vmatprep.mubr.bf16.mxu1 %v5074_v9 }
  0xa8   : > { %v1185_v21 = vsel %vm4442_vm8, 0, %v1184_v18  ;;  %v4082_v23 = vld [vmem:[%s6016_s4 + $0x210] sm:$0xff]   ;;  %v5360_v36 = vsel %vm4343_vm7, %v6098_v35, %v1125_v52  ;;  %v1057_v38 = vld [vmem:[#allocation2 + $0x418] sm:$0xff]  ;;  %1091 = vst [vmem:[#allocation2 + $0x270] sm:$0x1] %v1090_v16  ;;  %v1060_v17 = vld [vmem:[#allocation2 + $0x460] sm:$0xff] }
  0xa9   : > { %1186 = vst [vmem:[#allocation2 + $0x118] sm:$0x80] %v1185_v21  ;;  %1127 = vst [vmem:[#allocation2 + $0x150] sm:$0xff] %v5360_v36  ;;  %v5366_v43 = vsel %vm4567_vm10, %v5217_v32, %v1057_v38  ;;  %v1128_v40 = vld [vmem:[#allocation2 + $0x198] sm:$0xff]  ;;  %v1281_v18 = vld [vmem:[#allocation2 + $0x68] sm:$0xff]  ;;  %v5377_v16 = vsel %vm4567_vm10, %v5343_v45, %v1060_v17  ;;  %3950 = vmatprep.subr.bf16.mxu0 %v4082_v23 }
  0xaa   : > { %1059 = vst [vmem:[#allocation2 + $0x418] sm:$0xff] %v5366_v43  ;;  %v5372_v52 = vsel %vm4343_vm7, %v6099_v7, %v1128_v40  ;;  %6101 = vst [vmem:[#allocation6_spill] sm:$0xff] %v5377_v16  ;;  %v1187_v21 = vld [vmem:[#allocation2 + $0x160] sm:$0x80]  ;;  %v1092_v35 = vld [vmem:[#allocation2 + $0x2b8] sm:$0x1]  ;;  %2351 = vmatmul.mubr.bf16.gmra.mrb[52].mxu0 %v1281_v18 }
  0xab   : > { %6100 = vst [vmem:[#allocation3_spill] sm:$0xff] %v5372_v52  ;;  %1130 = vst [vmem:[#allocation2 + $0x198] sm:$0xff] %v5372_v52  ;;  %v1131_v38 = vld [vmem:[#allocation2 + $0x1e0] sm:$0xff]  ;;  %v1188_v2 = vsel %vm4442_vm8, 0, %v1187_v21  ;;  %v1093_v40 = vsel %vm4190_vm2, 0, %v1092_v35  ;;  %v4085_v17 = vld [vmem:[%s6016_s4 + $0x218] sm:$0xff]   ;;  %2358 = vmatprep.mubr.bf16.mxu0 %v5055_v0  ;;  %3951 = vmatpush3.bf16.msra.mxu0 %v4082_v23 }
  0xac   : > { %1062 = vst [vmem:[#allocation2 + $0x460] sm:$0xff] %v5377_v16  ;;  %v1190_v7 = vld [vmem:[#allocation2 + $0x1a8] sm:$0x80]  ;;  %v5391_v63 = vsel %vm4343_vm7, %v4804_v58, %v1131_v38  ;;  %v1223_v52 = vld [vmem:[#allocation2 + $0x40] sm:$0xff]  ;;  %1189 = vst [vmem:[#allocation2 + $0x160] sm:$0x80] %v1188_v2  ;;  %3952 = vmatprep.subr.bf16.mxu0 %v4085_v17 }
  0xad   : > { %1094 = vst [vmem:[#allocation2 + $0x2b8] sm:$0x1] %v1093_v40  ;;  %v1191_v21 = vsel %vm4442_vm8, 0, %v1190_v7  ;;  %1133 = vst [vmem:[#allocation2 + $0x1e0] sm:$0xff] %v5391_v63  ;;  %v5400_v35 = vsel %vm4567_vm10, %v4639_v50, %v1223_v52  ;;  %v1134_v16 = vld [vmem:[#allocation2 + $0x228] sm:$0xff]  ;;  %v6102_v58 = vld [vmem:[#allocation7_spill] sm:$0xff] }
  0xae   : > { %1192 = vst [vmem:[#allocation2 + $0x1a8] sm:$0x80] %v1191_v21  ;;  %1225 = vst [vmem:[#allocation2 + $0x40] sm:$0xff] %v5400_v35  ;;  %v5408_v11 = vsel %vm4343_vm7, %v6102_v58, %v1134_v16  ;;  %v1226_v2 = vld [vmem:[#allocation2 + $0x88] sm:$0xff]  ;;  %v1229_v18 = vld [vmem:[#allocation2 + $0xd0] sm:$0xff]  ;;  %2262 = vmatmul.mubr.bf16.gmra.mrb[56].mxu1 %v5095_v49 }
  0xaf   : > { %1136 = vst [vmem:[#allocation2 + $0x228] sm:$0xff] %v5408_v11  ;;  %v5414_v50 = vsel %vm4567_vm10, %v4707_v48, %v1226_v2  ;;  %v5419_v0 = vsel %vm4567_vm10, %v4739_v34, %v1229_v18  ;;  %v1137_v44 = vld [vmem:[#allocation2 + $0x270] sm:$0xff]  ;;  %v4087_v16 = vld [vmem:[%s6016_s4 + $0x220] sm:$0xff]   ;;  %3953 = vmatpush3.bf16.msra.mxu0 %v4085_v17 }
  0xb0   : > { %v1232_v52 = vld [vmem:[#allocation2 + $0x118] sm:$0xff]  ;;  %1228 = vst [vmem:[#allocation2 + $0x88] sm:$0xff] %v5414_v50  ;;  %1231 = vst [vmem:[#allocation2 + $0xd0] sm:$0xff] %v5419_v0  ;;  %v5429_v48 = vsel %vm4343_vm7, %v4903_v1, %v1137_v44  ;;  %v1290_v23 = vld [vmem:[#allocation2 + $0xb0] sm:$0xff]  ;;  %3954 = vmatprep.subr.bf16.mxu0 %v4087_v16 }
  0xb1   : > { %v5434_v34 = vsel %vm4567_vm10, %v4820_v5, %v1232_v52  ;;  %1139 = vst [vmem:[#allocation2 + $0x270] sm:$0xff] %v5429_v48  ;;  %v1193_v38 = vld [vmem:[#allocation2 + $0x1f0] sm:$0x80]  ;;  %v1095_v40 = vld [vmem:[#allocation2 + $0x300] sm:$0x1]  ;;  %v4088_v5 = vld [vmem:[%s6016_s4 + $0x228] sm:$0xff]  }
  0xb2   : > { %1234 = vst [vmem:[#allocation2 + $0x118] sm:$0xff] %v5434_v34  ;;  %v1194_v58 = vsel %vm4442_vm8, 0, %v1193_v38  ;;  %v1096_v1 = vsel %vm4190_vm2, 0, %v1095_v40  ;;  %v1196_v44 = vld [vmem:[#allocation2 + $0x238] sm:$0x80]  ;;  %2359 = vmatmul.mubr.bf16.gmra.mrb[56].mxu0 %v1290_v23  ;;  %v4089_v61 = vld [vmem:[%s6016_s4 + $0x230] sm:$0xff]  }
  0xb3   : > { %v1235_v7 = vld [vmem:[#allocation2 + $0x160] sm:$0xff]  ;;  %1195 = vst [vmem:[#allocation2 + $0x1f0] sm:$0x80] %v1194_v58  ;;  %1097 = vst [vmem:[#allocation2 + $0x300] sm:$0x1] %v1096_v1  ;;  %2366 = vmatprep.mubr.bf16.mxu0 %v5090_v42  ;;  %3955 = vmatpush3.bf16.msra.mxu0 %v4087_v16  ;;  %v1299_v52 = vld [vmem:[#allocation2 + $0xf8] sm:$0xff] }
  0xb4   : > { %v1140_v21 = vld [vmem:[#allocation2 + $0x2b8] sm:$0xff]  ;;  %v5448_v2 = vsel %vm4567_vm10, %v4889_v30, %v1235_v7  ;;  %3956 = vmatprep.subr.bf16.mxu0 %v4088_v5  ;;  %v1199_v23 = vld [vmem:[#allocation2 + $0x280] sm:$0x80]  ;;  %v1202_v58 = vld [vmem:[#allocation2 + $0x2c8] sm:$0x80] }
  0xb5   : > { %v5453_v17 = vsel %vm4343_vm7, %v4967_v62, %v1140_v21  ;;  %v1238_v18 = vld [vmem:[#allocation2 + $0x1a8] sm:$0xff]  ;;  %1237 = vst [vmem:[#allocation2 + $0x160] sm:$0xff] %v5448_v2  ;;  %v1197_v62 = vsel %vm4442_vm8, 0, %v1196_v44  ;;  %v1200_v9 = vsel %vm4442_vm8, 0, %v1199_v23  ;;  %v4090_v16 = vld [vmem:[%s6016_s4 + $0x238] sm:$0xff]   ;;  %v1308_v49 = vld [vmem:[#allocation2 + $0x140] sm:$0xff] }
  0xb6   : > { %1142 = vst [vmem:[#allocation2 + $0x2b8] sm:$0xff] %v5453_v17  ;;  %v5461_v30 = vsel %vm4567_vm10, %v4943_v56, %v1238_v18  ;;  %1198 = vst [vmem:[#allocation2 + $0x238] sm:$0x80] %v1197_v62  ;;  %v1098_v56 = vld [vmem:[#allocation2 + $0x348] sm:$0x1] }
  0xb7   : > { %1240 = vst [vmem:[#allocation2 + $0x1a8] sm:$0xff] %v5461_v30  ;;  %3957 = vmatpush3.bf16.msra.mxu0 %v4088_v5  ;;  %v1099_v42 = vsel %vm4190_vm2, 0, %v1098_v56  ;;  %1201 = vst [vmem:[#allocation2 + $0x280] sm:$0x80] %v1200_v9  ;;  %v6103_v5 = vld [vmem:[#allocation8_spill] sm:$0xff]  ;;  %v6105_v9 = vld [vmem:[#allocation10_spill] sm:$0xff] }
  0xb8   : > { %3958 = vmatprep.subr.bf16.mxu0 %v4089_v61  ;;  %1100 = vst [vmem:[#allocation2 + $0x348] sm:$0x1] %v1099_v42  ;;  %2269 = vmatprep.mubr.bf16.mxu1 %v6103_v5  ;;  %v1205_v18 = vld [vmem:[#allocation2 + $0x310] sm:$0x80]  ;;  %v1101_v44 = vld [vmem:[#allocation2 + $0x390] sm:$0x1] }
  0xb9   : > { %v1206_v23 = vsel %vm4442_vm8, 0, %v1205_v18  ;;  %v1208_v56 = vld [vmem:[#allocation2 + $0x358] sm:$0x80]  ;;  %v6106_v42 = vld [vmem:[#allocation11_spill] sm:$0xff] }
  0xba   : > { %v1241_v38 = vld [vmem:[#allocation2 + $0x1f0] sm:$0xff]  ;;  %v1143_v40 = vld [vmem:[#allocation2 + $0x300] sm:$0xff]  ;;  %2367 = vmatmul.mubr.bf16.gmra.mrb[60].mxu0 %v1299_v52  ;;  %1207 = vst [vmem:[#allocation2 + $0x310] sm:$0x80] %v1206_v23 }
  0xbb   : > { %v5481_v7 = vsel %vm4567_vm10, %v4972_v39, %v1241_v38  ;;  %v5486_v21 = vsel %vm4343_vm7, %v4360_v13, %v1143_v40  ;;  %v1203_v39 = vsel %vm4442_vm8, 0, %v1202_v58  ;;  %2374 = vmatprep.mubr.bf16.mxu0 %v5112_v54  ;;  %3959 = vmatpush3.bf16.msra.mxu0 %v4089_v61  ;;  %v1102_v54 = vsel %vm4190_vm2, 0, %v1101_v44  ;;  %v6104_v38 = vld [vmem:[#allocation9_spill] sm:$0xff]  ;;  %v1211_v58 = vld [vmem:[#allocation2 + $0x3a0] sm:$0x80] }
  0xbc   : > { %1243 = vst [vmem:[#allocation2 + $0x1f0] sm:$0xff] %v5481_v7  ;;  %1145 = vst [vmem:[#allocation2 + $0x300] sm:$0xff] %v5486_v21  ;;  %3960 = vmatprep.subr.bf16.mxu0 %v4090_v16  ;;  %2270 = vmatmul.mubr.bf16.gmra.mrb[60].mxu1 %v6104_v38 }
  0xbd   : > { %v1244_v1 = vld [vmem:[#allocation2 + $0x238] sm:$0xff]  ;;  %1204 = vst [vmem:[#allocation2 + $0x2c8] sm:$0x80] %v1203_v39  ;;  %1103 = vst [vmem:[#allocation2 + $0x390] sm:$0x1] %v1102_v54  ;;  %2277 = vmatprep.mubr.bf16.mxu1 %v6105_v9 }
  0xbe   : > { %v5498_v13 = vsel %vm4567_vm10, %v4988_v55, %v1244_v1  ;;  %v1247_v62 = vld [vmem:[#allocation2 + $0x280] sm:$0xff]  ;;  %v1104_v1 = vld [vmem:[#allocation2 + $0x3d8] sm:$0x1]  ;;  %v1217_v9 = vld [vmem:[#allocation2 + $0x430] sm:$0x80] }
  0xbf   : > { %1246 = vst [vmem:[#allocation2 + $0x238] sm:$0xff] %v5498_v13  ;;  %3961 = vmatpush3.bf16.msra.mxu0 %v4090_v16  ;;  %v1146_v52 = vld [vmem:[#allocation2 + $0x348] sm:$0xff]  ;;  %v5508_v55 = vsel %vm4567_vm10, %v5032_v10, %v1247_v62  ;;  %v1209_v10 = vsel %vm4442_vm8, 0, %v1208_v56  ;;  %v1105_v18 = vsel %vm4190_vm2, 0, %v1104_v1  ;;  %v1107_v54 = vld [vmem:[#allocation2 + $0x420] sm:$0x1] }
  0xc0   : > { %v5513_v61 = vsel %vm4343_vm7, %v4374_v22, %v1146_v52  ;;  %1249 = vst [vmem:[#allocation2 + $0x280] sm:$0xff] %v5508_v55  ;;  %1210 = vst [vmem:[#allocation2 + $0x358] sm:$0x80] %v1209_v10  ;;  %v1317_v16 = vld [vmem:[#allocation2 + $0x188] sm:$0xff]  ;;  %v6109_v1 = vld [vmem:[#allocation15_spill] sm:$0xff] }
  0xc1   : > { %1148 = vst [vmem:[#allocation2 + $0x348] sm:$0xff] %v5513_v61  ;;  %v1253_v39 = vld [vmem:[#allocation2 + $0x310] sm:$0xff]  ;;  %1106 = vst [vmem:[#allocation2 + $0x3d8] sm:$0x1] %v1105_v18  ;;  %v1214_v62 = vld [vmem:[#allocation2 + $0x3e8] sm:$0x80] }
  0xc2   : > { %2375 = vmatmul.mubr.bf16.gmra.mrb[64].mxu0 %v1308_v49  ;;  %v1212_v49 = vsel %vm4442_vm8, 0, %v1211_v58  ;;  %v5535_v44 = vsel %vm4567_vm10, %v5016_v47, %v1253_v39  ;;  %v6107_v52 = vld [vmem:[#allocation12_spill] sm:$0xff]  ;;  %v1215_v47 = vsel %vm4442_vm8, 0, %v1214_v62  ;;  %v1302_v39 = vld [vmem:[#allocation2 + $0x110] sm:$0xff]  ;;  %v1320_v62 = vld [vmem:[#allocation2 + $0x1a0] sm:$0xff] }
  0xc3   : > { %2382 = vmatprep.mubr.bf16.mxu0 %v6106_v42  ;;  %1213 = vst [vmem:[#allocation2 + $0x3a0] sm:$0x80] %v1212_v49  ;;  %1255 = vst [vmem:[#allocation2 + $0x310] sm:$0xff] %v5535_v44  ;;  %v4094_v58 = vld [vmem:[#allocation2 + $0x248] sm:$0xff] }
  0xc4   : > { %v1250_v40 = vld [vmem:[#allocation2 + $0x2c8] sm:$0xff]  ;;  %v1149_v5 = vld [vmem:[#allocation2 + $0x390] sm:$0xff]  ;;  %2278 = vmatmul.mubr.bf16.gmra.mrb[64].mxu1 %v6107_v52  ;;  %1216 = vst [vmem:[#allocation2 + $0x3e8] sm:$0x80] %v1215_v47 }
  0xc5   : > { %v5525_v22 = vsel %vm4567_vm10, %v5064_v37, %v1250_v40  ;;  %v5540_v37 = vsel %vm4343_vm7, %v4451_v8, %v1149_v5  ;;  %2285 = vmatprep.mubr.bf16.mxu1 %v5178_v15  ;;  %v1108_v40 = vsel %vm4190_vm2, 0, %v1107_v54  ;;  %v1311_v5 = vld [vmem:[#allocation2 + $0x158] sm:$0xff]  ;;  %v1389_v49 = vld [vmem:[#allocation2 + $0x3c8] sm:$0xff] }
  0xc6   : > { %1252 = vst [vmem:[#allocation2 + $0x2c8] sm:$0xff] %v5525_v22  ;;  %1151 = vst [vmem:[#allocation2 + $0x390] sm:$0xff] %v5540_v37  ;;  %v1329_v54 = vld [vmem:[#allocation2 + $0x1e8] sm:$0xff] }
  0xc7   : > { %v1256_v23 = vld [vmem:[#allocation2 + $0x358] sm:$0xff]  ;;  %1109 = vst [vmem:[#allocation2 + $0x420] sm:$0x1] %v1108_v40  ;;  %v6113_v40 = vld [vmem:[#allocation13_spill] sm:$0xff] }
  0xc8   : > { %v5552_v8 = vsel %vm4567_vm10, %v5078_v31, %v1256_v23  ;;  %v1152_v38 = vld [vmem:[#allocation2 + $0x3d8] sm:$0xff]  ;;  %v4093_v31 = vld [vmem:[#allocation2 + $0x200] sm:$0xff] }
  0xc9   : > { %1258 = vst [vmem:[#allocation2 + $0x358] sm:$0xff] %v5552_v8 }
  0xca   : > { %2383 = vmatmul.mubr.bf16.gmra.mrb[68].mxu0 %v1317_v16  ;;  %v1259_v56 = vld [vmem:[#allocation2 + $0x3a0] sm:$0xff] }
  0xcb   : > { %2390 = vmatprep.mubr.bf16.mxu0 %v5183_v33  ;;  %v5560_v15 = vsel %vm4567_vm10, %v5082_v26, %v1259_v56  ;;  %v5565_v33 = vsel %vm4343_vm7, %v4578_v27, %v1152_v38  ;;  %v1262_v10 = vld [vmem:[#allocation2 + $0x3e8] sm:$0xff]  ;;  %v1218_v26 = vsel %vm4442_vm8, 0, %v1217_v9  ;;  %v6112_v56 = vld [vmem:[#allocation6_spill] sm:$0xff]  ;;  %v1338_v38 = vld [vmem:[#allocation2 + $0x230] sm:$0xff] }
  0xcc   : > { %2286 = vmatmul.mubr.bf16.gmra.mrb[68].mxu1 %v5188_v3  ;;  %1261 = vst [vmem:[#allocation2 + $0x3a0] sm:$0xff] %v5560_v15  ;;  %1154 = vst [vmem:[#allocation2 + $0x3d8] sm:$0xff] %v5565_v33  ;;  %v5575_v27 = vsel %vm4567_vm10, %v5217_v32, %v1262_v10  ;;  %v1220_v3 = vld [vmem:[#allocation2 + $0x478] sm:$0x80] }
  0xcd   : > { %2293 = vmatprep.mubr.bf16.mxu1 %v5196_v24  ;;  %1264 = vst [vmem:[#allocation2 + $0x3e8] sm:$0xff] %v5575_v27  ;;  %1219 = vst [vmem:[#allocation2 + $0x430] sm:$0x80] %v1218_v26  ;;  %v1221_v42 = vsel %vm4442_vm8, 0, %v1220_v3  ;;  %v1110_v24 = vld [vmem:[#allocation2 + $0x468] sm:$0x1] }
  0xce   : > { %1222 = vst [vmem:[#allocation2 + $0x478] sm:$0x80] %v1221_v42  ;;  %v1155_v16 = vld [vmem:[#allocation2 + $0x420] sm:$0xff]  ;;  %v1111_v32 = vsel %vm4190_vm2, 0, %v1110_v24 }
  0xcf   : > { %1112 = vst [vmem:[#allocation2 + $0x468] sm:$0x1] %v1111_v32  ;;  %v1347_v32 = vld [vmem:[#allocation2 + $0x278] sm:$0xff] }
  0xd2   : > { %2391 = vmatmul.mubr.bf16.gmra.mrb[72].mxu0 %v4093_v31 }
  0xd3   : > { %2398 = vmatprep.mubr.bf16.mxu0 %v5206_v59  ;;  %v5585_v59 = vsel %vm4343_vm7, %v5265_v60, %v1155_v16  ;;  %v1284_v60 = vld [vmem:[#allocation2 + $0x80] sm:$0xff] }
  0xd4   : > { %2294 = vmatmul.mubr.bf16.gmra.mrb[72].mxu1 %v5224_v29  ;;  %1157 = vst [vmem:[#allocation2 + $0x420] sm:$0xff] %v5585_v59  ;;  %v1265_v4 = vld [vmem:[#allocation2 + $0x430] sm:$0xff] }
  0xd5   : > { %2301 = vmatprep.mubr.bf16.mxu1 %v5289_v53  ;;  %v5596_v6 = vsel %vm4567_vm10, %v5343_v45, %v1265_v4  ;;  %v4095_v29 = vld [vmem:[#allocation2 + $0x290] sm:$0xff]  ;;  %v4096_v53 = vld [vmem:[#allocation2 + $0x2d8] sm:$0xff] }
  0xd6   : > { %1267 = vst [vmem:[#allocation2 + $0x430] sm:$0xff] %v5596_v6  ;;  %v6108_v45 = vld [vmem:[#allocation14_spill] sm:$0xff] }
  0xda   : > { %2399 = vmatmul.mubr.bf16.gmra.mrb[76].mxu0 %v4094_v58 }
  0xdb   : > { %2406 = vmatprep.mubr.bf16.mxu0 %v5238_v46  ;;  %v4097_v46 = vld [vmem:[#allocation2 + $0x320] sm:$0xff] }
  0xdc   : > { %2302 = vmatmul.mubr.bf16.gmra.mrb[76].mxu1 %v5243_v51  ;;  %v1371_v51 = vld [vmem:[#allocation2 + $0x338] sm:$0xff] }
  0xdd   : > { %2503 = vmatprep.mubr.bf16.mxu1 %v1275_v14 }
  0xe2   : > { %2407 = vmatmul.mubr.bf16.gmra.mrb[80].mxu0 %v4095_v29 }
  0xe3   : > { %2414 = vmatprep.mubr.bf16.mxu0 %v5250_v28  ;;  %v6110_v28 = vld [vmem:[#allocation16_spill] sm:$0xff] }
  0xe4   : > { %2504 = vmatmul.mubr.bf16.vlgmr.msra.gmra.mrb[80].mxu1 %v5270_v25  ;;  %v1380_v25 = vld [vmem:[#allocation2 + $0x380] sm:$0xff] }
  0xe5   : > { %2511 = vmatprep.mubr.bf16.mxu1 %v1284_v60 }
  0xea   : > { %2415 = vmatmul.mubr.bf16.gmra.mrb[84].mxu0 %v4096_v53 }
  0xeb   : > { %2422 = vmatprep.mubr.bf16.mxu0 %v5275_v20 }
  0xec   : > { %2512 = vmatmul.mubr.bf16.gmra.mrb[84].mxu1 %v6108_v45 }
  0xed   : > { %2519 = vmatprep.mubr.bf16.mxu1 %v1293_v12 }
  0xf2   : > { %2423 = vmatmul.mubr.bf16.gmra.mrb[88].mxu0 %v4097_v46 }
  0xf3   : > { %2430 = vmatprep.mubr.bf16.mxu0 %v6109_v1 }
  0xf4   : > { %2520 = vmatmul.mubr.bf16.gmra.mrb[88].mxu1 %v6110_v28 }
  0xf5   : > { %2527 = vmatprep.mubr.bf16.mxu1 %v1302_v39 }
  0xfa   : > { %2431 = vmatmul.mubr.bf16.gmra.mrb[92].mxu0 %v1371_v51  ;;  %v1356_v51 = vld [vmem:[#allocation2 + $0x2c0] sm:$0xff] }
  0xfb   : > { %2438 = vmatprep.mubr.bf16.mxu0 %v5319_v19 }
  0xfc   : > { %2528 = vmatmul.mubr.bf16.gmra.mrb[92].mxu1 %v5328_v57  ;;  %v1398_v57 = vld [vmem:[#allocation2 + $0x410] sm:$0xff] }
  0xfd   : > { %2535 = vmatprep.mubr.bf16.mxu1 %v1311_v5 }
 0x101   : > { %v3490_v20 = vpop.f32.mrb[0].mxu0 }
 0x102   : > { %2439 = vmatmul.mubr.bf16.gmra.mrb[96].mxu0 %v1380_v25  ;;  %v3491_v18 = vpop.f32.mrb[1].mxu0 }
 0x103   : > { %2446 = vmatprep.mubr.bf16.mxu0 %v5333_v41  ;;  %v5609_v52 = vadd.f32 %v3491_v18, %v3490_v20  ;;  %v3493_v23 = vpop.f32.mrb[2].mxu0  ;;  %v6111_v41 = vld [vmem:[#allocation3_spill] sm:$0xff] }
 0x104   : > { %v3494_v47 = vpop.f32.mrb[3].mxu0  ;;  %2536 = vmatmul.mubr.bf16.gmra.mrb[96].mxu1 %v5360_v36 }
 0x105   : > { %v5612_v19 = vadd.f32 %v3494_v47, %v3493_v23  ;;  %2543 = vmatprep.mubr.bf16.mxu1 %v1320_v62  ;;  %v1365_v47 = vld [vmem:[#allocation2 + $0x308] sm:$0xff] }
 0x10a   : > { %2447 = vmatmul.mubr.bf16.gmra.mrb[100].mxu0 %v1389_v49 }
 0x10b   : > { %2454 = vmatprep.mubr.bf16.mxu0 %v5366_v43 }
 0x10c   : > { %2544 = vmatmul.mubr.bf16.gmra.mrb[100].mxu1 %v6111_v41 }
 0x10d   : > { %2551 = vmatprep.mubr.bf16.mxu1 %v1329_v54 }
 0x10e   : > { %v3562_v36 = vpop.f32.mrb[0].mxu1  ;;  %v3496_v31 = vpop.f32.mrb[4].mxu0 }
 0x10f   : > { %v3563_v43 = vpop.f32.mrb[1].mxu1  ;;  %v3497_v10 = vpop.f32.mrb[5].mxu0 }
 0x110   : > { %v5620_v9 = vadd.f32 %v3563_v43, %v3562_v36  ;;  %v3565_v26 = vpop.f32.mrb[2].mxu1  ;;  %v5622_v3 = vadd.f32 %v3497_v10, %v3496_v31  ;;  %v3499_v42 = vpop.f32.mrb[6].mxu0 }
 0x111   : > { %v3566_v16 = vpop.f32.mrb[3].mxu1  ;;  %v3500_v24 = vpop.f32.mrb[7].mxu0 }
 0x112   : > { %2455 = vmatmul.mubr.bf16.gmra.mrb[104].mxu0 %v1398_v57  ;;  %v5624_v58 = vadd.f32 %v3566_v16, %v3565_v26  ;;  %v5626_v4 = vadd.f32 %v3500_v24, %v3499_v42  ;;  %v1374_v26 = vld [vmem:[#allocation2 + $0x350] sm:$0xff] }
 0x113   : > { %2462 = vmatprep.mubr.bf16.mxu0 %v6112_v56 }
 0x114   : > { %2552 = vmatmul.mubr.bf16.gmra.mrb[104].mxu1 %v5391_v63 }
 0x115   : > { %2559 = vmatprep.mubr.bf16.mxu1 %v1338_v38 }
 0x116   : > { %v3568_v63 = vpop.f32.mrb[4].mxu1 }
 0x117   : > { %v3569_v14 = vpop.f32.mrb[5].mxu1 }
 0x118   : > { %v5631_v60 = vadd.f32 %v3569_v14, %v3568_v63  ;;  %v3571_v53 = vpop.f32.mrb[6].mxu1 }
 0x119   : > { %v3572_v45 = vpop.f32.mrb[7].mxu1 }
 0x11a   : > { %2463 = vmatmul.mubr.bf16.gmra.mrb[108].mxu0 %v6113_v40  ;;  %v5635_v39 = vadd.f32 %v3572_v45, %v3571_v53 }
 0x11b   : > { %3962 = vmatprep.mubr.bf16.mxu0 %v5400_v35  ;;  %v3502_v35 = vpop.f32.mrb[8].mxu0 }
 0x11c   : > { %2560 = vmatmul.mubr.bf16.gmra.mrb[108].mxu1 %v5408_v11  ;;  %v3503_v29 = vpop.f32.mrb[9].mxu0 }
 0x11d   : > { %2567 = vmatprep.mubr.bf16.mxu1 %v1347_v32  ;;  %v5633_v12 = vadd.f32 %v3503_v29, %v3502_v35  ;;  %v3505_v46 = vpop.f32.mrb[10].mxu0 }
 0x11e   : > { %v3506_v1 = vpop.f32.mrb[11].mxu0 }
 0x11f   : > { %v5637_v11 = vadd.f32 %v3506_v1, %v3505_v46  ;;  %v1383_v46 = vld [vmem:[#allocation2 + $0x398] sm:$0xff] }
 0x122   : > { %3963 = vmatmul.mubr.bf16.vlgmr.msra.gmra.mrb[112].mxu0 %v5414_v50  ;;  %v3574_v50 = vpop.f32.mrb[8].mxu1 }
 0x123   : > { %3966 = vmatprep.mubr.bf16.mxu0 %v5419_v0  ;;  %v3508_v0 = vpop.f32.mrb[12].mxu0  ;;  %v3575_v28 = vpop.f32.mrb[9].mxu1 }
 0x124   : > { %2568 = vmatmul.mubr.bf16.gmra.mrb[112].mxu1 %v5429_v48  ;;  %v3509_v25 = vpop.f32.mrb[13].mxu0  ;;  %v5642_v5 = vadd.f32 %v3575_v28, %v3574_v50  ;;  %v3577_v20 = vpop.f32.mrb[10].mxu1 }
 0x125   : > { %2575 = vmatprep.mubr.bf16.mxu1 %v1356_v51  ;;  %v5644_v49 = vadd.f32 %v3509_v25, %v3508_v0  ;;  %v3511_v18 = vpop.f32.mrb[14].mxu0  ;;  %v3578_v62 = vpop.f32.mrb[11].mxu1 }
 0x126   : > { %v3512_v23 = vpop.f32.mrb[15].mxu0  ;;  %v5646_v57 = vadd.f32 %v3578_v62, %v3577_v20 }
 0x127   : > { %v5648_v48 = vadd.f32 %v3512_v23, %v3511_v18 }
 0x12a   : > { %3967 = vmatmul.mubr.bf16.gmra.mrb[116].mxu0 %v5434_v34  ;;  %v3580_v34 = vpop.f32.mrb[12].mxu1 }
 0x12b   : > { %3970 = vmatprep.mubr.bf16.mxu0 %v5448_v2  ;;  %v3514_v2 = vpop.f32.mrb[16].mxu0  ;;  %v3581_v54 = vpop.f32.mrb[13].mxu1 }
 0x12c   : > { %2576 = vmatmul.mubr.bf16.gmra.mrb[116].mxu1 %v5453_v17  ;;  %v3515_v41 = vpop.f32.mrb[17].mxu0  ;;  %v5653_v56 = vadd.f32 %v3581_v54, %v3580_v34  ;;  %v3583_v38 = vpop.f32.mrb[14].mxu1 }
 0x12d   : > { %2583 = vmatprep.mubr.bf16.mxu1 %v1365_v47  ;;  %v5655_v36 = vadd.f32 %v3515_v41, %v3514_v2  ;;  %v3517_v31 = vpop.f32.mrb[18].mxu0  ;;  %v3584_v43 = vpop.f32.mrb[15].mxu1 }
 0x12e   : > { %v3518_v10 = vpop.f32.mrb[19].mxu0  ;;  %v5657_v42 = vadd.f32 %v3584_v43, %v3583_v38 }
 0x12f   : > { %v5659_v17 = vadd.f32 %v3518_v10, %v3517_v31 }
 0x132   : > { %3971 = vmatmul.mubr.bf16.gmra.mrb[120].mxu0 %v5461_v30  ;;  %v3602_v30 = vpop.f32.mrb[16].mxu1 }
 0x133   : > { %3974 = vmatprep.mubr.bf16.mxu0 %v5481_v7  ;;  %v3520_v7 = vpop.f32.mrb[20].mxu0  ;;  %v3603_v16 = vpop.f32.mrb[17].mxu1 }
 0x134   : > { %2584 = vmatmul.mubr.bf16.gmra.mrb[120].mxu1 %v5486_v21  ;;  %v3521_v24 = vpop.f32.mrb[21].mxu0  ;;  %v3604_v32 = vadd.f32 %v3603_v16, %v3602_v30  ;;  %v3605_v63 = vpop.f32.mrb[18].mxu1 }
 0x135   : > { %2591 = vmatprep.mubr.bf16.mxu1 %v1374_v26  ;;  %v5664_v35 = vadd.f32 %v3521_v24, %v3520_v7  ;;  %v3523_v14 = vpop.f32.mrb[22].mxu0  ;;  %v3606_v29 = vpop.f32.mrb[19].mxu1 }
 0x136   : > { %v3524_v53 = vpop.f32.mrb[23].mxu0  ;;  %v5667_v45 = vadd.f32 %v3604_v32, %v5609_v52  ;;  %v3607_v21 = vadd.f32 %v3606_v29, %v3605_v63 }
 0x137   : > { %v3526_v51 = vpop.f32.mrb[24].mxu0 }
 0x138   : > { %v3608_v1 = vpop.f32.mrb[20].mxu1  ;;  %v3527_v0 = vpop.f32.mrb[25].mxu0 }
 0x139   : > { %v3609_v50 = vpop.f32.mrb[21].mxu1  ;;  %v5677_v25 = vadd.f32 %v3527_v0, %v3526_v51  ;;  %v3529_v20 = vpop.f32.mrb[26].mxu0 }
 0x13a   : > { %3975 = vmatmul.mubr.bf16.gmra.mrb[124].mxu0 %v5498_v13  ;;  %v5669_v13 = vadd.f32 %v3524_v53, %v3523_v14  ;;  %v3610_v28 = vadd.f32 %v3609_v50, %v3608_v1  ;;  %v3611_v52 = vpop.f32.mrb[22].mxu1  ;;  %v3530_v62 = vpop.f32.mrb[27].mxu0  ;;  %v1411_v14 = vld [vmem:[#allocation2 + $0x478] sm:$0xff] }
 0x13b   : > { %3978 = vmatprep.mubr.bf16.mxu0 %v5508_v55  ;;  %v5674_v55 = vadd.f32 %v3607_v21, %v5612_v19  ;;  %v3612_v18 = vpop.f32.mrb[23].mxu1  ;;  %v5682_v23 = vadd.f32 %v3530_v62, %v3529_v20 }
 0x13c   : > { %2592 = vmatmul.mubr.bf16.gmra.mrb[124].mxu1 %v5513_v61  ;;  %v1392_v61 = vld [vmem:[#allocation2 + $0x3e0] sm:$0xff]  ;;  %v3613_v19 = vadd.f32 %v3612_v18, %v3611_v52 }
 0x13d   : > { %2599 = vmatprep.mubr.bf16.mxu1 %v1383_v46 }
 0x13f   : > { %v3532_v34 = vpop.f32.mrb[28].mxu0 }
 0x140   : > { %v3614_v47 = vpop.f32.mrb[24].mxu1  ;;  %v3533_v54 = vpop.f32.mrb[29].mxu0 }
 0x141   : > { %v3615_v2 = vpop.f32.mrb[25].mxu1  ;;  %v5690_v38 = vadd.f32 %v3533_v54, %v3532_v34  ;;  %v3535_v31 = vpop.f32.mrb[30].mxu0 }
 0x142   : > { %3979 = vmatmul.mubr.bf16.gmra.mrb[128].mxu0 %v5525_v22  ;;  %v5680_v22 = vadd.f32 %v3610_v28, %v5622_v3  ;;  %v3616_v41 = vadd.f32 %v3615_v2, %v3614_v47  ;;  %v3617_v3 = vpop.f32.mrb[26].mxu1  ;;  %v3536_v10 = vpop.f32.mrb[31].mxu0  ;;  %v1409_v28 = vld [vmem:[#allocation2 + $0x468] sm:$0xff] }
 0x143   : > { %3982 = vmatprep.mubr.bf16.mxu0 %v5535_v44  ;;  %v5687_v44 = vadd.f32 %v3613_v19, %v5626_v4  ;;  %v3618_v43 = vpop.f32.mrb[27].mxu1  ;;  %v5695_v4 = vadd.f32 %v3536_v10, %v3535_v31 }
 0x144   : > { %2600 = vmatmul.mubr.bf16.gmra.mrb[128].mxu1 %v5540_v37  ;;  %v5693_v37 = vadd.f32 %v3616_v41, %v5633_v12 }
 0x145   : > { %2607 = vmatprep.mubr.bf16.mxu1 %v1392_v61 }
 0x147   : > { %v3538_v30 = vpop.f32.mrb[32].mxu0 }
 0x148   : > { %v3539_v16 = vpop.f32.mrb[33].mxu0 }
 0x149   : > { %v3620_v26 = vpop.f32.mrb[28].mxu1  ;;  %v5704_v32 = vadd.f32 %v3539_v16, %v3538_v30  ;;  %v3541_v63 = vpop.f32.mrb[34].mxu0 }
 0x14a   : > { %3983 = vmatmul.mubr.bf16.gmra.mrb[132].mxu0 %v5552_v8  ;;  %v3619_v8 = vadd.f32 %v3618_v43, %v3617_v3  ;;  %v3621_v7 = vpop.f32.mrb[29].mxu1  ;;  %v3542_v29 = vpop.f32.mrb[35].mxu0 }
 0x14b   : > { %3986 = vmatprep.mubr.bf16.mxu0 %v5560_v15  ;;  %v3622_v12 = vadd.f32 %v3621_v7, %v3620_v26  ;;  %v3623_v24 = vpop.f32.mrb[30].mxu1  ;;  %v5709_v53 = vadd.f32 %v3542_v29, %v3541_v63 }
 0x14c   : > { %2608 = vmatmul.mubr.bf16.gmra.mrb[132].mxu1 %v5565_v33  ;;  %v5700_v15 = vadd.f32 %v3619_v8, %v5637_v11  ;;  %v3624_v33 = vpop.f32.mrb[31].mxu1 }
 0x14d   : > { %2615 = vmatprep.mubr.bf16.mxu1 %v6113_v40  ;;  %v3625_v11 = vadd.f32 %v3624_v33, %v3623_v24  ;;  %v4098_v40 = vld [vmem:[#allocation2 + $0x8] sm:$0xff] }
 0x14f   : > { %v3544_v21 = vpop.f32.mrb[36].mxu0 }
 0x150   : > { %v3545_v51 = vpop.f32.mrb[37].mxu0 }
 0x151   : > { %v3626_v46 = vpop.f32.mrb[32].mxu1  ;;  %v3547_v52 = vpop.f32.mrb[38].mxu0 }
 0x152   : > { %3987 = vmatmul.mubr.bf16.gmra.mrb[136].mxu0 %v5575_v27  ;;  %v5707_v27 = vadd.f32 %v3622_v12, %v5644_v49  ;;  %v3627_v1 = vpop.f32.mrb[33].mxu1  ;;  %v5715_v49 = vadd.f32 %v3545_v51, %v3544_v21  ;;  %v3548_v18 = vpop.f32.mrb[39].mxu0 }
 0x153   : > { %3990 = vmatprep.mubr.bf16.mxu0 %v5596_v6  ;;  %v5713_v6 = vadd.f32 %v3625_v11, %v5648_v48  ;;  %v3628_v50 = vadd.f32 %v3627_v1, %v3626_v46  ;;  %v3629_v0 = vpop.f32.mrb[34].mxu1  ;;  %v5720_v48 = vadd.f32 %v3548_v18, %v3547_v52 }
 0x154   : > { %2616 = vmatmul.mubr.bf16.gmra.mrb[136].mxu1 %v5585_v59  ;;  %v3630_v20 = vpop.f32.mrb[35].mxu1 }
 0x155   : > { %2623 = vmatprep.mubr.bf16.mxu1 %v4098_v40  ;;  %v5718_v59 = vadd.f32 %v3628_v50, %v5655_v36  ;;  %v3631_v62 = vadd.f32 %v3630_v20, %v3629_v0 }
 0x157   : > { %v5723_v61 = vadd.f32 %v3631_v62, %v5659_v17  ;;  %v3550_v47 = vpop.f32.mrb[40].mxu0 }
 0x158   : > { %v3551_v2 = vpop.f32.mrb[41].mxu0 }
 0x159   : > { %v3632_v19 = vpop.f32.mrb[36].mxu1  ;;  %v5725_v3 = vadd.f32 %v3551_v2, %v3550_v47  ;;  %v3553_v31 = vpop.f32.mrb[42].mxu0 }
 0x15a   : > { %3991 = vmatmul.mubr.bf16.gmra.mrb[140].mxu0 %v1411_v14  ;;  %v3633_v34 = vpop.f32.mrb[37].mxu1  ;;  %v3554_v10 = vpop.f32.mrb[43].mxu0 }
 0x15b   : > { %v3634_v54 = vadd.f32 %v3633_v34, %v3632_v19  ;;  %v3635_v41 = vpop.f32.mrb[38].mxu1  ;;  %v5730_v26 = vadd.f32 %v3554_v10, %v3553_v31 }
 0x15c   : > { %2624 = vmatmul.mubr.bf16.gmra.mrb[140].mxu1 %v1409_v28  ;;  %v3636_v43 = vpop.f32.mrb[39].mxu1 }
 0x15d   : > { %v5728_v36 = vadd.f32 %v3634_v54, %v5664_v35  ;;  %v3637_v8 = vadd.f32 %v3636_v43, %v3635_v41 }
 0x15f   : > { %v5733_v17 = vadd.f32 %v3637_v8, %v5669_v13  ;;  %v3556_v7 = vpop.f32.mrb[44].mxu0 }
 0x160   : > { %v3557_v12 = vpop.f32.mrb[45].mxu0 }
 0x161   : > { %v3638_v30 = vpop.f32.mrb[40].mxu1  ;;  %v5735_v14 = vadd.f32 %v3557_v12, %v3556_v7  ;;  %v3559_v33 = vpop.f32.mrb[46].mxu0 }
 0x162   : > { %v3639_v16 = vpop.f32.mrb[41].mxu1  ;;  %v3560_v11 = vpop.f32.mrb[47].mxu0 }
 0x163   : > { %v3640_v24 = vadd.f32 %v3639_v16, %v3638_v30  ;;  %v3641_v63 = vpop.f32.mrb[42].mxu1  ;;  %v5740_v46 = vadd.f32 %v3560_v11, %v3559_v33 }
 0x164   : > { %v3642_v29 = vpop.f32.mrb[43].mxu1 }
 0x165   : > { %v5738_v35 = vadd.f32 %v3640_v24, %v5677_v25  ;;  %v3643_v40 = vadd.f32 %v3642_v29, %v3641_v63 }
 0x167   : > { %v5743_v13 = vadd.f32 %v3643_v40, %v5682_v23 }
 0x169   : > { %v3644_v21 = vpop.f32.mrb[44].mxu1 }
 0x16a   : > { %v3645_v51 = vpop.f32.mrb[45].mxu1 }
 0x16b   : > { %v3646_v0 = vadd.f32 %v3645_v51, %v3644_v21  ;;  %v3647_v52 = vpop.f32.mrb[46].mxu1 }
 0x16c   : > { %v3648_v18 = vpop.f32.mrb[47].mxu1 }
 0x16d   : > { %v5746_v19 = vadd.f32 %v3646_v0, %v5690_v38  ;;  %v3649_v47 = vadd.f32 %v3648_v18, %v3647_v52 }
 0x16f   : > { %v5752_v23 = vadd.f32 %v3649_v47, %v5695_v4 }
 0x171   : > { %v3650_v54 = vpop.f32.mrb[48].mxu1 }
 0x172   : > { %v3714_v1 = vpop.f32.mrb[48].mxu0  ;;  %v3651_v31 = vpop.f32.mrb[49].mxu1 }
 0x173   : > { %v3715_v50 = vpop.f32.mrb[49].mxu0  ;;  %v3652_v10 = vadd.f32 %v3651_v31, %v3650_v54  ;;  %v3653_v30 = vpop.f32.mrb[50].mxu1 }
 0x174   : > { %v3716_v28 = vadd.f32 %v3715_v50, %v3714_v1  ;;  %v3717_v20 = vpop.f32.mrb[50].mxu0  ;;  %v3654_v7 = vpop.f32.mrb[51].mxu1 }
 0x175   : > { %v3718_v62 = vpop.f32.mrb[51].mxu0  ;;  %v3655_v4 = vadd.f32 %v3654_v7, %v3653_v30 }
 0x176   : > { %v5749_v25 = vadd.f32 %v3716_v28, %v5667_v45  ;;  %v3719_v34 = vadd.f32 %v3718_v62, %v3717_v20  ;;  %v5758_v45 = vadd.f32 %v3652_v10, %v5704_v32 }
 0x178   : > { %v5755_v2 = vadd.f32 %v3719_v34, %v5674_v55  ;;  %v5764_v55 = vadd.f32 %v3655_v4, %v5709_v53 }
 0x179   : > { %v3656_v33 = vpop.f32.mrb[52].mxu1 }
 0x17a   : > { %v3657_v11 = vpop.f32.mrb[53].mxu1 }
 0x17b   : > { %v3658_v21 = vadd.f32 %v3657_v11, %v3656_v33  ;;  %v3659_v51 = vpop.f32.mrb[54].mxu1 }
 0x17c   : > { %v3660_v50 = vpop.f32.mrb[55].mxu1 }
 0x17d   : > { %v3720_v41 = vpop.f32.mrb[52].mxu0  ;;  %v3661_v53 = vadd.f32 %v3660_v50, %v3659_v51 }
 0x17e   : > { %v3721_v43 = vpop.f32.mrb[53].mxu0 }
 0x17f   : > { %v3722_v8 = vadd.f32 %v3721_v43, %v3720_v41  ;;  %v3723_v38 = vpop.f32.mrb[54].mxu0 }
 0x180   : > { %v3724_v16 = vpop.f32.mrb[55].mxu0 }
 0x181   : > { %v5761_v12 = vadd.f32 %v3722_v8, %v5680_v22  ;;  %v3725_v24 = vadd.f32 %v3724_v16, %v3723_v38  ;;  %v5770_v22 = vadd.f32 %v3658_v21, %v5715_v49  ;;  %v3662_v18 = vpop.f32.mrb[56].mxu1 }
 0x182   : > { %v3663_v47 = vpop.f32.mrb[57].mxu1 }
 0x183   : > { %v5767_v63 = vadd.f32 %v3725_v24, %v5687_v44  ;;  %v5776_v44 = vadd.f32 %v3661_v53, %v5720_v48  ;;  %v3664_v54 = vadd.f32 %v3663_v47, %v3662_v18  ;;  %v3665_v31 = vpop.f32.mrb[58].mxu1 }
 0x184   : > { %v3666_v43 = vpop.f32.mrb[59].mxu1 }
 0x185   : > { %v3726_v29 = vpop.f32.mrb[56].mxu0  ;;  %v3667_v48 = vadd.f32 %v3666_v43, %v3665_v31 }
 0x186   : > { %v3727_v40 = vpop.f32.mrb[57].mxu0 }
 0x187   : > { %v3728_v1 = vadd.f32 %v3727_v40, %v3726_v29  ;;  %v3729_v32 = vpop.f32.mrb[58].mxu0 }
 0x188   : > { %v3730_v0 = vpop.f32.mrb[59].mxu0 }
 0x189   : > { %v5773_v28 = vadd.f32 %v3728_v1, %v5693_v37  ;;  %v3731_v52 = vadd.f32 %v3730_v0, %v3729_v32  ;;  %v5782_v37 = vadd.f32 %v3664_v54, %v5725_v3 }
 0x18b   : > { %v5779_v20 = vadd.f32 %v3731_v52, %v5700_v15  ;;  %v5788_v15 = vadd.f32 %v3667_v48, %v5730_v26 }
 0x18d   : > { %v3732_v62 = vpop.f32.mrb[60].mxu0 }
 0x18e   : > { %v3733_v34 = vpop.f32.mrb[61].mxu0 }
 0x18f   : > { %v3734_v41 = vadd.f32 %v3733_v34, %v3732_v62  ;;  %v3735_v49 = vpop.f32.mrb[62].mxu0  ;;  %v3668_v7 = vpop.f32.mrb[60].mxu1 }
 0x190   : > { %v3736_v10 = vpop.f32.mrb[63].mxu0  ;;  %v3669_v4 = vpop.f32.mrb[61].mxu1 }
 0x191   : > { %v5785_v8 = vadd.f32 %v3734_v41, %v5707_v27  ;;  %v3737_v30 = vadd.f32 %v3736_v10, %v3735_v49  ;;  %v3670_v33 = vadd.f32 %v3669_v4, %v3668_v7  ;;  %v3671_v11 = vpop.f32.mrb[62].mxu1 }
 0x192   : > { %v3672_v40 = vpop.f32.mrb[63].mxu1 }
 0x193   : > { %v5791_v38 = vadd.f32 %v3737_v30, %v5713_v6  ;;  %v5794_v27 = vadd.f32 %v3670_v33, %v5735_v14  ;;  %v3673_v26 = vadd.f32 %v3672_v40, %v3671_v11 }
 0x195   : > { %v3738_v16 = vpop.f32.mrb[64].mxu0  ;;  %v5800_v6 = vadd.f32 %v3673_v26, %v5740_v46 }
 0x196   : > { %v3739_v24 = vpop.f32.mrb[65].mxu0 }
 0x197   : > { %v3740_v29 = vadd.f32 %v3739_v24, %v3738_v16  ;;  %v3741_v3 = vpop.f32.mrb[66].mxu0  ;;  %v3674_v50 = vpop.f32.mrb[64].mxu1 }
 0x198   : > { %v3742_v21 = vpop.f32.mrb[67].mxu0  ;;  %v3675_v53 = vpop.f32.mrb[65].mxu1 }
 0x199   : > { %v5797_v1 = vadd.f32 %v3740_v29, %v5718_v59  ;;  %v3743_v51 = vadd.f32 %v3742_v21, %v3741_v3  ;;  %v3676_v18 = vadd.f32 %v3675_v53, %v3674_v50  ;;  %v3677_v47 = vpop.f32.mrb[66].mxu1 }
 0x19a   : > { %v3678_v34 = vpop.f32.mrb[67].mxu1 }
 0x19b   : > { %v5803_v32 = vadd.f32 %v3743_v51, %v5723_v61  ;;  %v5806_v59 = vadd.f32 %v3676_v18, %v5620_v9  ;;  %v3679_v46 = vadd.f32 %v3678_v34, %v3677_v47 }
 0x19d   : > { %v3744_v0 = vpop.f32.mrb[68].mxu0  ;;  %v5812_v61 = vadd.f32 %v3679_v46, %v5624_v58 }
 0x19e   : > { %v3745_v52 = vpop.f32.mrb[69].mxu0 }
 0x19f   : > { %v3746_v62 = vadd.f32 %v3745_v52, %v3744_v0  ;;  %v3747_v14 = vpop.f32.mrb[70].mxu0  ;;  %v3680_v43 = vpop.f32.mrb[68].mxu1 }
 0x1a0   : > { %v3748_v54 = vpop.f32.mrb[71].mxu0  ;;  %v3681_v48 = vpop.f32.mrb[69].mxu1 }
 0x1a1   : > { %v5809_v41 = vadd.f32 %v3746_v62, %v5728_v36  ;;  %v3749_v31 = vadd.f32 %v3748_v54, %v3747_v14  ;;  %v3682_v7 = vadd.f32 %v3681_v48, %v3680_v43  ;;  %v3683_v4 = vpop.f32.mrb[70].mxu1 }
 0x1a2   : > { %v3684_v24 = vpop.f32.mrb[71].mxu1 }
 0x1a3   : > { %v5815_v49 = vadd.f32 %v3749_v31, %v5733_v17  ;;  %v5818_v36 = vadd.f32 %v3682_v7, %v5631_v60  ;;  %v3685_v58 = vadd.f32 %v3684_v24, %v3683_v4 }
 0x1a5   : > { %v3750_v10 = vpop.f32.mrb[72].mxu0  ;;  %v5824_v17 = vadd.f32 %v3685_v58, %v5635_v39 }
 0x1a6   : > { %v3751_v30 = vpop.f32.mrb[73].mxu0 }
 0x1a7   : > { %v3752_v16 = vadd.f32 %v3751_v30, %v3750_v10  ;;  %v3753_v9 = vpop.f32.mrb[74].mxu0  ;;  %v3686_v40 = vpop.f32.mrb[72].mxu1 }
 0x1a8   : > { %v3754_v33 = vpop.f32.mrb[75].mxu0  ;;  %v3687_v26 = vpop.f32.mrb[73].mxu1 }
 0x1a9   : > { %v5821_v29 = vadd.f32 %v3752_v16, %v5738_v35  ;;  %v3755_v11 = vadd.f32 %v3754_v33, %v3753_v9  ;;  %v3688_v50 = vadd.f32 %v3687_v26, %v3686_v40  ;;  %v3689_v53 = vpop.f32.mrb[74].mxu1 }
 0x1aa   : > { %v3690_v52 = vpop.f32.mrb[75].mxu1 }
 0x1ab   : > { %v5827_v3 = vadd.f32 %v3755_v11, %v5743_v13  ;;  %v5830_v35 = vadd.f32 %v3688_v50, %v5642_v5  ;;  %v3691_v39 = vadd.f32 %v3690_v52, %v3689_v53 }
 0x1ad   : > { %v3756_v21 = vpop.f32.mrb[76].mxu0  ;;  %v5836_v13 = vadd.f32 %v3691_v39, %v5646_v57 }
 0x1ae   : > { %v3757_v51 = vpop.f32.mrb[77].mxu0 }
 0x1af   : > { %v3758_v0 = vadd.f32 %v3757_v51, %v3756_v21  ;;  %v3759_v60 = vpop.f32.mrb[78].mxu0  ;;  %v3692_v34 = vpop.f32.mrb[76].mxu1 }
 0x1b0   : > { %v3760_v18 = vpop.f32.mrb[79].mxu0  ;;  %v3693_v46 = vpop.f32.mrb[77].mxu1 }
 0x1b1   : > { %v5833_v62 = vadd.f32 %v3758_v0, %v5746_v19  ;;  %v3761_v47 = vadd.f32 %v3760_v18, %v3759_v60  ;;  %v3694_v43 = vadd.f32 %v3693_v46, %v3692_v34  ;;  %v3695_v48 = vpop.f32.mrb[78].mxu1 }
 0x1b2   : > { %v3696_v30 = vpop.f32.mrb[79].mxu1 }
 0x1b3   : > { %v5839_v14 = vadd.f32 %v3761_v47, %v5752_v23  ;;  %v5842_v19 = vadd.f32 %v3694_v43, %v5653_v56  ;;  %v3697_v57 = vadd.f32 %v3696_v30, %v3695_v48 }
 0x1b5   : > { %v3762_v54 = vpop.f32.mrb[80].mxu0  ;;  %v5848_v23 = vadd.f32 %v3697_v57, %v5657_v42 }
 0x1b6   : > { %v3763_v31 = vpop.f32.mrb[81].mxu0 }
 0x1b7   : > { %v3764_v10 = vadd.f32 %v3763_v31, %v3762_v54  ;;  %v3765_v5 = vpop.f32.mrb[82].mxu0  ;;  %v3826_v33 = vpop.f32.mrb[80].mxu1 }
 0x1b8   : > { %v3766_v7 = vpop.f32.mrb[83].mxu0  ;;  %v3827_v11 = vpop.f32.mrb[81].mxu1 }
 0x1b9   : > { %v5845_v16 = vadd.f32 %v3764_v10, %v5758_v45  ;;  %v3767_v4 = vadd.f32 %v3766_v7, %v3765_v5  ;;  %v3828_v21 = vadd.f32 %v3827_v11, %v3826_v33  ;;  %v3829_v56 = vpop.f32.mrb[82].mxu1 }
 0x1ba   : > { %v3830_v50 = vpop.f32.mrb[83].mxu1 }
 0x1bb   : > { %v5851_v9 = vadd.f32 %v3767_v4, %v5764_v55  ;;  %v3831_v53 = vadd.f32 %v3830_v50, %v3829_v56  ;;  %v5857_v42 = vadd.f32 %v3828_v21, %v5749_v25 }
 0x1bd   : > { %v3768_v24 = vpop.f32.mrb[84].mxu0  ;;  %v5863_v60 = vadd.f32 %v3831_v53, %v5755_v2 }
 0x1be   : > { %v3769_v58 = vpop.f32.mrb[85].mxu0 }
 0x1bf   : > { %v3770_v40 = vadd.f32 %v3769_v58, %v3768_v24  ;;  %v3771_v26 = vpop.f32.mrb[86].mxu0  ;;  %v3832_v18 = vpop.f32.mrb[84].mxu1 }
 0x1c0   : > { %v3772_v51 = vpop.f32.mrb[87].mxu0  ;;  %v3833_v47 = vpop.f32.mrb[85].mxu1 }
 0x1c1   : > { %v5854_v45 = vadd.f32 %v3770_v40, %v5770_v22  ;;  %v3773_v0 = vadd.f32 %v3772_v51, %v3771_v26  ;;  %v3834_v54 = vadd.f32 %v3833_v47, %v3832_v18  ;;  %v3835_v22 = vpop.f32.mrb[86].mxu1 }
 0x1c2   : > { %v3836_v43 = vpop.f32.mrb[87].mxu1 }
 0x1c3   : > { %v5860_v55 = vadd.f32 %v3773_v0, %v5776_v44  ;;  %v3837_v48 = vadd.f32 %v3836_v43, %v3835_v22  ;;  %v5869_v44 = vadd.f32 %v3834_v54, %v5761_v12 }
 0x1c5   : > { %v3774_v52 = vpop.f32.mrb[88].mxu0  ;;  %v5875_v5 = vadd.f32 %v3837_v48, %v5767_v63 }
 0x1c6   : > { %v3775_v39 = vpop.f32.mrb[89].mxu0 }
 0x1c7   : > { %v3776_v34 = vadd.f32 %v3775_v39, %v3774_v52  ;;  %v3777_v46 = vpop.f32.mrb[90].mxu0  ;;  %v3838_v7 = vpop.f32.mrb[88].mxu1 }
 0x1c8   : > { %v3778_v31 = vpop.f32.mrb[91].mxu0  ;;  %v3839_v4 = vpop.f32.mrb[89].mxu1 }
 0x1c9   : > { %v5866_v10 = vadd.f32 %v3776_v34, %v5782_v37  ;;  %v3779_v25 = vadd.f32 %v3778_v31, %v3777_v46  ;;  %v3840_v33 = vadd.f32 %v3839_v4, %v3838_v7  ;;  %v3841_v37 = vpop.f32.mrb[90].mxu1 }
 0x1ca   : > { %v3842_v40 = vpop.f32.mrb[91].mxu1 }
 0x1cb   : > { %v5872_v2 = vadd.f32 %v3779_v25, %v5788_v15  ;;  %v3843_v26 = vadd.f32 %v3842_v40, %v3841_v37  ;;  %v5881_v15 = vadd.f32 %v3840_v33, %v5773_v28 }
 0x1cd   : > { %v3780_v30 = vpop.f32.mrb[92].mxu0  ;;  %v5887_v56 = vadd.f32 %v3843_v26, %v5779_v20 }
 0x1ce   : > { %v3781_v57 = vpop.f32.mrb[93].mxu0 }
 0x1cf   : > { %v3782_v24 = vadd.f32 %v3781_v57, %v3780_v30  ;;  %v3783_v58 = vpop.f32.mrb[94].mxu0  ;;  %v3844_v50 = vpop.f32.mrb[92].mxu1 }
 0x1d0   : > { %v3784_v11 = vpop.f32.mrb[95].mxu0  ;;  %v3845_v53 = vpop.f32.mrb[93].mxu1 }
 0x1d1   : > { %v5878_v21 = vadd.f32 %v3782_v24, %v5794_v27  ;;  %v3785_v12 = vadd.f32 %v3784_v11, %v3783_v58  ;;  %v3846_v18 = vadd.f32 %v3845_v53, %v3844_v50  ;;  %v3847_v27 = vpop.f32.mrb[94].mxu1 }
 0x1d2   : > { %v3848_v34 = vpop.f32.mrb[95].mxu1 }
 0x1d3   : > { %v5884_v63 = vadd.f32 %v3785_v12, %v5800_v6  ;;  %v3849_v46 = vadd.f32 %v3848_v34, %v3847_v27  ;;  %v5893_v6 = vadd.f32 %v3846_v18, %v5785_v8 }
 0x1d5   : > { %v3786_v51 = vpop.f32.mrb[96].mxu0  ;;  %v5899_v22 = vadd.f32 %v3849_v46, %v5791_v38 }
 0x1d6   : > { %v3787_v0 = vpop.f32.mrb[97].mxu0 }
 0x1d7   : > { %v3788_v52 = vadd.f32 %v3787_v0, %v3786_v51  ;;  %v3789_v39 = vpop.f32.mrb[98].mxu0  ;;  %v3850_v43 = vpop.f32.mrb[96].mxu1 }
 0x1d8   : > { %v3790_v47 = vpop.f32.mrb[99].mxu0  ;;  %v3851_v48 = vpop.f32.mrb[97].mxu1 }
 0x1d9   : > { %v5890_v54 = vadd.f32 %v3788_v52, %v5806_v59  ;;  %v3791_v28 = vadd.f32 %v3790_v47, %v3789_v39  ;;  %v3852_v7 = vadd.f32 %v3851_v48, %v3850_v43  ;;  %v3853_v59 = vpop.f32.mrb[98].mxu1 }
 0x1da   : > { %v3854_v24 = vpop.f32.mrb[99].mxu1 }
 0x1db   : > { %v5896_v20 = vadd.f32 %v3791_v28, %v5812_v61  ;;  %v3855_v58 = vadd.f32 %v3854_v24, %v3853_v59  ;;  %v5905_v61 = vadd.f32 %v3852_v7, %v5797_v1 }
 0x1dd   : > { %v3792_v31 = vpop.f32.mrb[100].mxu0  ;;  %v5911_v37 = vadd.f32 %v3855_v58, %v5803_v32 }
 0x1de   : > { %v3793_v25 = vpop.f32.mrb[101].mxu0 }
 0x1df   : > { %v3794_v30 = vadd.f32 %v3793_v25, %v3792_v31  ;;  %v3795_v57 = vpop.f32.mrb[102].mxu0  ;;  %v3856_v40 = vpop.f32.mrb[100].mxu1 }
 0x1e0   : > { %v3796_v4 = vpop.f32.mrb[103].mxu0  ;;  %v3857_v26 = vpop.f32.mrb[101].mxu1 }
 0x1e1   : > { %v5902_v33 = vadd.f32 %v3794_v30, %v5818_v36  ;;  %v3797_v8 = vadd.f32 %v3796_v4, %v3795_v57  ;;  %v3858_v50 = vadd.f32 %v3857_v26, %v3856_v40  ;;  %v3859_v36 = vpop.f32.mrb[102].mxu1 }
 0x1e2   : > { %v3860_v52 = vpop.f32.mrb[103].mxu1 }
 0x1e3   : > { %v5908_v38 = vadd.f32 %v3797_v8, %v5824_v17  ;;  %v3861_v39 = vadd.f32 %v3860_v52, %v3859_v36  ;;  %v5917_v17 = vadd.f32 %v3858_v50, %v5809_v41 }
 0x1e5   : > { %v3798_v11 = vpop.f32.mrb[104].mxu0  ;;  %v5923_v27 = vadd.f32 %v3861_v39, %v5815_v49 }
 0x1e6   : > { %v3799_v12 = vpop.f32.mrb[105].mxu0 }
 0x1e7   : > { %v3800_v51 = vadd.f32 %v3799_v12, %v3798_v11  ;;  %v3801_v0 = vpop.f32.mrb[106].mxu0  ;;  %v3862_v34 = vpop.f32.mrb[104].mxu1 }
 0x1e8   : > { %v3802_v53 = vpop.f32.mrb[107].mxu0  ;;  %v3863_v46 = vpop.f32.mrb[105].mxu1 }
 0x1e9   : > { %v5914_v18 = vadd.f32 %v3800_v51, %v5830_v35  ;;  %v3803_v1 = vadd.f32 %v3802_v53, %v3801_v0  ;;  %v3864_v43 = vadd.f32 %v3863_v46, %v3862_v34  ;;  %v3865_v35 = vpop.f32.mrb[106].mxu1 }
 0x1ea   : > { %v3866_v30 = vpop.f32.mrb[107].mxu1 }
 0x1eb   : > { %v5920_v32 = vadd.f32 %v3803_v1, %v5836_v13  ;;  %v3867_v57 = vadd.f32 %v3866_v30, %v3865_v35  ;;  %v5929_v13 = vadd.f32 %v3864_v43, %v5821_v29 }
 0x1ed   : > { %v3804_v47 = vpop.f32.mrb[108].mxu0  ;;  %v5935_v59 = vadd.f32 %v3867_v57, %v5827_v3 }
 0x1ee   : > { %v3805_v28 = vpop.f32.mrb[109].mxu0 }
 0x1ef   : > { %v3806_v31 = vadd.f32 %v3805_v28, %v3804_v47  ;;  %v3807_v25 = vpop.f32.mrb[110].mxu0  ;;  %v3868_v4 = vpop.f32.mrb[108].mxu1 }
 0x1f0   : > { %v3808_v48 = vpop.f32.mrb[111].mxu0  ;;  %v3869_v58 = vpop.f32.mrb[109].mxu1 }
 0x1f1   : > { %v5926_v7 = vadd.f32 %v3806_v31, %v5842_v19  ;;  %v3809_v41 = vadd.f32 %v3808_v48, %v3807_v25  ;;  %v3870_v19 = vadd.f32 %v3869_v58, %v3868_v4  ;;  %v3871_v12 = vpop.f32.mrb[110].mxu1 }
 0x1f2   : > { %v3872_v51 = vpop.f32.mrb[111].mxu1 }
 0x1f3   : > { %v5932_v49 = vadd.f32 %v3809_v41, %v5848_v23  ;;  %v3873_v3 = vadd.f32 %v3872_v51, %v3871_v12 }
 0x1f5   : > { %v3964_v24 = vpop.f32.mrb[112].mxu0  ;;  %v5952_v52 = vadd.f32 %v3873_v3, %v5839_v14 }
 0x1f6   : > { %v2675_v8 = vadd.f32 %v3964_v24, %v5869_v44  ;;  %v2666_v11 = vpop.f32.mrb[113].mxu0  ;;  %v5949_v44 = vadd.f32 %v3870_v19, %v5833_v62 }
 0x1f7   : > { %v2667_v40 = vadd.f32 %v2666_v11, %v5857_v42  ;;  %v3965_v26 = vpop.f32.mrb[114].mxu0  ;;  %v3874_v34 = vpop.f32.mrb[112].mxu1 }
 0x1f8   : > { %v2678_v29 = vadd.f32 %v3965_v26, %v5875_v5  ;;  %v2669_v50 = vpop.f32.mrb[115].mxu0  ;;  %v2992_v1 = vmul.f32 %v2675_v8, %v2675_v8  ;;  %v3875_v62 = vpop.f32.mrb[113].mxu1 }
 0x1f9   : > { %v2670_v23 = vadd.f32 %v2669_v50, %v5863_v60  ;;  %v2990_v42 = vmul.f32 %v2667_v40, %v2667_v40  ;;  %v3876_v25 = vadd.f32 %v3875_v62, %v3874_v34  ;;  %v3877_v14 = vpop.f32.mrb[114].mxu1 }
 0x1fa   : > { %v3372_v0 = vpack.c.bf16 %v2678_v29, %v2675_v8  ;;  %v2993_v46 = vmul.f32 %v2678_v29, %v2678_v29  ;;  %v3878_v57 = vpop.f32.mrb[115].mxu1 }
 0x1fb   : > { %v3367_v36 = vpack.c.bf16 %v2670_v23, %v2667_v40  ;;  %v2953_v5 = vadd.f32 %v2670_v23, %v2667_v40  ;;  %v2991_v53 = vmul.f32 %v2670_v23, %v2670_v23  ;;  %v3879_v11 = vadd.f32 %v3878_v57, %v3877_v14 }
 0x1fc   : > { %3459 = vst [vmem:[%s5945_s13 + $0x8] sm:$0xff] %v3372_v0   ;;  %v5961_v40 = vadd.f32 %v3876_v25, %v5845_v16 }
 0x1fd   : > { %3368 = vst [vmem:[%s5945_s13] sm:$0xff] %v3367_v36   ;;  %v2954_v39 = vadd.f32 %v2953_v5, %v2675_v8  ;;  %v3022_v47 = vadd.f32 %v2991_v53, %v2990_v42  ;;  %v3968_v28 = vpop.f32.mrb[116].mxu0  ;;  %v5964_v12 = vadd.f32 %v3879_v11, %v5851_v9 }
 0x1fe   : > { %v2691_v60 = vadd.f32 %v3968_v28, %v5893_v6  ;;  %v2682_v31 = vpop.f32.mrb[117].mxu0 }
 0x1ff   : > { %v3023_v43 = vadd.f32 %v3022_v47, %v2992_v1  ;;  %v2683_v35 = vadd.f32 %v2682_v31, %v5881_v15  ;;  %v2955_v48 = vadd.f32 %v2954_v39, %v2678_v29  ;;  %v3969_v30 = vpop.f32.mrb[118].mxu0  ;;  %v3880_v51 = vpop.f32.mrb[116].mxu1 }
 0x200   : > { %v2694_v41 = vadd.f32 %v3969_v30, %v5899_v22  ;;  %v2685_v4 = vpop.f32.mrb[119].mxu0  ;;  %v2996_v3 = vmul.f32 %v2691_v60, %v2691_v60 }
 0x201   : > { %v2956_v24 = vadd.f32 %v2955_v48, %v2683_v35  ;;  %v2994_v8 = vmul.f32 %v2683_v35, %v2683_v35  ;;  %v3024_v58 = vadd.f32 %v3023_v43, %v2993_v46  ;;  %v2686_v19 = vadd.f32 %v2685_v4, %v5887_v56  ;;  %v3881_v56 = vpop.f32.mrb[117].mxu1 }
 0x202   : > { %v3382_v6 = vpack.c.bf16 %v2694_v41, %v2691_v60  ;;  %v3882_v16 = vadd.f32 %v3881_v56, %v3880_v51  ;;  %v3883_v53 = vpop.f32.mrb[118].mxu1  ;;  %v2997_v1 = vmul.f32 %v2694_v41, %v2694_v41 }
 0x203   : > { %v3025_v15 = vadd.f32 %v3024_v58, %v2994_v8  ;;  %v3377_v26 = vpack.c.bf16 %v2686_v19, %v2683_v35  ;;  %v2957_v22 = vadd.f32 %v2956_v24, %v2686_v19  ;;  %v2995_v29 = vmul.f32 %v2686_v19, %v2686_v19  ;;  %v3884_v28 = vpop.f32.mrb[119].mxu1 }
 0x204   : > { %3461 = vst [vmem:[%s5945_s13 + $0x18] sm:$0xff] %v3382_v6   ;;  %v3885_v62 = vadd.f32 %v3884_v28, %v3883_v53  ;;  %v2578_v31 = vadd.f32 %v3882_v16, %v5854_v45 }
 0x205   : > { %v3972_v50 = vpop.f32.mrb[120].mxu0  ;;  %3460 = vst [vmem:[%s5945_s13 + $0x10] sm:$0xff] %v3377_v26   ;;  %v2958_v23 = vadd.f32 %v2957_v22, %v2691_v60  ;;  %v3026_v42 = vadd.f32 %v3025_v15, %v2995_v29 }
 0x206   : > { %v2707_v0 = vadd.f32 %v3972_v50, %v5917_v17  ;;  %v2698_v36 = vpop.f32.mrb[121].mxu0  ;;  %v2581_v14 = vadd.f32 %v3885_v62, %v5860_v55 }
 0x207   : > { %v2699_v5 = vadd.f32 %v2698_v36, %v5905_v61  ;;  %v3973_v9 = vpop.f32.mrb[122].mxu0  ;;  %v3027_v39 = vadd.f32 %v3026_v42, %v2996_v3  ;;  %v2959_v47 = vadd.f32 %v2958_v23, %v2694_v41 }
 0x208   : > { %v2710_v34 = vadd.f32 %v3973_v9, %v5923_v27  ;;  %v2701_v46 = vpop.f32.mrb[123].mxu0  ;;  %v3886_v27 = vpop.f32.mrb[120].mxu1  ;;  %v3000_v4 = vmul.f32 %v2707_v0, %v2707_v0 }
 0x209   : > { %v2998_v60 = vmul.f32 %v2699_v5, %v2699_v5  ;;  %v2702_v17 = vadd.f32 %v2701_v46, %v5911_v37  ;;  %v2960_v43 = vadd.f32 %v2959_v47, %v2699_v5  ;;  %v3028_v25 = vadd.f32 %v3027_v39, %v2997_v1  ;;  %v3887_v58 = vpop.f32.mrb[121].mxu1 }
 0x20a   : > { %v3392_v61 = vpack.c.bf16 %v2710_v34, %v2707_v0  ;;  %v3888_v11 = vadd.f32 %v3887_v58, %v3886_v27  ;;  %v3889_v19 = vpop.f32.mrb[122].mxu1  ;;  %v3001_v26 = vmul.f32 %v2710_v34, %v2710_v34 }
 0x20b   : > { %v3387_v35 = vpack.c.bf16 %v2702_v17, %v2699_v5  ;;  %v2999_v48 = vmul.f32 %v2702_v17, %v2702_v17  ;;  %v3029_v30 = vadd.f32 %v3028_v25, %v2998_v60  ;;  %v2961_v41 = vadd.f32 %v2960_v43, %v2702_v17  ;;  %v3890_v51 = vpop.f32.mrb[123].mxu1 }
 0x20c   : > { %3463 = vst [vmem:[%s5945_s13 + $0x28] sm:$0xff] %v3392_v61   ;;  %v3891_v23 = vadd.f32 %v3890_v51, %v3889_v19  ;;  %v2586_v42 = vadd.f32 %v3888_v11, %v5866_v10 }
 0x20d   : > { %3462 = vst [vmem:[%s5945_s13 + $0x20] sm:$0xff] %v3387_v35   ;;  %v3976_v57 = vpop.f32.mrb[124].mxu0  ;;  %v2962_v24 = vadd.f32 %v2961_v41, %v2707_v0  ;;  %v3030_v8 = vadd.f32 %v3029_v30, %v2999_v48 }
 0x20e   : > { %v2723_v37 = vadd.f32 %v3976_v57, %v5949_v44  ;;  %v2714_v45 = vpop.f32.mrb[125].mxu0  ;;  %v2589_v5 = vadd.f32 %v3891_v23, %v5872_v2 }
 0x20f   : > { %v2715_v6 = vadd.f32 %v2714_v45, %v5929_v13  ;;  %v3977_v15 = vpop.f32.mrb[126].mxu0  ;;  %v3031_v55 = vadd.f32 %v3030_v8, %v3000_v4  ;;  %v2963_v22 = vadd.f32 %v2962_v24, %v2710_v34 }
 0x210   : > { %v2726_v29 = vadd.f32 %v3977_v15, %v5952_v52  ;;  %v2717_v50 = vpop.f32.mrb[127].mxu0  ;;  %v3892_v52 = vpop.f32.mrb[124].mxu1  ;;  %v3004_v39 = vmul.f32 %v2723_v37, %v2723_v37 }
 0x211   : > { %v3002_v3 = vmul.f32 %v2715_v6, %v2715_v6  ;;  %v2718_v44 = vadd.f32 %v2717_v50, %v5935_v59  ;;  %v2964_v0 = vadd.f32 %v2963_v22, %v2715_v6  ;;  %v3032_v56 = vadd.f32 %v3031_v55, %v3001_v26  ;;  %v3893_v59 = vpop.f32.mrb[125].mxu1 }
 0x212   : > { %v3402_v13 = vpack.c.bf16 %v2726_v29, %v2723_v37  ;;  %v3894_v10 = vadd.f32 %v3893_v59, %v3892_v52  ;;  %v3895_v62 = vpop.f32.mrb[126].mxu1  ;;  %v3005_v43 = vmul.f32 %v2726_v29, %v2726_v29 }
 0x213   : > { %v3397_v36 = vpack.c.bf16 %v2718_v44, %v2715_v6  ;;  %v3003_v16 = vmul.f32 %v2718_v44, %v2718_v44  ;;  %v3033_v53 = vadd.f32 %v3032_v56, %v3002_v3  ;;  %v2965_v9 = vadd.f32 %v2964_v0, %v2718_v44  ;;  %v3896_v35 = vpop.f32.mrb[127].mxu1 }
 0x214   : > { %3465 = vst [vmem:[%s5945_s13 + $0x38] sm:$0xff] %v3402_v13   ;;  %v3897_v41 = vadd.f32 %v3896_v35, %v3895_v62 }
 0x215   : > { %3464 = vst [vmem:[%s5945_s13 + $0x30] sm:$0xff] %v3397_v36   ;;  %v3980_v1 = vpop.f32.mrb[128].mxu0  ;;  %v2966_v47 = vadd.f32 %v2965_v9, %v2723_v37  ;;  %v3034_v34 = vadd.f32 %v3033_v53, %v3003_v16 }
 0x216   : > { %v2739_v28 = vadd.f32 %v3980_v1, %v2578_v31  ;;  %v2730_v46 = vpop.f32.mrb[129].mxu0  ;;  %v2594_v31 = vadd.f32 %v3894_v10, %v5878_v21  ;;  %v2597_v37 = vadd.f32 %v3897_v41, %v5884_v63 }
 0x217   : > { %v2731_v60 = vadd.f32 %v2730_v46, %v5961_v40  ;;  %v3981_v17 = vpop.f32.mrb[130].mxu0  ;;  %v3035_v25 = vadd.f32 %v3034_v34, %v3004_v39  ;;  %v2967_v2 = vadd.f32 %v2966_v47, %v2726_v29 }
 0x218   : > { %v2742_v61 = vadd.f32 %v3981_v17, %v2581_v14  ;;  %v2733_v48 = vpop.f32.mrb[131].mxu0  ;;  %v3898_v14 = vpop.f32.mrb[128].mxu1  ;;  %v3008_v6 = vmul.f32 %v2739_v28, %v2739_v28 }
 0x219   : > { %v3006_v30 = vmul.f32 %v2731_v60, %v2731_v60  ;;  %v2734_v27 = vadd.f32 %v2733_v48, %v5964_v12  ;;  %v2968_v57 = vadd.f32 %v2967_v2, %v2731_v60  ;;  %v3036_v4 = vadd.f32 %v3035_v25, %v3005_v43  ;;  %v3899_v12 = vpop.f32.mrb[129].mxu1 }
 0x21a   : > { %v3412_v24 = vpack.c.bf16 %v2742_v61, %v2739_v28  ;;  %v3900_v21 = vadd.f32 %v3899_v12, %v3898_v14  ;;  %v3901_v29 = vpop.f32.mrb[130].mxu1  ;;  %v3009_v50 = vmul.f32 %v2742_v61, %v2742_v61 }
 0x21b   : > { %v3407_v40 = vpack.c.bf16 %v2734_v27, %v2731_v60  ;;  %v3007_v8 = vmul.f32 %v2734_v27, %v2734_v27  ;;  %v3037_v58 = vadd.f32 %v3036_v4, %v3006_v30  ;;  %v2969_v45 = vadd.f32 %v2968_v57, %v2734_v27  ;;  %v3902_v44 = vpop.f32.mrb[131].mxu1 }
 0x21c   : > { %3467 = vst [vmem:[%s5945_s13 + $0x48] sm:$0xff] %v3412_v24   ;;  %v3903_v13 = vadd.f32 %v3902_v44, %v3901_v29  ;;  %v2602_v16 = vadd.f32 %v3900_v21, %v5890_v54 }
 0x21d   : > { %3466 = vst [vmem:[%s5945_s13 + $0x40] sm:$0xff] %v3407_v40   ;;  %v3984_v11 = vpop.f32.mrb[132].mxu0  ;;  %v2970_v19 = vadd.f32 %v2969_v45, %v2739_v28  ;;  %v3038_v15 = vadd.f32 %v3037_v58, %v3007_v8 }
 0x21e   : > { %v2755_v26 = vadd.f32 %v3984_v11, %v2594_v31  ;;  %v2746_v55 = vpop.f32.mrb[133].mxu0  ;;  %v2605_v39 = vadd.f32 %v3903_v13, %v5896_v20 }
 0x21f   : > { %v2747_v22 = vadd.f32 %v2746_v55, %v2586_v42  ;;  %v3985_v51 = vpop.f32.mrb[134].mxu0  ;;  %v3039_v3 = vadd.f32 %v3038_v15, %v3008_v6  ;;  %v2971_v63 = vadd.f32 %v2970_v19, %v2742_v61  ;;  %v3904_v28 = vpop.f32.mrb[132].mxu1 }
 0x220   : > { %v2758_v23 = vadd.f32 %v3985_v51, %v2597_v37  ;;  %v2749_v0 = vpop.f32.mrb[135].mxu0  ;;  %v3012_v46 = vmul.f32 %v2755_v26, %v2755_v26  ;;  %v3905_v62 = vpop.f32.mrb[133].mxu1 }
 0x221   : > { %v3010_v56 = vmul.f32 %v2747_v22, %v2747_v22  ;;  %v2750_v36 = vadd.f32 %v2749_v0, %v2589_v5  ;;  %v2972_v53 = vadd.f32 %v2971_v63, %v2747_v22  ;;  %v3040_v9 = vadd.f32 %v3039_v3, %v3009_v50  ;;  %v3907_v43 = vpop.f32.mrb[134].mxu1 }
 0x222   : > { %v3422_v52 = vpack.c.bf16 %v2758_v23, %v2755_v26  ;;  %v3906_v17 = vadd.f32 %v3905_v62, %v3904_v28  ;;  %v3013_v2 = vmul.f32 %v2758_v23, %v2758_v23  ;;  %v3908_v48 = vpop.f32.mrb[135].mxu1 }
 0x223   : > { %v3417_v1 = vpack.c.bf16 %v2750_v36, %v2747_v22  ;;  %v3011_v42 = vmul.f32 %v2750_v36, %v2750_v36  ;;  %v3041_v47 = vadd.f32 %v3040_v9, %v3010_v56  ;;  %v2973_v34 = vadd.f32 %v2972_v53, %v2750_v36 }
 0x224   : > { %3469 = vst [vmem:[%s5945_s13 + $0x58] sm:$0xff] %v3422_v52   ;;  %v2610_v30 = vadd.f32 %v3906_v17, %v5902_v33  ;;  %v3909_v27 = vadd.f32 %v3908_v48, %v3907_v43 }
 0x225   : > { %3468 = vst [vmem:[%s5945_s13 + $0x50] sm:$0xff] %v3417_v1   ;;  %v3988_v59 = vpop.f32.mrb[136].mxu0  ;;  %v2974_v10 = vadd.f32 %v2973_v34, %v2755_v26  ;;  %v3042_v60 = vadd.f32 %v3041_v47, %v3011_v42 }
 0x226   : > { %v2762_v5 = vpop.f32.mrb[137].mxu0  ;;  %v2771_v24 = vadd.f32 %v3988_v59, %v2610_v30  ;;  %v2613_v40 = vadd.f32 %v3909_v27, %v5908_v38 }
 0x227   : > { %v2763_v54 = vadd.f32 %v2762_v5, %v2602_v16  ;;  %v3989_v25 = vpop.f32.mrb[138].mxu0  ;;  %v3043_v61 = vadd.f32 %v3042_v60, %v3012_v46  ;;  %v2975_v35 = vadd.f32 %v2974_v10, %v2758_v23  ;;  %v3910_v6 = vpop.f32.mrb[136].mxu1 }
 0x228   : > { %v2765_v20 = vpop.f32.mrb[139].mxu0  ;;  %v3016_v14 = vmul.f32 %v2771_v24, %v2771_v24  ;;  %v2774_v11 = vadd.f32 %v3989_v25, %v2613_v40  ;;  %v3911_v26 = vpop.f32.mrb[137].mxu1 }
 0x229   : > { %v3014_v41 = vmul.f32 %v2763_v54, %v2763_v54  ;;  %v2766_v31 = vadd.f32 %v2765_v20, %v2605_v39  ;;  %v2976_v57 = vadd.f32 %v2975_v35, %v2763_v54  ;;  %v3044_v4 = vadd.f32 %v3043_v61, %v3013_v2  ;;  %v3913_v29 = vpop.f32.mrb[138].mxu1 }
 0x22a   : > { %v3432_v55 = vpack.c.bf16 %v2774_v11, %v2771_v24  ;;  %v3017_v21 = vmul.f32 %v2774_v11, %v2774_v11  ;;  %v3912_v22 = vadd.f32 %v3911_v26, %v3910_v6  ;;  %v3914_v50 = vpop.f32.mrb[139].mxu1 }
 0x22b   : > { %v3427_v8 = vpack.c.bf16 %v2766_v31, %v2763_v54  ;;  %v3015_v37 = vmul.f32 %v2766_v31, %v2766_v31  ;;  %v3045_v58 = vadd.f32 %v3044_v4, %v3014_v41  ;;  %v2977_v45 = vadd.f32 %v2976_v57, %v2766_v31 }
 0x22c   : > { %3471 = vst [vmem:[%s5945_s13 + $0x68] sm:$0xff] %v3432_v55   ;;  %v3915_v23 = vadd.f32 %v3914_v50, %v3913_v29  ;;  %v2618_v44 = vadd.f32 %v3912_v22, %v5914_v18 }
 0x22d   : > { %3470 = vst [vmem:[%s5945_s13 + $0x60] sm:$0xff] %v3427_v8   ;;  %v3992_v19 = vpop.f32.mrb[140].mxu0  ;;  %v2978_v15 = vadd.f32 %v2977_v45, %v2771_v24  ;;  %v3046_v33 = vadd.f32 %v3045_v58, %v3015_v37 }
 0x22e   : > { %v2778_v12 = vpop.f32.mrb[141].mxu0  ;;  %v2621_v13 = vadd.f32 %v3915_v23, %v5920_v32 }
 0x22f   : > { %v3993_v51 = vpop.f32.mrb[142].mxu0  ;;  %v3047_v38 = vadd.f32 %v3046_v33, %v3016_v14  ;;  %v2979_v3 = vadd.f32 %v2978_v15, %v2774_v11  ;;  %v2779_v56 = vadd.f32 %v2778_v12, %v2618_v44  ;;  %v3916_v9 = vpop.f32.mrb[140].mxu1 }
 0x230   : > { %v2781_v63 = vpop.f32.mrb[143].mxu0  ;;  %v3917_v52 = vpop.f32.mrb[141].mxu1 }
 0x231   : > { %v3048_v0 = vadd.f32 %v3047_v38, %v3017_v21  ;;  %v2980_v36 = vadd.f32 %v2979_v3, %v2779_v56  ;;  %v3018_v16 = vmul.f32 %v2779_v56, %v2779_v56  ;;  %v2782_v53 = vadd.f32 %v2781_v63, %v2621_v13  ;;  %v3919_v34 = vpop.f32.mrb[142].mxu1 }
 0x232   : > { %v3918_v28 = vadd.f32 %v3917_v52, %v3916_v9  ;;  %v3920_v59 = vpop.f32.mrb[143].mxu1 }
 0x233   : > { %v3049_v1 = vadd.f32 %v3048_v0, %v3018_v16  ;;  %v3437_v42 = vpack.c.bf16 %v2782_v53, %v2779_v56  ;;  %v2981_v39 = vadd.f32 %v2980_v36, %v2782_v53  ;;  %v3019_v47 = vmul.f32 %v2782_v53, %v2782_v53 }
 0x234   : > { %v3921_v46 = vadd.f32 %v3920_v59, %v3919_v34  ;;  %v2626_v10 = vadd.f32 %v3918_v28, %v5926_v7 }
 0x235   : > { %3472 = vst [vmem:[%s5945_s13 + $0x70] sm:$0xff] %v3437_v42   ;;  %v3050_v18 = vadd.f32 %v3049_v1, %v3019_v47 }
 0x236   : > { %v2629_v32 = vadd.f32 %v3921_v46, %v5932_v49  ;;  %v2787_v60 = vadd.f32 %v3992_v19, %v2626_v10 }
 0x238   : > { %v2790_v62 = vadd.f32 %v3993_v51, %v2629_v32  ;;  %v2982_v5 = vadd.f32 %v2981_v39, %v2787_v60  ;;  %v3020_v17 = vmul.f32 %v2787_v60, %v2787_v60 }
 0x23a   : > { %v3442_v54 = vpack.c.bf16 %v2790_v62, %v2787_v60  ;;  %v3021_v43 = vmul.f32 %v2790_v62, %v2790_v62  ;;  %v3051_v25 = vadd.f32 %v3050_v18, %v3020_v17  ;;  %v2983_v2 = vadd.f32 %v2982_v5, %v2790_v62 }
 0x23c   : > { %3473 = vst [vmem:[%s5945_s13 + $0x78] sm:$0xff] %v3442_v54   ;;  %v2984_v61 = vrot.slane %v2983_v2, 4  ;;  %v3052_v35 = vadd.f32 %v3051_v25, %v3021_v43 }
 0x23e   : > { %v2985_v48 = vadd.f32 %v2984_v61, %v2983_v2  ;;  %v3053_v20 = vrot.slane %v3052_v35, 4 }
 0x240   : > { %v2986_v30 = vrot.slane %v2985_v48, 2  ;;  %v3054_v41 = vadd.f32 %v3053_v20, %v3052_v35 }
 0x242   : > { %v2987_v27 = vadd.f32 %v2986_v30, %v2985_v48  ;;  %v3055_v7 = vrot.slane %v3054_v41, 2 }
 0x244   : > { %v2988_v31 = vrot.slane %v2987_v27, 1  ;;  %v3056_v49 = vadd.f32 %v3055_v7, %v3054_v41 }
 0x246   : > { %v3057_v57 = vrot.slane %v3056_v49, 1  ;;  %v2989_v4 = vadd.f32 %v2988_v31, %v2987_v27 }
 0x248   : > { %v3058_v24 = vadd.f32 %v3057_v57, %v3056_v49 }
 0x24a   : > { %v3060_v40 = vsel %vm464_vm0, %v2989_v4, %v3058_v24 }
 0x24b   : > { %v3062_v8 = vsel %vm3061_vm11, %v3060_v40, 0.0 }
 0x24c   : > { %3063 = vst [vmem:[%s262_s17] sm:$0xff] %v3062_v8 }
 0x24d PF: > { %s17_s21 = sadd.s32 1, %s4105_s21  }
 0x24e   : > { %p14_p4 = scmp.ge.s32.totalorder %s17_s21, 4  }
 0x250   :  { %16 = sbr.rel (!%p14_p4) target bundleno = 1 (0x1), region = 84 }

</bundles_post_ra>
